<compile_context>
chip_gen: v6e
topology: v6e:2x2x1
jax: 0.10.0
libtpu: 0.0.40
codegen_flags: <defaults>
</compile_context>

<pallas_src>
import functools

import jax
import jax.numpy as jnp
from jax.experimental import pallas as pl
from jax.experimental.pallas import tpu as pltpu


# ---------------------- fused conv/bn/relu (xL) + linear kernel ----------------------
def _fused_kernel(*refs, layer_meta, n, h, w, lin_out, eps):
    # refs = (x_ref, [w_flat, gamma, beta] per layer, lin_w_ref, lin_b_ref, o_ref)
    x_ref = refs[0]
    o_ref = refs[-1]
    lin_b_ref = refs[-2]
    lin_w_ref = refs[-3]
    lay_refs = refs[1:-3]

    # Hoisted boundary masks for the "same"-conv tap offsets (shared by all layers).
    offs = sorted({kk - pad for (_, _, k, pad) in layer_meta for kk in range(k)})
    col = jax.lax.broadcasted_iota(jnp.int32, (h, w), 1)
    row = jax.lax.broadcasted_iota(jnp.int32, (h, w), 0)
    lane_ok = {d: (col + d >= 0) & (col + d < w) for d in offs if d != 0}
    row_ok = {d: (row + d >= 0) & (row + d < h) for d in offs if d != 0}

    def hshift(p, dw):
        # S[:, j] = p[:, j + dw], zero outside [0, w): lane roll (XLU) + mask.
        if dw == 0:
            return p
        s = pltpu.roll(p, shift=(-dw) % w, axis=1)
        return jnp.where(lane_ok[dw], s, 0.0)

    def vshift(p, dh):
        # S[i, :] = p[i + dh, :], zero outside [0, h): sublane roll + mask.
        if dh == 0:
            return p
        s = pltpu.roll(p, shift=(-dh) % h, axis=0)
        return jnp.where(row_ok[dh], s, 0.0)

    inv_cnt = 1.0 / float(n * h * w)
    planes = None  # planes[c][nn] -> (h, w) activation plane feeding the current layer

    for li, (cin, cout, k, pad) in enumerate(layer_meta):
        w_ref, g_ref, bt_ref = lay_refs[3 * li:3 * li + 3]
        accs = [[jnp.zeros((h, w), jnp.float32) for _ in range(n)] for _ in range(cout)]
        for ci in range(cin):
            for nn in range(n):
                p = x_ref[nn, ci, :, :] if planes is None else planes[ci][nn]
                for kw in range(k):
                    hp = hshift(p, kw - pad)            # reused across kh and all cout
                    for kh in range(k):
                        tap = vshift(hp, kh - pad)      # reused across all cout
                        for co in range(cout):
                            idx = ((co * cin + ci) * k + kh) * k + kw
                            accs[co][nn] = accs[co][nn] + tap * w_ref[idx]

        # BatchNorm2d (training-mode per-channel batch stats over (N,H,W), biased
        # variance, eps inside rsqrt) + ReLU. Single-pass stats; the Conv2d bias is
        # intentionally omitted -- it cancels exactly in the BN mean subtraction.
        new_planes = []
        for co in range(cout):
            s1 = 0.0
            s2 = 0.0
            for nn in range(n):
                a = accs[co][nn]
                s1 = s1 + jnp.sum(a)
                s2 = s2 + jnp.sum(a * a)
            mean = s1 * inv_cnt
            var = s2 * inv_cnt - mean * mean
            scale = jax.lax.rsqrt(var + eps) * g_ref[co]
            shift_c = bt_ref[co] - mean * scale
            new_planes.append([jnp.maximum(accs[co][nn] * scale + shift_c, 0.0)
                               for nn in range(n)])
        planes = new_planes

    # Linear on the last (width) dim: one MXU matmul on the flattened activation.
    cout_last = layer_meta[-1][1]
    mat = jnp.concatenate(
        [planes[co][nn] for nn in range(n) for co in range(cout_last)], axis=0
    )                                                   # (n*C*h, w), lane-dense
    res = jnp.dot(mat, lin_w_ref[...], preferred_element_type=jnp.float32)
    res = res + lin_b_ref[...]                          # (1, lin_out) broadcast
    for nn in range(n):
        for co in range(cout_last):
            r0 = (nn * cout_last + co) * h
            o_ref[nn, co, :, :] = res[r0:r0 + h, :]


def model_forward(x, params, eps=1e-5):
    n, cin0, h, w = x.shape
    smem = pl.BlockSpec(memory_space=pltpu.MemorySpace.SMEM)
    vmem = pl.BlockSpec(memory_space=pltpu.MemorySpace.VMEM)

    layer_meta = []
    args, in_specs = [x], [vmem]
    prev_c = cin0
    for (cw, cb, g, bt, pad) in params["conv"]:
        cout, cin, k, k2 = cw.shape
        assert k == k2 and cin == prev_c
        assert 2 * pad == k - 1, "fused kernel assumes 'same' convolutions"
        layer_meta.append((cin, cout, k, pad))
        # Conv2d bias (cb) is not passed: it is a provable no-op under training-mode BN.
        args += [cw.reshape(-1), g, bt]
        in_specs += [smem, smem, smem]
        prev_c = cout

    lin_w_t = params["lin_w_t"]
    lin_out = lin_w_t.shape[1]
    assert lin_w_t.shape[0] == w, "input width must equal Linear.in_features"
    args += [lin_w_t, params["lin_b"].reshape(1, lin_out)]
    in_specs += [vmem, vmem]

    kern = functools.partial(_fused_kernel, layer_meta=tuple(layer_meta),
                             n=n, h=h, w=w, lin_out=lin_out, eps=eps)
    return pl.pallas_call(
        kern,
        out_shape=jax.ShapeDtypeStruct((n, prev_c, h, lin_out), jnp.float32),
        in_specs=in_specs,
        out_specs=vmem,
    )(*args)


# --------------------------------- pure-JAX reference ---------------------------------
def reference_forward(x, params, eps=1e-5):
    for (w, b, g, bt, pad) in params["conv"]:
        y = jax.lax.conv_general_dilated(
            x, w, window_strides=(1, 1), padding=[(pad, pad), (pad, pad)],
            dimension_numbers=("NCHW", "OIHW", "NCHW"))
        y = y + b[None, :, None, None]
        mean = jnp.mean(y, axis=(0, 2, 3), keepdims=True)
        var = jnp.mean((y - mean) ** 2, axis=(0, 2, 3), keepdims=True)
        y = (y - mean) / jnp.sqrt(var + eps)
        y = y * g[None, :, None, None] + bt[None, :, None, None]
        x = jnp.maximum(y, 0.0)
    return jnp.einsum("nchw,wo->ncho", x, params["lin_w_t"]) + params["lin_b"]


# ---------------------------------- parameter init ------------------------------------
def init_params(key, conv_neurons, conv_kernels_sizes, paddings, lin_in, lin_out):
    params = {"conv": []}
    for i, cout in enumerate(conv_neurons):
        cin = conv_neurons[i - 1] if i > 0 else 3
        k = conv_kernels_sizes[i]
        key, k1, k2 = jax.random.split(key, 3)
        w = jax.random.normal(k1, (cout, cin, k, k), jnp.float32) * 0.1
        b = jax.random.normal(k2, (cout,), jnp.float32) * 0.1
        gamma = jnp.ones((cout,), jnp.float32) * 1.25
        beta = jnp.ones((cout,), jnp.float32) * 0.05
        params["conv"].append((w, b, gamma, beta, paddings[i]))
    key, k1, k2 = jax.random.split(key, 3)
    params["lin_w_t"] = jax.random.normal(k1, (lin_in, lin_out), jnp.float32) * 0.05
    params["lin_b"] = jax.random.normal(k2, (lin_out,), jnp.float32) * 0.05
    return params


if __name__ == "__main__":
    # kwargs of the PyTorch module
    num_conv_layers = 2
    conv_neurons = [2, 4]
    conv_kernels_sizes = [3, 3]
    paddings = [1, 1]
    lin_in = conv_neurons[num_conv_layers - 1 - 1] * 8 * 8   # 2 * 64 = 128
    lin_out = 10

    key = jax.random.PRNGKey(0)
    key, kx = jax.random.split(key)
    # Input width must equal Linear.in_features (forward applies Linear to last dim).
    x = jax.random.normal(kx, (2, 3, 8, lin_in), jnp.float32)

    params = init_params(key, conv_neurons, conv_kernels_sizes, paddings,
                         lin_in, lin_out)

    out = jax.block_until_ready(model_forward(x, params))
    ref = jax.block_until_ready(reference_forward(x, params))

    assert out.shape == (2, conv_neurons[-1], 8, lin_out), out.shape
    err = float(jnp.max(jnp.abs(out - ref)))
    assert jnp.allclose(out, ref, atol=3e-4, rtol=1e-3), err
    print("KERNEL_OK")
</pallas_src>

<mosaic_0001>
module attributes {stable_mosaic.version = 11 : i64} {
  func.func @_fused_kernel(%arg0: memref<2x3x8x128xf32, #tpu.memory_space<vmem>>, %arg1: memref<54xf32, #tpu.memory_space<smem>>, %arg2: memref<2xf32, #tpu.memory_space<smem>>, %arg3: memref<2xf32, #tpu.memory_space<smem>>, %arg4: memref<72xf32, #tpu.memory_space<smem>>, %arg5: memref<4xf32, #tpu.memory_space<smem>>, %arg6: memref<4xf32, #tpu.memory_space<smem>>, %arg7: memref<128x10xf32, #tpu.memory_space<vmem>>, %arg8: memref<1x10xf32, #tpu.memory_space<vmem>>, %arg9: memref<2x4x8x10xf32, #tpu.memory_space<vmem>>) attributes {dimension_semantics = [], scalar_prefetch = 0 : i64, scratch_operands = 0 : i64, tpu.core_type = #tpu.core_type<tc>} {
    %0 = tpu.iota {dimensions = array<i32: 1>} : vector<8x128xi32>
    %1 = tpu.iota {dimensions = array<i32: 0>} : vector<8x128xi32>
    %c-1_i32 = arith.constant -1 : i32
    %2 = vector.broadcast %c-1_i32 : i32 to vector<8x128xi32>
    %3 = arith.addi %0, %2 : vector<8x128xi32>
    %c0_i32 = arith.constant 0 : i32
    %4 = vector.broadcast %c0_i32 : i32 to vector<8x128xi32>
    %5 = arith.cmpi sge, %3, %4 : vector<8x128xi32>
    %c-1_i32_0 = arith.constant -1 : i32
    %6 = vector.broadcast %c-1_i32_0 : i32 to vector<8x128xi32>
    %7 = arith.addi %0, %6 : vector<8x128xi32>
    %c128_i32 = arith.constant 128 : i32
    %8 = vector.broadcast %c128_i32 : i32 to vector<8x128xi32>
    %9 = arith.cmpi slt, %7, %8 : vector<8x128xi32>
    %10 = arith.andi %5, %9 : vector<8x128xi1>
    %c1_i32 = arith.constant 1 : i32
    %11 = vector.broadcast %c1_i32 : i32 to vector<8x128xi32>
    %12 = arith.addi %0, %11 : vector<8x128xi32>
    %c0_i32_1 = arith.constant 0 : i32
    %13 = vector.broadcast %c0_i32_1 : i32 to vector<8x128xi32>
    %14 = arith.cmpi sge, %12, %13 : vector<8x128xi32>
    %c1_i32_2 = arith.constant 1 : i32
    %15 = vector.broadcast %c1_i32_2 : i32 to vector<8x128xi32>
    %16 = arith.addi %0, %15 : vector<8x128xi32>
    %c128_i32_3 = arith.constant 128 : i32
    %17 = vector.broadcast %c128_i32_3 : i32 to vector<8x128xi32>
    %18 = arith.cmpi slt, %16, %17 : vector<8x128xi32>
    %19 = arith.andi %14, %18 : vector<8x128xi1>
    %c-1_i32_4 = arith.constant -1 : i32
    %20 = vector.broadcast %c-1_i32_4 : i32 to vector<8x128xi32>
    %21 = arith.addi %1, %20 : vector<8x128xi32>
    %c0_i32_5 = arith.constant 0 : i32
    %22 = vector.broadcast %c0_i32_5 : i32 to vector<8x128xi32>
    %23 = arith.cmpi sge, %21, %22 : vector<8x128xi32>
    %c-1_i32_6 = arith.constant -1 : i32
    %24 = vector.broadcast %c-1_i32_6 : i32 to vector<8x128xi32>
    %25 = arith.addi %1, %24 : vector<8x128xi32>
    %c8_i32 = arith.constant 8 : i32
    %26 = vector.broadcast %c8_i32 : i32 to vector<8x128xi32>
    %27 = arith.cmpi slt, %25, %26 : vector<8x128xi32>
    %28 = arith.andi %23, %27 : vector<8x128xi1>
    %c1_i32_7 = arith.constant 1 : i32
    %29 = vector.broadcast %c1_i32_7 : i32 to vector<8x128xi32>
    %30 = arith.addi %1, %29 : vector<8x128xi32>
    %c0_i32_8 = arith.constant 0 : i32
    %31 = vector.broadcast %c0_i32_8 : i32 to vector<8x128xi32>
    %32 = arith.cmpi sge, %30, %31 : vector<8x128xi32>
    %c1_i32_9 = arith.constant 1 : i32
    %33 = vector.broadcast %c1_i32_9 : i32 to vector<8x128xi32>
    %34 = arith.addi %1, %33 : vector<8x128xi32>
    %c8_i32_10 = arith.constant 8 : i32
    %35 = vector.broadcast %c8_i32_10 : i32 to vector<8x128xi32>
    %36 = arith.cmpi slt, %34, %35 : vector<8x128xi32>
    %37 = arith.andi %32, %36 : vector<8x128xi1>
    %cst = arith.constant 0.000000e+00 : f32
    %38 = vector.broadcast %cst : f32 to vector<8x128xf32>
    %cst_11 = arith.constant 0.000000e+00 : f32
    %39 = vector.broadcast %cst_11 : f32 to vector<8x128xf32>
    %cst_12 = arith.constant 0.000000e+00 : f32
    %40 = vector.broadcast %cst_12 : f32 to vector<8x128xf32>
    %cst_13 = arith.constant 0.000000e+00 : f32
    %41 = vector.broadcast %cst_13 : f32 to vector<8x128xf32>
    %c0 = arith.constant 0 : index
    %c0_14 = arith.constant 0 : index
    %c0_15 = arith.constant 0 : index
    %c0_16 = arith.constant 0 : index
    %42 = vector.load %arg0[%c0, %c0_14, %c0_15, %c0_16] : memref<2x3x8x128xf32, #tpu.memory_space<vmem>>, vector<1x1x8x128xf32>
    %43 = vector.shape_cast %42 : vector<1x1x8x128xf32> to vector<8x128xf32>
    %c1_i32_17 = arith.constant 1 : i32
    %44 = tpu.dynamic_rotate %43 by %c1_i32_17 dim 1 : vector<8x128xf32>, i32 -> vector<8x128xf32>
    %cst_18 = arith.constant 0.000000e+00 : f32
    %45 = vector.broadcast %cst_18 : f32 to vector<8x128xf32>
    %46 = arith.select %10, %44, %45 : vector<8x128xi1>, vector<8x128xf32>
    %c1_i32_19 = arith.constant 1 : i32
    %47 = tpu.dynamic_rotate %46 by %c1_i32_19 dim 0 : vector<8x128xf32>, i32 -> vector<8x128xf32>
    %cst_20 = arith.constant 0.000000e+00 : f32
    %48 = vector.broadcast %cst_20 : f32 to vector<8x128xf32>
    %49 = arith.select %28, %47, %48 : vector<8x128xi1>, vector<8x128xf32>
    %c0_21 = arith.constant 0 : index
    %50 = memref.load %arg1[%c0_21] : memref<54xf32, #tpu.memory_space<smem>>
    %51 = vector.broadcast %50 : f32 to vector<8x128xf32>
    %52 = arith.mulf %49, %51 : vector<8x128xf32>
    %53 = arith.addf %38, %52 : vector<8x128xf32>
    %c27 = arith.constant 27 : index
    %54 = memref.load %arg1[%c27] : memref<54xf32, #tpu.memory_space<smem>>
    %55 = vector.broadcast %54 : f32 to vector<8x128xf32>
    %56 = arith.mulf %49, %55 : vector<8x128xf32>
    %57 = arith.addf %40, %56 : vector<8x128xf32>
    %c3 = arith.constant 3 : index
    %58 = memref.load %arg1[%c3] : memref<54xf32, #tpu.memory_space<smem>>
    %59 = vector.broadcast %58 : f32 to vector<8x128xf32>
    %60 = arith.mulf %46, %59 : vector<8x128xf32>
    %61 = arith.addf %53, %60 : vector<8x128xf32>
    %c30 = arith.constant 30 : index
    %62 = memref.load %arg1[%c30] : memref<54xf32, #tpu.memory_space<smem>>
    %63 = vector.broadcast %62 : f32 to vector<8x128xf32>
    %64 = arith.mulf %46, %63 : vector<8x128xf32>
    %65 = arith.addf %57, %64 : vector<8x128xf32>
    %c7_i32 = arith.constant 7 : i32
    %66 = tpu.dynamic_rotate %46 by %c7_i32 dim 0 : vector<8x128xf32>, i32 -> vector<8x128xf32>
    %cst_22 = arith.constant 0.000000e+00 : f32
    %67 = vector.broadcast %cst_22 : f32 to vector<8x128xf32>
    %68 = arith.select %37, %66, %67 : vector<8x128xi1>, vector<8x128xf32>
    %c6 = arith.constant 6 : index
    %69 = memref.load %arg1[%c6] : memref<54xf32, #tpu.memory_space<smem>>
    %70 = vector.broadcast %69 : f32 to vector<8x128xf32>
    %71 = arith.mulf %68, %70 : vector<8x128xf32>
    %72 = arith.addf %61, %71 : vector<8x128xf32>
    %c33 = arith.constant 33 : index
    %73 = memref.load %arg1[%c33] : memref<54xf32, #tpu.memory_space<smem>>
    %74 = vector.broadcast %73 : f32 to vector<8x128xf32>
    %75 = arith.mulf %68, %74 : vector<8x128xf32>
    %76 = arith.addf %65, %75 : vector<8x128xf32>
    %c1_i32_23 = arith.constant 1 : i32
    %77 = tpu.dynamic_rotate %43 by %c1_i32_23 dim 0 : vector<8x128xf32>, i32 -> vector<8x128xf32>
    %cst_24 = arith.constant 0.000000e+00 : f32
    %78 = vector.broadcast %cst_24 : f32 to vector<8x128xf32>
    %79 = arith.select %28, %77, %78 : vector<8x128xi1>, vector<8x128xf32>
    %c1 = arith.constant 1 : index
    %80 = memref.load %arg1[%c1] : memref<54xf32, #tpu.memory_space<smem>>
    %81 = vector.broadcast %80 : f32 to vector<8x128xf32>
    %82 = arith.mulf %79, %81 : vector<8x128xf32>
    %83 = arith.addf %72, %82 : vector<8x128xf32>
    %c28 = arith.constant 28 : index
    %84 = memref.load %arg1[%c28] : memref<54xf32, #tpu.memory_space<smem>>
    %85 = vector.broadcast %84 : f32 to vector<8x128xf32>
    %86 = arith.mulf %79, %85 : vector<8x128xf32>
    %87 = arith.addf %76, %86 : vector<8x128xf32>
    %c4 = arith.constant 4 : index
    %88 = memref.load %arg1[%c4] : memref<54xf32, #tpu.memory_space<smem>>
    %89 = vector.broadcast %88 : f32 to vector<8x128xf32>
    %90 = arith.mulf %43, %89 : vector<8x128xf32>
    %91 = arith.addf %83, %90 : vector<8x128xf32>
    %c31 = arith.constant 31 : index
    %92 = memref.load %arg1[%c31] : memref<54xf32, #tpu.memory_space<smem>>
    %93 = vector.broadcast %92 : f32 to vector<8x128xf32>
    %94 = arith.mulf %43, %93 : vector<8x128xf32>
    %95 = arith.addf %87, %94 : vector<8x128xf32>
    %c7_i32_25 = arith.constant 7 : i32
    %96 = tpu.dynamic_rotate %43 by %c7_i32_25 dim 0 : vector<8x128xf32>, i32 -> vector<8x128xf32>
    %cst_26 = arith.constant 0.000000e+00 : f32
    %97 = vector.broadcast %cst_26 : f32 to vector<8x128xf32>
    %98 = arith.select %37, %96, %97 : vector<8x128xi1>, vector<8x128xf32>
    %c7 = arith.constant 7 : index
    %99 = memref.load %arg1[%c7] : memref<54xf32, #tpu.memory_space<smem>>
    %100 = vector.broadcast %99 : f32 to vector<8x128xf32>
    %101 = arith.mulf %98, %100 : vector<8x128xf32>
    %102 = arith.addf %91, %101 : vector<8x128xf32>
    %c34 = arith.constant 34 : index
    %103 = memref.load %arg1[%c34] : memref<54xf32, #tpu.memory_space<smem>>
    %104 = vector.broadcast %103 : f32 to vector<8x128xf32>
    %105 = arith.mulf %98, %104 : vector<8x128xf32>
    %106 = arith.addf %95, %105 : vector<8x128xf32>
    %c127_i32 = arith.constant 127 : i32
    %107 = tpu.dynamic_rotate %43 by %c127_i32 dim 1 : vector<8x128xf32>, i32 -> vector<8x128xf32>
    %cst_27 = arith.constant 0.000000e+00 : f32
    %108 = vector.broadcast %cst_27 : f32 to vector<8x128xf32>
    %109 = arith.select %19, %107, %108 : vector<8x128xi1>, vector<8x128xf32>
    %c1_i32_28 = arith.constant 1 : i32
    %110 = tpu.dynamic_rotate %109 by %c1_i32_28 dim 0 : vector<8x128xf32>, i32 -> vector<8x128xf32>
    %cst_29 = arith.constant 0.000000e+00 : f32
    %111 = vector.broadcast %cst_29 : f32 to vector<8x128xf32>
    %112 = arith.select %28, %110, %111 : vector<8x128xi1>, vector<8x128xf32>
    %c2 = arith.constant 2 : index
    %113 = memref.load %arg1[%c2] : memref<54xf32, #tpu.memory_space<smem>>
    %114 = vector.broadcast %113 : f32 to vector<8x128xf32>
    %115 = arith.mulf %112, %114 : vector<8x128xf32>
    %116 = arith.addf %102, %115 : vector<8x128xf32>
    %c29 = arith.constant 29 : index
    %117 = memref.load %arg1[%c29] : memref<54xf32, #tpu.memory_space<smem>>
    %118 = vector.broadcast %117 : f32 to vector<8x128xf32>
    %119 = arith.mulf %112, %118 : vector<8x128xf32>
    %120 = arith.addf %106, %119 : vector<8x128xf32>
    %c5 = arith.constant 5 : index
    %121 = memref.load %arg1[%c5] : memref<54xf32, #tpu.memory_space<smem>>
    %122 = vector.broadcast %121 : f32 to vector<8x128xf32>
    %123 = arith.mulf %109, %122 : vector<8x128xf32>
    %124 = arith.addf %116, %123 : vector<8x128xf32>
    %c32 = arith.constant 32 : index
    %125 = memref.load %arg1[%c32] : memref<54xf32, #tpu.memory_space<smem>>
    %126 = vector.broadcast %125 : f32 to vector<8x128xf32>
    %127 = arith.mulf %109, %126 : vector<8x128xf32>
    %128 = arith.addf %120, %127 : vector<8x128xf32>
    %c7_i32_30 = arith.constant 7 : i32
    %129 = tpu.dynamic_rotate %109 by %c7_i32_30 dim 0 : vector<8x128xf32>, i32 -> vector<8x128xf32>
    %cst_31 = arith.constant 0.000000e+00 : f32
    %130 = vector.broadcast %cst_31 : f32 to vector<8x128xf32>
    %131 = arith.select %37, %129, %130 : vector<8x128xi1>, vector<8x128xf32>
    %c8 = arith.constant 8 : index
    %132 = memref.load %arg1[%c8] : memref<54xf32, #tpu.memory_space<smem>>
    %133 = vector.broadcast %132 : f32 to vector<8x128xf32>
    %134 = arith.mulf %131, %133 : vector<8x128xf32>
    %135 = arith.addf %124, %134 : vector<8x128xf32>
    %c35 = arith.constant 35 : index
    %136 = memref.load %arg1[%c35] : memref<54xf32, #tpu.memory_space<smem>>
    %137 = vector.broadcast %136 : f32 to vector<8x128xf32>
    %138 = arith.mulf %131, %137 : vector<8x128xf32>
    %139 = arith.addf %128, %138 : vector<8x128xf32>
    %c1_32 = arith.constant 1 : index
    %c0_33 = arith.constant 0 : index
    %c0_34 = arith.constant 0 : index
    %c0_35 = arith.constant 0 : index
    %140 = vector.load %arg0[%c1_32, %c0_33, %c0_34, %c0_35] : memref<2x3x8x128xf32, #tpu.memory_space<vmem>>, vector<1x1x8x128xf32>
    %141 = vector.shape_cast %140 : vector<1x1x8x128xf32> to vector<8x128xf32>
    %c1_i32_36 = arith.constant 1 : i32
    %142 = tpu.dynamic_rotate %141 by %c1_i32_36 dim 1 : vector<8x128xf32>, i32 -> vector<8x128xf32>
    %cst_37 = arith.constant 0.000000e+00 : f32
    %143 = vector.broadcast %cst_37 : f32 to vector<8x128xf32>
    %144 = arith.select %10, %142, %143 : vector<8x128xi1>, vector<8x128xf32>
    %c1_i32_38 = arith.constant 1 : i32
    %145 = tpu.dynamic_rotate %144 by %c1_i32_38 dim 0 : vector<8x128xf32>, i32 -> vector<8x128xf32>
    %cst_39 = arith.constant 0.000000e+00 : f32
    %146 = vector.broadcast %cst_39 : f32 to vector<8x128xf32>
    %147 = arith.select %28, %145, %146 : vector<8x128xi1>, vector<8x128xf32>
    %c0_40 = arith.constant 0 : index
    %148 = memref.load %arg1[%c0_40] : memref<54xf32, #tpu.memory_space<smem>>
    %149 = vector.broadcast %148 : f32 to vector<8x128xf32>
    %150 = arith.mulf %147, %149 : vector<8x128xf32>
    %151 = arith.addf %39, %150 : vector<8x128xf32>
    %c27_41 = arith.constant 27 : index
    %152 = memref.load %arg1[%c27_41] : memref<54xf32, #tpu.memory_space<smem>>
    %153 = vector.broadcast %152 : f32 to vector<8x128xf32>
    %154 = arith.mulf %147, %153 : vector<8x128xf32>
    %155 = arith.addf %41, %154 : vector<8x128xf32>
    %c3_42 = arith.constant 3 : index
    %156 = memref.load %arg1[%c3_42] : memref<54xf32, #tpu.memory_space<smem>>
    %157 = vector.broadcast %156 : f32 to vector<8x128xf32>
    %158 = arith.mulf %144, %157 : vector<8x128xf32>
    %159 = arith.addf %151, %158 : vector<8x128xf32>
    %c30_43 = arith.constant 30 : index
    %160 = memref.load %arg1[%c30_43] : memref<54xf32, #tpu.memory_space<smem>>
    %161 = vector.broadcast %160 : f32 to vector<8x128xf32>
    %162 = arith.mulf %144, %161 : vector<8x128xf32>
    %163 = arith.addf %155, %162 : vector<8x128xf32>
    %c7_i32_44 = arith.constant 7 : i32
    %164 = tpu.dynamic_rotate %144 by %c7_i32_44 dim 0 : vector<8x128xf32>, i32 -> vector<8x128xf32>
    %cst_45 = arith.constant 0.000000e+00 : f32
    %165 = vector.broadcast %cst_45 : f32 to vector<8x128xf32>
    %166 = arith.select %37, %164, %165 : vector<8x128xi1>, vector<8x128xf32>
    %c6_46 = arith.constant 6 : index
    %167 = memref.load %arg1[%c6_46] : memref<54xf32, #tpu.memory_space<smem>>
    %168 = vector.broadcast %167 : f32 to vector<8x128xf32>
    %169 = arith.mulf %166, %168 : vector<8x128xf32>
    %170 = arith.addf %159, %169 : vector<8x128xf32>
    %c33_47 = arith.constant 33 : index
    %171 = memref.load %arg1[%c33_47] : memref<54xf32, #tpu.memory_space<smem>>
    %172 = vector.broadcast %171 : f32 to vector<8x128xf32>
    %173 = arith.mulf %166, %172 : vector<8x128xf32>
    %174 = arith.addf %163, %173 : vector<8x128xf32>
    %c1_i32_48 = arith.constant 1 : i32
    %175 = tpu.dynamic_rotate %141 by %c1_i32_48 dim 0 : vector<8x128xf32>, i32 -> vector<8x128xf32>
    %cst_49 = arith.constant 0.000000e+00 : f32
    %176 = vector.broadcast %cst_49 : f32 to vector<8x128xf32>
    %177 = arith.select %28, %175, %176 : vector<8x128xi1>, vector<8x128xf32>
    %c1_50 = arith.constant 1 : index
    %178 = memref.load %arg1[%c1_50] : memref<54xf32, #tpu.memory_space<smem>>
    %179 = vector.broadcast %178 : f32 to vector<8x128xf32>
    %180 = arith.mulf %177, %179 : vector<8x128xf32>
    %181 = arith.addf %170, %180 : vector<8x128xf32>
    %c28_51 = arith.constant 28 : index
    %182 = memref.load %arg1[%c28_51] : memref<54xf32, #tpu.memory_space<smem>>
    %183 = vector.broadcast %182 : f32 to vector<8x128xf32>
    %184 = arith.mulf %177, %183 : vector<8x128xf32>
    %185 = arith.addf %174, %184 : vector<8x128xf32>
    %c4_52 = arith.constant 4 : index
    %186 = memref.load %arg1[%c4_52] : memref<54xf32, #tpu.memory_space<smem>>
    %187 = vector.broadcast %186 : f32 to vector<8x128xf32>
    %188 = arith.mulf %141, %187 : vector<8x128xf32>
    %189 = arith.addf %181, %188 : vector<8x128xf32>
    %c31_53 = arith.constant 31 : index
    %190 = memref.load %arg1[%c31_53] : memref<54xf32, #tpu.memory_space<smem>>
    %191 = vector.broadcast %190 : f32 to vector<8x128xf32>
    %192 = arith.mulf %141, %191 : vector<8x128xf32>
    %193 = arith.addf %185, %192 : vector<8x128xf32>
    %c7_i32_54 = arith.constant 7 : i32
    %194 = tpu.dynamic_rotate %141 by %c7_i32_54 dim 0 : vector<8x128xf32>, i32 -> vector<8x128xf32>
    %cst_55 = arith.constant 0.000000e+00 : f32
    %195 = vector.broadcast %cst_55 : f32 to vector<8x128xf32>
    %196 = arith.select %37, %194, %195 : vector<8x128xi1>, vector<8x128xf32>
    %c7_56 = arith.constant 7 : index
    %197 = memref.load %arg1[%c7_56] : memref<54xf32, #tpu.memory_space<smem>>
    %198 = vector.broadcast %197 : f32 to vector<8x128xf32>
    %199 = arith.mulf %196, %198 : vector<8x128xf32>
    %200 = arith.addf %189, %199 : vector<8x128xf32>
    %c34_57 = arith.constant 34 : index
    %201 = memref.load %arg1[%c34_57] : memref<54xf32, #tpu.memory_space<smem>>
    %202 = vector.broadcast %201 : f32 to vector<8x128xf32>
    %203 = arith.mulf %196, %202 : vector<8x128xf32>
    %204 = arith.addf %193, %203 : vector<8x128xf32>
    %c127_i32_58 = arith.constant 127 : i32
    %205 = tpu.dynamic_rotate %141 by %c127_i32_58 dim 1 : vector<8x128xf32>, i32 -> vector<8x128xf32>
    %cst_59 = arith.constant 0.000000e+00 : f32
    %206 = vector.broadcast %cst_59 : f32 to vector<8x128xf32>
    %207 = arith.select %19, %205, %206 : vector<8x128xi1>, vector<8x128xf32>
    %c1_i32_60 = arith.constant 1 : i32
    %208 = tpu.dynamic_rotate %207 by %c1_i32_60 dim 0 : vector<8x128xf32>, i32 -> vector<8x128xf32>
    %cst_61 = arith.constant 0.000000e+00 : f32
    %209 = vector.broadcast %cst_61 : f32 to vector<8x128xf32>
    %210 = arith.select %28, %208, %209 : vector<8x128xi1>, vector<8x128xf32>
    %c2_62 = arith.constant 2 : index
    %211 = memref.load %arg1[%c2_62] : memref<54xf32, #tpu.memory_space<smem>>
    %212 = vector.broadcast %211 : f32 to vector<8x128xf32>
    %213 = arith.mulf %210, %212 : vector<8x128xf32>
    %214 = arith.addf %200, %213 : vector<8x128xf32>
    %c29_63 = arith.constant 29 : index
    %215 = memref.load %arg1[%c29_63] : memref<54xf32, #tpu.memory_space<smem>>
    %216 = vector.broadcast %215 : f32 to vector<8x128xf32>
    %217 = arith.mulf %210, %216 : vector<8x128xf32>
    %218 = arith.addf %204, %217 : vector<8x128xf32>
    %c5_64 = arith.constant 5 : index
    %219 = memref.load %arg1[%c5_64] : memref<54xf32, #tpu.memory_space<smem>>
    %220 = vector.broadcast %219 : f32 to vector<8x128xf32>
    %221 = arith.mulf %207, %220 : vector<8x128xf32>
    %222 = arith.addf %214, %221 : vector<8x128xf32>
    %c32_65 = arith.constant 32 : index
    %223 = memref.load %arg1[%c32_65] : memref<54xf32, #tpu.memory_space<smem>>
    %224 = vector.broadcast %223 : f32 to vector<8x128xf32>
    %225 = arith.mulf %207, %224 : vector<8x128xf32>
    %226 = arith.addf %218, %225 : vector<8x128xf32>
    %c7_i32_66 = arith.constant 7 : i32
    %227 = tpu.dynamic_rotate %207 by %c7_i32_66 dim 0 : vector<8x128xf32>, i32 -> vector<8x128xf32>
    %cst_67 = arith.constant 0.000000e+00 : f32
    %228 = vector.broadcast %cst_67 : f32 to vector<8x128xf32>
    %229 = arith.select %37, %227, %228 : vector<8x128xi1>, vector<8x128xf32>
    %c8_68 = arith.constant 8 : index
    %230 = memref.load %arg1[%c8_68] : memref<54xf32, #tpu.memory_space<smem>>
    %231 = vector.broadcast %230 : f32 to vector<8x128xf32>
    %232 = arith.mulf %229, %231 : vector<8x128xf32>
    %233 = arith.addf %222, %232 : vector<8x128xf32>
    %c35_69 = arith.constant 35 : index
    %234 = memref.load %arg1[%c35_69] : memref<54xf32, #tpu.memory_space<smem>>
    %235 = vector.broadcast %234 : f32 to vector<8x128xf32>
    %236 = arith.mulf %229, %235 : vector<8x128xf32>
    %237 = arith.addf %226, %236 : vector<8x128xf32>
    %c0_70 = arith.constant 0 : index
    %c1_71 = arith.constant 1 : index
    %c0_72 = arith.constant 0 : index
    %c0_73 = arith.constant 0 : index
    %238 = vector.load %arg0[%c0_70, %c1_71, %c0_72, %c0_73] : memref<2x3x8x128xf32, #tpu.memory_space<vmem>>, vector<1x1x8x128xf32>
    %239 = vector.shape_cast %238 : vector<1x1x8x128xf32> to vector<8x128xf32>
    %c1_i32_74 = arith.constant 1 : i32
    %240 = tpu.dynamic_rotate %239 by %c1_i32_74 dim 1 : vector<8x128xf32>, i32 -> vector<8x128xf32>
    %cst_75 = arith.constant 0.000000e+00 : f32
    %241 = vector.broadcast %cst_75 : f32 to vector<8x128xf32>
    %242 = arith.select %10, %240, %241 : vector<8x128xi1>, vector<8x128xf32>
    %c1_i32_76 = arith.constant 1 : i32
    %243 = tpu.dynamic_rotate %242 by %c1_i32_76 dim 0 : vector<8x128xf32>, i32 -> vector<8x128xf32>
    %cst_77 = arith.constant 0.000000e+00 : f32
    %244 = vector.broadcast %cst_77 : f32 to vector<8x128xf32>
    %245 = arith.select %28, %243, %244 : vector<8x128xi1>, vector<8x128xf32>
    %c9 = arith.constant 9 : index
    %246 = memref.load %arg1[%c9] : memref<54xf32, #tpu.memory_space<smem>>
    %247 = vector.broadcast %246 : f32 to vector<8x128xf32>
    %248 = arith.mulf %245, %247 : vector<8x128xf32>
    %249 = arith.addf %135, %248 : vector<8x128xf32>
    %c36 = arith.constant 36 : index
    %250 = memref.load %arg1[%c36] : memref<54xf32, #tpu.memory_space<smem>>
    %251 = vector.broadcast %250 : f32 to vector<8x128xf32>
    %252 = arith.mulf %245, %251 : vector<8x128xf32>
    %253 = arith.addf %139, %252 : vector<8x128xf32>
    %c12 = arith.constant 12 : index
    %254 = memref.load %arg1[%c12] : memref<54xf32, #tpu.memory_space<smem>>
    %255 = vector.broadcast %254 : f32 to vector<8x128xf32>
    %256 = arith.mulf %242, %255 : vector<8x128xf32>
    %257 = arith.addf %249, %256 : vector<8x128xf32>
    %c39 = arith.constant 39 : index
    %258 = memref.load %arg1[%c39] : memref<54xf32, #tpu.memory_space<smem>>
    %259 = vector.broadcast %258 : f32 to vector<8x128xf32>
    %260 = arith.mulf %242, %259 : vector<8x128xf32>
    %261 = arith.addf %253, %260 : vector<8x128xf32>
    %c7_i32_78 = arith.constant 7 : i32
    %262 = tpu.dynamic_rotate %242 by %c7_i32_78 dim 0 : vector<8x128xf32>, i32 -> vector<8x128xf32>
    %cst_79 = arith.constant 0.000000e+00 : f32
    %263 = vector.broadcast %cst_79 : f32 to vector<8x128xf32>
    %264 = arith.select %37, %262, %263 : vector<8x128xi1>, vector<8x128xf32>
    %c15 = arith.constant 15 : index
    %265 = memref.load %arg1[%c15] : memref<54xf32, #tpu.memory_space<smem>>
    %266 = vector.broadcast %265 : f32 to vector<8x128xf32>
    %267 = arith.mulf %264, %266 : vector<8x128xf32>
    %268 = arith.addf %257, %267 : vector<8x128xf32>
    %c42 = arith.constant 42 : index
    %269 = memref.load %arg1[%c42] : memref<54xf32, #tpu.memory_space<smem>>
    %270 = vector.broadcast %269 : f32 to vector<8x128xf32>
    %271 = arith.mulf %264, %270 : vector<8x128xf32>
    %272 = arith.addf %261, %271 : vector<8x128xf32>
    %c1_i32_80 = arith.constant 1 : i32
    %273 = tpu.dynamic_rotate %239 by %c1_i32_80 dim 0 : vector<8x128xf32>, i32 -> vector<8x128xf32>
    %cst_81 = arith.constant 0.000000e+00 : f32
    %274 = vector.broadcast %cst_81 : f32 to vector<8x128xf32>
    %275 = arith.select %28, %273, %274 : vector<8x128xi1>, vector<8x128xf32>
    %c10 = arith.constant 10 : index
    %276 = memref.load %arg1[%c10] : memref<54xf32, #tpu.memory_space<smem>>
    %277 = vector.broadcast %276 : f32 to vector<8x128xf32>
    %278 = arith.mulf %275, %277 : vector<8x128xf32>
    %279 = arith.addf %268, %278 : vector<8x128xf32>
    %c37 = arith.constant 37 : index
    %280 = memref.load %arg1[%c37] : memref<54xf32, #tpu.memory_space<smem>>
    %281 = vector.broadcast %280 : f32 to vector<8x128xf32>
    %282 = arith.mulf %275, %281 : vector<8x128xf32>
    %283 = arith.addf %272, %282 : vector<8x128xf32>
    %c13 = arith.constant 13 : index
    %284 = memref.load %arg1[%c13] : memref<54xf32, #tpu.memory_space<smem>>
    %285 = vector.broadcast %284 : f32 to vector<8x128xf32>
    %286 = arith.mulf %239, %285 : vector<8x128xf32>
    %287 = arith.addf %279, %286 : vector<8x128xf32>
    %c40 = arith.constant 40 : index
    %288 = memref.load %arg1[%c40] : memref<54xf32, #tpu.memory_space<smem>>
    %289 = vector.broadcast %288 : f32 to vector<8x128xf32>
    %290 = arith.mulf %239, %289 : vector<8x128xf32>
    %291 = arith.addf %283, %290 : vector<8x128xf32>
    %c7_i32_82 = arith.constant 7 : i32
    %292 = tpu.dynamic_rotate %239 by %c7_i32_82 dim 0 : vector<8x128xf32>, i32 -> vector<8x128xf32>
    %cst_83 = arith.constant 0.000000e+00 : f32
    %293 = vector.broadcast %cst_83 : f32 to vector<8x128xf32>
    %294 = arith.select %37, %292, %293 : vector<8x128xi1>, vector<8x128xf32>
    %c16 = arith.constant 16 : index
    %295 = memref.load %arg1[%c16] : memref<54xf32, #tpu.memory_space<smem>>
    %296 = vector.broadcast %295 : f32 to vector<8x128xf32>
    %297 = arith.mulf %294, %296 : vector<8x128xf32>
    %298 = arith.addf %287, %297 : vector<8x128xf32>
    %c43 = arith.constant 43 : index
    %299 = memref.load %arg1[%c43] : memref<54xf32, #tpu.memory_space<smem>>
    %300 = vector.broadcast %299 : f32 to vector<8x128xf32>
    %301 = arith.mulf %294, %300 : vector<8x128xf32>
    %302 = arith.addf %291, %301 : vector<8x128xf32>
    %c127_i32_84 = arith.constant 127 : i32
    %303 = tpu.dynamic_rotate %239 by %c127_i32_84 dim 1 : vector<8x128xf32>, i32 -> vector<8x128xf32>
    %cst_85 = arith.constant 0.000000e+00 : f32
    %304 = vector.broadcast %cst_85 : f32 to vector<8x128xf32>
    %305 = arith.select %19, %303, %304 : vector<8x128xi1>, vector<8x128xf32>
    %c1_i32_86 = arith.constant 1 : i32
    %306 = tpu.dynamic_rotate %305 by %c1_i32_86 dim 0 : vector<8x128xf32>, i32 -> vector<8x128xf32>
    %cst_87 = arith.constant 0.000000e+00 : f32
    %307 = vector.broadcast %cst_87 : f32 to vector<8x128xf32>
    %308 = arith.select %28, %306, %307 : vector<8x128xi1>, vector<8x128xf32>
    %c11 = arith.constant 11 : index
    %309 = memref.load %arg1[%c11] : memref<54xf32, #tpu.memory_space<smem>>
    %310 = vector.broadcast %309 : f32 to vector<8x128xf32>
    %311 = arith.mulf %308, %310 : vector<8x128xf32>
    %312 = arith.addf %298, %311 : vector<8x128xf32>
    %c38 = arith.constant 38 : index
    %313 = memref.load %arg1[%c38] : memref<54xf32, #tpu.memory_space<smem>>
    %314 = vector.broadcast %313 : f32 to vector<8x128xf32>
    %315 = arith.mulf %308, %314 : vector<8x128xf32>
    %316 = arith.addf %302, %315 : vector<8x128xf32>
    %c14 = arith.constant 14 : index
    %317 = memref.load %arg1[%c14] : memref<54xf32, #tpu.memory_space<smem>>
    %318 = vector.broadcast %317 : f32 to vector<8x128xf32>
    %319 = arith.mulf %305, %318 : vector<8x128xf32>
    %320 = arith.addf %312, %319 : vector<8x128xf32>
    %c41 = arith.constant 41 : index
    %321 = memref.load %arg1[%c41] : memref<54xf32, #tpu.memory_space<smem>>
    %322 = vector.broadcast %321 : f32 to vector<8x128xf32>
    %323 = arith.mulf %305, %322 : vector<8x128xf32>
    %324 = arith.addf %316, %323 : vector<8x128xf32>
    %c7_i32_88 = arith.constant 7 : i32
    %325 = tpu.dynamic_rotate %305 by %c7_i32_88 dim 0 : vector<8x128xf32>, i32 -> vector<8x128xf32>
    %cst_89 = arith.constant 0.000000e+00 : f32
    %326 = vector.broadcast %cst_89 : f32 to vector<8x128xf32>
    %327 = arith.select %37, %325, %326 : vector<8x128xi1>, vector<8x128xf32>
    %c17 = arith.constant 17 : index
    %328 = memref.load %arg1[%c17] : memref<54xf32, #tpu.memory_space<smem>>
    %329 = vector.broadcast %328 : f32 to vector<8x128xf32>
    %330 = arith.mulf %327, %329 : vector<8x128xf32>
    %331 = arith.addf %320, %330 : vector<8x128xf32>
    %c44 = arith.constant 44 : index
    %332 = memref.load %arg1[%c44] : memref<54xf32, #tpu.memory_space<smem>>
    %333 = vector.broadcast %332 : f32 to vector<8x128xf32>
    %334 = arith.mulf %327, %333 : vector<8x128xf32>
    %335 = arith.addf %324, %334 : vector<8x128xf32>
    %c1_90 = arith.constant 1 : index
    %c1_91 = arith.constant 1 : index
    %c0_92 = arith.constant 0 : index
    %c0_93 = arith.constant 0 : index
    %336 = vector.load %arg0[%c1_90, %c1_91, %c0_92, %c0_93] : memref<2x3x8x128xf32, #tpu.memory_space<vmem>>, vector<1x1x8x128xf32>
    %337 = vector.shape_cast %336 : vector<1x1x8x128xf32> to vector<8x128xf32>
    %c1_i32_94 = arith.constant 1 : i32
    %338 = tpu.dynamic_rotate %337 by %c1_i32_94 dim 1 : vector<8x128xf32>, i32 -> vector<8x128xf32>
    %cst_95 = arith.constant 0.000000e+00 : f32
    %339 = vector.broadcast %cst_95 : f32 to vector<8x128xf32>
    %340 = arith.select %10, %338, %339 : vector<8x128xi1>, vector<8x128xf32>
    %c1_i32_96 = arith.constant 1 : i32
    %341 = tpu.dynamic_rotate %340 by %c1_i32_96 dim 0 : vector<8x128xf32>, i32 -> vector<8x128xf32>
    %cst_97 = arith.constant 0.000000e+00 : f32
    %342 = vector.broadcast %cst_97 : f32 to vector<8x128xf32>
    %343 = arith.select %28, %341, %342 : vector<8x128xi1>, vector<8x128xf32>
    %c9_98 = arith.constant 9 : index
    %344 = memref.load %arg1[%c9_98] : memref<54xf32, #tpu.memory_space<smem>>
    %345 = vector.broadcast %344 : f32 to vector<8x128xf32>
    %346 = arith.mulf %343, %345 : vector<8x128xf32>
    %347 = arith.addf %233, %346 : vector<8x128xf32>
    %c36_99 = arith.constant 36 : index
    %348 = memref.load %arg1[%c36_99] : memref<54xf32, #tpu.memory_space<smem>>
    %349 = vector.broadcast %348 : f32 to vector<8x128xf32>
    %350 = arith.mulf %343, %349 : vector<8x128xf32>
    %351 = arith.addf %237, %350 : vector<8x128xf32>
    %c12_100 = arith.constant 12 : index
    %352 = memref.load %arg1[%c12_100] : memref<54xf32, #tpu.memory_space<smem>>
    %353 = vector.broadcast %352 : f32 to vector<8x128xf32>
    %354 = arith.mulf %340, %353 : vector<8x128xf32>
    %355 = arith.addf %347, %354 : vector<8x128xf32>
    %c39_101 = arith.constant 39 : index
    %356 = memref.load %arg1[%c39_101] : memref<54xf32, #tpu.memory_space<smem>>
    %357 = vector.broadcast %356 : f32 to vector<8x128xf32>
    %358 = arith.mulf %340, %357 : vector<8x128xf32>
    %359 = arith.addf %351, %358 : vector<8x128xf32>
    %c7_i32_102 = arith.constant 7 : i32
    %360 = tpu.dynamic_rotate %340 by %c7_i32_102 dim 0 : vector<8x128xf32>, i32 -> vector<8x128xf32>
    %cst_103 = arith.constant 0.000000e+00 : f32
    %361 = vector.broadcast %cst_103 : f32 to vector<8x128xf32>
    %362 = arith.select %37, %360, %361 : vector<8x128xi1>, vector<8x128xf32>
    %c15_104 = arith.constant 15 : index
    %363 = memref.load %arg1[%c15_104] : memref<54xf32, #tpu.memory_space<smem>>
    %364 = vector.broadcast %363 : f32 to vector<8x128xf32>
    %365 = arith.mulf %362, %364 : vector<8x128xf32>
    %366 = arith.addf %355, %365 : vector<8x128xf32>
    %c42_105 = arith.constant 42 : index
    %367 = memref.load %arg1[%c42_105] : memref<54xf32, #tpu.memory_space<smem>>
    %368 = vector.broadcast %367 : f32 to vector<8x128xf32>
    %369 = arith.mulf %362, %368 : vector<8x128xf32>
    %370 = arith.addf %359, %369 : vector<8x128xf32>
    %c1_i32_106 = arith.constant 1 : i32
    %371 = tpu.dynamic_rotate %337 by %c1_i32_106 dim 0 : vector<8x128xf32>, i32 -> vector<8x128xf32>
    %cst_107 = arith.constant 0.000000e+00 : f32
    %372 = vector.broadcast %cst_107 : f32 to vector<8x128xf32>
    %373 = arith.select %28, %371, %372 : vector<8x128xi1>, vector<8x128xf32>
    %c10_108 = arith.constant 10 : index
    %374 = memref.load %arg1[%c10_108] : memref<54xf32, #tpu.memory_space<smem>>
    %375 = vector.broadcast %374 : f32 to vector<8x128xf32>
    %376 = arith.mulf %373, %375 : vector<8x128xf32>
    %377 = arith.addf %366, %376 : vector<8x128xf32>
    %c37_109 = arith.constant 37 : index
    %378 = memref.load %arg1[%c37_109] : memref<54xf32, #tpu.memory_space<smem>>
    %379 = vector.broadcast %378 : f32 to vector<8x128xf32>
    %380 = arith.mulf %373, %379 : vector<8x128xf32>
    %381 = arith.addf %370, %380 : vector<8x128xf32>
    %c13_110 = arith.constant 13 : index
    %382 = memref.load %arg1[%c13_110] : memref<54xf32, #tpu.memory_space<smem>>
    %383 = vector.broadcast %382 : f32 to vector<8x128xf32>
    %384 = arith.mulf %337, %383 : vector<8x128xf32>
    %385 = arith.addf %377, %384 : vector<8x128xf32>
    %c40_111 = arith.constant 40 : index
    %386 = memref.load %arg1[%c40_111] : memref<54xf32, #tpu.memory_space<smem>>
    %387 = vector.broadcast %386 : f32 to vector<8x128xf32>
    %388 = arith.mulf %337, %387 : vector<8x128xf32>
    %389 = arith.addf %381, %388 : vector<8x128xf32>
    %c7_i32_112 = arith.constant 7 : i32
    %390 = tpu.dynamic_rotate %337 by %c7_i32_112 dim 0 : vector<8x128xf32>, i32 -> vector<8x128xf32>
    %cst_113 = arith.constant 0.000000e+00 : f32
    %391 = vector.broadcast %cst_113 : f32 to vector<8x128xf32>
    %392 = arith.select %37, %390, %391 : vector<8x128xi1>, vector<8x128xf32>
    %c16_114 = arith.constant 16 : index
    %393 = memref.load %arg1[%c16_114] : memref<54xf32, #tpu.memory_space<smem>>
    %394 = vector.broadcast %393 : f32 to vector<8x128xf32>
    %395 = arith.mulf %392, %394 : vector<8x128xf32>
    %396 = arith.addf %385, %395 : vector<8x128xf32>
    %c43_115 = arith.constant 43 : index
    %397 = memref.load %arg1[%c43_115] : memref<54xf32, #tpu.memory_space<smem>>
    %398 = vector.broadcast %397 : f32 to vector<8x128xf32>
    %399 = arith.mulf %392, %398 : vector<8x128xf32>
    %400 = arith.addf %389, %399 : vector<8x128xf32>
    %c127_i32_116 = arith.constant 127 : i32
    %401 = tpu.dynamic_rotate %337 by %c127_i32_116 dim 1 : vector<8x128xf32>, i32 -> vector<8x128xf32>
    %cst_117 = arith.constant 0.000000e+00 : f32
    %402 = vector.broadcast %cst_117 : f32 to vector<8x128xf32>
    %403 = arith.select %19, %401, %402 : vector<8x128xi1>, vector<8x128xf32>
    %c1_i32_118 = arith.constant 1 : i32
    %404 = tpu.dynamic_rotate %403 by %c1_i32_118 dim 0 : vector<8x128xf32>, i32 -> vector<8x128xf32>
    %cst_119 = arith.constant 0.000000e+00 : f32
    %405 = vector.broadcast %cst_119 : f32 to vector<8x128xf32>
    %406 = arith.select %28, %404, %405 : vector<8x128xi1>, vector<8x128xf32>
    %c11_120 = arith.constant 11 : index
    %407 = memref.load %arg1[%c11_120] : memref<54xf32, #tpu.memory_space<smem>>
    %408 = vector.broadcast %407 : f32 to vector<8x128xf32>
    %409 = arith.mulf %406, %408 : vector<8x128xf32>
    %410 = arith.addf %396, %409 : vector<8x128xf32>
    %c38_121 = arith.constant 38 : index
    %411 = memref.load %arg1[%c38_121] : memref<54xf32, #tpu.memory_space<smem>>
    %412 = vector.broadcast %411 : f32 to vector<8x128xf32>
    %413 = arith.mulf %406, %412 : vector<8x128xf32>
    %414 = arith.addf %400, %413 : vector<8x128xf32>
    %c14_122 = arith.constant 14 : index
    %415 = memref.load %arg1[%c14_122] : memref<54xf32, #tpu.memory_space<smem>>
    %416 = vector.broadcast %415 : f32 to vector<8x128xf32>
    %417 = arith.mulf %403, %416 : vector<8x128xf32>
    %418 = arith.addf %410, %417 : vector<8x128xf32>
    %c41_123 = arith.constant 41 : index
    %419 = memref.load %arg1[%c41_123] : memref<54xf32, #tpu.memory_space<smem>>
    %420 = vector.broadcast %419 : f32 to vector<8x128xf32>
    %421 = arith.mulf %403, %420 : vector<8x128xf32>
    %422 = arith.addf %414, %421 : vector<8x128xf32>
    %c7_i32_124 = arith.constant 7 : i32
    %423 = tpu.dynamic_rotate %403 by %c7_i32_124 dim 0 : vector<8x128xf32>, i32 -> vector<8x128xf32>
    %cst_125 = arith.constant 0.000000e+00 : f32
    %424 = vector.broadcast %cst_125 : f32 to vector<8x128xf32>
    %425 = arith.select %37, %423, %424 : vector<8x128xi1>, vector<8x128xf32>
    %c17_126 = arith.constant 17 : index
    %426 = memref.load %arg1[%c17_126] : memref<54xf32, #tpu.memory_space<smem>>
    %427 = vector.broadcast %426 : f32 to vector<8x128xf32>
    %428 = arith.mulf %425, %427 : vector<8x128xf32>
    %429 = arith.addf %418, %428 : vector<8x128xf32>
    %c44_127 = arith.constant 44 : index
    %430 = memref.load %arg1[%c44_127] : memref<54xf32, #tpu.memory_space<smem>>
    %431 = vector.broadcast %430 : f32 to vector<8x128xf32>
    %432 = arith.mulf %425, %431 : vector<8x128xf32>
    %433 = arith.addf %422, %432 : vector<8x128xf32>
    %c0_128 = arith.constant 0 : index
    %c2_129 = arith.constant 2 : index
    %c0_130 = arith.constant 0 : index
    %c0_131 = arith.constant 0 : index
    %434 = vector.load %arg0[%c0_128, %c2_129, %c0_130, %c0_131] : memref<2x3x8x128xf32, #tpu.memory_space<vmem>>, vector<1x1x8x128xf32>
    %435 = vector.shape_cast %434 : vector<1x1x8x128xf32> to vector<8x128xf32>
    %c1_i32_132 = arith.constant 1 : i32
    %436 = tpu.dynamic_rotate %435 by %c1_i32_132 dim 1 : vector<8x128xf32>, i32 -> vector<8x128xf32>
    %cst_133 = arith.constant 0.000000e+00 : f32
    %437 = vector.broadcast %cst_133 : f32 to vector<8x128xf32>
    %438 = arith.select %10, %436, %437 : vector<8x128xi1>, vector<8x128xf32>
    %c1_i32_134 = arith.constant 1 : i32
    %439 = tpu.dynamic_rotate %438 by %c1_i32_134 dim 0 : vector<8x128xf32>, i32 -> vector<8x128xf32>
    %cst_135 = arith.constant 0.000000e+00 : f32
    %440 = vector.broadcast %cst_135 : f32 to vector<8x128xf32>
    %441 = arith.select %28, %439, %440 : vector<8x128xi1>, vector<8x128xf32>
    %c18 = arith.constant 18 : index
    %442 = memref.load %arg1[%c18] : memref<54xf32, #tpu.memory_space<smem>>
    %443 = vector.broadcast %442 : f32 to vector<8x128xf32>
    %444 = arith.mulf %441, %443 : vector<8x128xf32>
    %445 = arith.addf %331, %444 : vector<8x128xf32>
    %c45 = arith.constant 45 : index
    %446 = memref.load %arg1[%c45] : memref<54xf32, #tpu.memory_space<smem>>
    %447 = vector.broadcast %446 : f32 to vector<8x128xf32>
    %448 = arith.mulf %441, %447 : vector<8x128xf32>
    %449 = arith.addf %335, %448 : vector<8x128xf32>
    %c21 = arith.constant 21 : index
    %450 = memref.load %arg1[%c21] : memref<54xf32, #tpu.memory_space<smem>>
    %451 = vector.broadcast %450 : f32 to vector<8x128xf32>
    %452 = arith.mulf %438, %451 : vector<8x128xf32>
    %453 = arith.addf %445, %452 : vector<8x128xf32>
    %c48 = arith.constant 48 : index
    %454 = memref.load %arg1[%c48] : memref<54xf32, #tpu.memory_space<smem>>
    %455 = vector.broadcast %454 : f32 to vector<8x128xf32>
    %456 = arith.mulf %438, %455 : vector<8x128xf32>
    %457 = arith.addf %449, %456 : vector<8x128xf32>
    %c7_i32_136 = arith.constant 7 : i32
    %458 = tpu.dynamic_rotate %438 by %c7_i32_136 dim 0 : vector<8x128xf32>, i32 -> vector<8x128xf32>
    %cst_137 = arith.constant 0.000000e+00 : f32
    %459 = vector.broadcast %cst_137 : f32 to vector<8x128xf32>
    %460 = arith.select %37, %458, %459 : vector<8x128xi1>, vector<8x128xf32>
    %c24 = arith.constant 24 : index
    %461 = memref.load %arg1[%c24] : memref<54xf32, #tpu.memory_space<smem>>
    %462 = vector.broadcast %461 : f32 to vector<8x128xf32>
    %463 = arith.mulf %460, %462 : vector<8x128xf32>
    %464 = arith.addf %453, %463 : vector<8x128xf32>
    %c51 = arith.constant 51 : index
    %465 = memref.load %arg1[%c51] : memref<54xf32, #tpu.memory_space<smem>>
    %466 = vector.broadcast %465 : f32 to vector<8x128xf32>
    %467 = arith.mulf %460, %466 : vector<8x128xf32>
    %468 = arith.addf %457, %467 : vector<8x128xf32>
    %c1_i32_138 = arith.constant 1 : i32
    %469 = tpu.dynamic_rotate %435 by %c1_i32_138 dim 0 : vector<8x128xf32>, i32 -> vector<8x128xf32>
    %cst_139 = arith.constant 0.000000e+00 : f32
    %470 = vector.broadcast %cst_139 : f32 to vector<8x128xf32>
    %471 = arith.select %28, %469, %470 : vector<8x128xi1>, vector<8x128xf32>
    %c19 = arith.constant 19 : index
    %472 = memref.load %arg1[%c19] : memref<54xf32, #tpu.memory_space<smem>>
    %473 = vector.broadcast %472 : f32 to vector<8x128xf32>
    %474 = arith.mulf %471, %473 : vector<8x128xf32>
    %475 = arith.addf %464, %474 : vector<8x128xf32>
    %c46 = arith.constant 46 : index
    %476 = memref.load %arg1[%c46] : memref<54xf32, #tpu.memory_space<smem>>
    %477 = vector.broadcast %476 : f32 to vector<8x128xf32>
    %478 = arith.mulf %471, %477 : vector<8x128xf32>
    %479 = arith.addf %468, %478 : vector<8x128xf32>
    %c22 = arith.constant 22 : index
    %480 = memref.load %arg1[%c22] : memref<54xf32, #tpu.memory_space<smem>>
    %481 = vector.broadcast %480 : f32 to vector<8x128xf32>
    %482 = arith.mulf %435, %481 : vector<8x128xf32>
    %483 = arith.addf %475, %482 : vector<8x128xf32>
    %c49 = arith.constant 49 : index
    %484 = memref.load %arg1[%c49] : memref<54xf32, #tpu.memory_space<smem>>
    %485 = vector.broadcast %484 : f32 to vector<8x128xf32>
    %486 = arith.mulf %435, %485 : vector<8x128xf32>
    %487 = arith.addf %479, %486 : vector<8x128xf32>
    %c7_i32_140 = arith.constant 7 : i32
    %488 = tpu.dynamic_rotate %435 by %c7_i32_140 dim 0 : vector<8x128xf32>, i32 -> vector<8x128xf32>
    %cst_141 = arith.constant 0.000000e+00 : f32
    %489 = vector.broadcast %cst_141 : f32 to vector<8x128xf32>
    %490 = arith.select %37, %488, %489 : vector<8x128xi1>, vector<8x128xf32>
    %c25 = arith.constant 25 : index
    %491 = memref.load %arg1[%c25] : memref<54xf32, #tpu.memory_space<smem>>
    %492 = vector.broadcast %491 : f32 to vector<8x128xf32>
    %493 = arith.mulf %490, %492 : vector<8x128xf32>
    %494 = arith.addf %483, %493 : vector<8x128xf32>
    %c52 = arith.constant 52 : index
    %495 = memref.load %arg1[%c52] : memref<54xf32, #tpu.memory_space<smem>>
    %496 = vector.broadcast %495 : f32 to vector<8x128xf32>
    %497 = arith.mulf %490, %496 : vector<8x128xf32>
    %498 = arith.addf %487, %497 : vector<8x128xf32>
    %c127_i32_142 = arith.constant 127 : i32
    %499 = tpu.dynamic_rotate %435 by %c127_i32_142 dim 1 : vector<8x128xf32>, i32 -> vector<8x128xf32>
    %cst_143 = arith.constant 0.000000e+00 : f32
    %500 = vector.broadcast %cst_143 : f32 to vector<8x128xf32>
    %501 = arith.select %19, %499, %500 : vector<8x128xi1>, vector<8x128xf32>
    %c1_i32_144 = arith.constant 1 : i32
    %502 = tpu.dynamic_rotate %501 by %c1_i32_144 dim 0 : vector<8x128xf32>, i32 -> vector<8x128xf32>
    %cst_145 = arith.constant 0.000000e+00 : f32
    %503 = vector.broadcast %cst_145 : f32 to vector<8x128xf32>
    %504 = arith.select %28, %502, %503 : vector<8x128xi1>, vector<8x128xf32>
    %c20 = arith.constant 20 : index
    %505 = memref.load %arg1[%c20] : memref<54xf32, #tpu.memory_space<smem>>
    %506 = vector.broadcast %505 : f32 to vector<8x128xf32>
    %507 = arith.mulf %504, %506 : vector<8x128xf32>
    %508 = arith.addf %494, %507 : vector<8x128xf32>
    %c47 = arith.constant 47 : index
    %509 = memref.load %arg1[%c47] : memref<54xf32, #tpu.memory_space<smem>>
    %510 = vector.broadcast %509 : f32 to vector<8x128xf32>
    %511 = arith.mulf %504, %510 : vector<8x128xf32>
    %512 = arith.addf %498, %511 : vector<8x128xf32>
    %c23 = arith.constant 23 : index
    %513 = memref.load %arg1[%c23] : memref<54xf32, #tpu.memory_space<smem>>
    %514 = vector.broadcast %513 : f32 to vector<8x128xf32>
    %515 = arith.mulf %501, %514 : vector<8x128xf32>
    %516 = arith.addf %508, %515 : vector<8x128xf32>
    %c50 = arith.constant 50 : index
    %517 = memref.load %arg1[%c50] : memref<54xf32, #tpu.memory_space<smem>>
    %518 = vector.broadcast %517 : f32 to vector<8x128xf32>
    %519 = arith.mulf %501, %518 : vector<8x128xf32>
    %520 = arith.addf %512, %519 : vector<8x128xf32>
    %c7_i32_146 = arith.constant 7 : i32
    %521 = tpu.dynamic_rotate %501 by %c7_i32_146 dim 0 : vector<8x128xf32>, i32 -> vector<8x128xf32>
    %cst_147 = arith.constant 0.000000e+00 : f32
    %522 = vector.broadcast %cst_147 : f32 to vector<8x128xf32>
    %523 = arith.select %37, %521, %522 : vector<8x128xi1>, vector<8x128xf32>
    %c26 = arith.constant 26 : index
    %524 = memref.load %arg1[%c26] : memref<54xf32, #tpu.memory_space<smem>>
    %525 = vector.broadcast %524 : f32 to vector<8x128xf32>
    %526 = arith.mulf %523, %525 : vector<8x128xf32>
    %527 = arith.addf %516, %526 : vector<8x128xf32>
    %c53 = arith.constant 53 : index
    %528 = memref.load %arg1[%c53] : memref<54xf32, #tpu.memory_space<smem>>
    %529 = vector.broadcast %528 : f32 to vector<8x128xf32>
    %530 = arith.mulf %523, %529 : vector<8x128xf32>
    %531 = arith.addf %520, %530 : vector<8x128xf32>
    %c1_148 = arith.constant 1 : index
    %c2_149 = arith.constant 2 : index
    %c0_150 = arith.constant 0 : index
    %c0_151 = arith.constant 0 : index
    %532 = vector.load %arg0[%c1_148, %c2_149, %c0_150, %c0_151] : memref<2x3x8x128xf32, #tpu.memory_space<vmem>>, vector<1x1x8x128xf32>
    %533 = vector.shape_cast %532 : vector<1x1x8x128xf32> to vector<8x128xf32>
    %c1_i32_152 = arith.constant 1 : i32
    %534 = tpu.dynamic_rotate %533 by %c1_i32_152 dim 1 : vector<8x128xf32>, i32 -> vector<8x128xf32>
    %cst_153 = arith.constant 0.000000e+00 : f32
    %535 = vector.broadcast %cst_153 : f32 to vector<8x128xf32>
    %536 = arith.select %10, %534, %535 : vector<8x128xi1>, vector<8x128xf32>
    %c1_i32_154 = arith.constant 1 : i32
    %537 = tpu.dynamic_rotate %536 by %c1_i32_154 dim 0 : vector<8x128xf32>, i32 -> vector<8x128xf32>
    %cst_155 = arith.constant 0.000000e+00 : f32
    %538 = vector.broadcast %cst_155 : f32 to vector<8x128xf32>
    %539 = arith.select %28, %537, %538 : vector<8x128xi1>, vector<8x128xf32>
    %c18_156 = arith.constant 18 : index
    %540 = memref.load %arg1[%c18_156] : memref<54xf32, #tpu.memory_space<smem>>
    %541 = vector.broadcast %540 : f32 to vector<8x128xf32>
    %542 = arith.mulf %539, %541 : vector<8x128xf32>
    %543 = arith.addf %429, %542 : vector<8x128xf32>
    %c45_157 = arith.constant 45 : index
    %544 = memref.load %arg1[%c45_157] : memref<54xf32, #tpu.memory_space<smem>>
    %545 = vector.broadcast %544 : f32 to vector<8x128xf32>
    %546 = arith.mulf %539, %545 : vector<8x128xf32>
    %547 = arith.addf %433, %546 : vector<8x128xf32>
    %c21_158 = arith.constant 21 : index
    %548 = memref.load %arg1[%c21_158] : memref<54xf32, #tpu.memory_space<smem>>
    %549 = vector.broadcast %548 : f32 to vector<8x128xf32>
    %550 = arith.mulf %536, %549 : vector<8x128xf32>
    %551 = arith.addf %543, %550 : vector<8x128xf32>
    %c48_159 = arith.constant 48 : index
    %552 = memref.load %arg1[%c48_159] : memref<54xf32, #tpu.memory_space<smem>>
    %553 = vector.broadcast %552 : f32 to vector<8x128xf32>
    %554 = arith.mulf %536, %553 : vector<8x128xf32>
    %555 = arith.addf %547, %554 : vector<8x128xf32>
    %c7_i32_160 = arith.constant 7 : i32
    %556 = tpu.dynamic_rotate %536 by %c7_i32_160 dim 0 : vector<8x128xf32>, i32 -> vector<8x128xf32>
    %cst_161 = arith.constant 0.000000e+00 : f32
    %557 = vector.broadcast %cst_161 : f32 to vector<8x128xf32>
    %558 = arith.select %37, %556, %557 : vector<8x128xi1>, vector<8x128xf32>
    %c24_162 = arith.constant 24 : index
    %559 = memref.load %arg1[%c24_162] : memref<54xf32, #tpu.memory_space<smem>>
    %560 = vector.broadcast %559 : f32 to vector<8x128xf32>
    %561 = arith.mulf %558, %560 : vector<8x128xf32>
    %562 = arith.addf %551, %561 : vector<8x128xf32>
    %c51_163 = arith.constant 51 : index
    %563 = memref.load %arg1[%c51_163] : memref<54xf32, #tpu.memory_space<smem>>
    %564 = vector.broadcast %563 : f32 to vector<8x128xf32>
    %565 = arith.mulf %558, %564 : vector<8x128xf32>
    %566 = arith.addf %555, %565 : vector<8x128xf32>
    %c1_i32_164 = arith.constant 1 : i32
    %567 = tpu.dynamic_rotate %533 by %c1_i32_164 dim 0 : vector<8x128xf32>, i32 -> vector<8x128xf32>
    %cst_165 = arith.constant 0.000000e+00 : f32
    %568 = vector.broadcast %cst_165 : f32 to vector<8x128xf32>
    %569 = arith.select %28, %567, %568 : vector<8x128xi1>, vector<8x128xf32>
    %c19_166 = arith.constant 19 : index
    %570 = memref.load %arg1[%c19_166] : memref<54xf32, #tpu.memory_space<smem>>
    %571 = vector.broadcast %570 : f32 to vector<8x128xf32>
    %572 = arith.mulf %569, %571 : vector<8x128xf32>
    %573 = arith.addf %562, %572 : vector<8x128xf32>
    %c46_167 = arith.constant 46 : index
    %574 = memref.load %arg1[%c46_167] : memref<54xf32, #tpu.memory_space<smem>>
    %575 = vector.broadcast %574 : f32 to vector<8x128xf32>
    %576 = arith.mulf %569, %575 : vector<8x128xf32>
    %577 = arith.addf %566, %576 : vector<8x128xf32>
    %c22_168 = arith.constant 22 : index
    %578 = memref.load %arg1[%c22_168] : memref<54xf32, #tpu.memory_space<smem>>
    %579 = vector.broadcast %578 : f32 to vector<8x128xf32>
    %580 = arith.mulf %533, %579 : vector<8x128xf32>
    %581 = arith.addf %573, %580 : vector<8x128xf32>
    %c49_169 = arith.constant 49 : index
    %582 = memref.load %arg1[%c49_169] : memref<54xf32, #tpu.memory_space<smem>>
    %583 = vector.broadcast %582 : f32 to vector<8x128xf32>
    %584 = arith.mulf %533, %583 : vector<8x128xf32>
    %585 = arith.addf %577, %584 : vector<8x128xf32>
    %c7_i32_170 = arith.constant 7 : i32
    %586 = tpu.dynamic_rotate %533 by %c7_i32_170 dim 0 : vector<8x128xf32>, i32 -> vector<8x128xf32>
    %cst_171 = arith.constant 0.000000e+00 : f32
    %587 = vector.broadcast %cst_171 : f32 to vector<8x128xf32>
    %588 = arith.select %37, %586, %587 : vector<8x128xi1>, vector<8x128xf32>
    %c25_172 = arith.constant 25 : index
    %589 = memref.load %arg1[%c25_172] : memref<54xf32, #tpu.memory_space<smem>>
    %590 = vector.broadcast %589 : f32 to vector<8x128xf32>
    %591 = arith.mulf %588, %590 : vector<8x128xf32>
    %592 = arith.addf %581, %591 : vector<8x128xf32>
    %c52_173 = arith.constant 52 : index
    %593 = memref.load %arg1[%c52_173] : memref<54xf32, #tpu.memory_space<smem>>
    %594 = vector.broadcast %593 : f32 to vector<8x128xf32>
    %595 = arith.mulf %588, %594 : vector<8x128xf32>
    %596 = arith.addf %585, %595 : vector<8x128xf32>
    %c127_i32_174 = arith.constant 127 : i32
    %597 = tpu.dynamic_rotate %533 by %c127_i32_174 dim 1 : vector<8x128xf32>, i32 -> vector<8x128xf32>
    %cst_175 = arith.constant 0.000000e+00 : f32
    %598 = vector.broadcast %cst_175 : f32 to vector<8x128xf32>
    %599 = arith.select %19, %597, %598 : vector<8x128xi1>, vector<8x128xf32>
    %c1_i32_176 = arith.constant 1 : i32
    %600 = tpu.dynamic_rotate %599 by %c1_i32_176 dim 0 : vector<8x128xf32>, i32 -> vector<8x128xf32>
    %cst_177 = arith.constant 0.000000e+00 : f32
    %601 = vector.broadcast %cst_177 : f32 to vector<8x128xf32>
    %602 = arith.select %28, %600, %601 : vector<8x128xi1>, vector<8x128xf32>
    %c20_178 = arith.constant 20 : index
    %603 = memref.load %arg1[%c20_178] : memref<54xf32, #tpu.memory_space<smem>>
    %604 = vector.broadcast %603 : f32 to vector<8x128xf32>
    %605 = arith.mulf %602, %604 : vector<8x128xf32>
    %606 = arith.addf %592, %605 : vector<8x128xf32>
    %c47_179 = arith.constant 47 : index
    %607 = memref.load %arg1[%c47_179] : memref<54xf32, #tpu.memory_space<smem>>
    %608 = vector.broadcast %607 : f32 to vector<8x128xf32>
    %609 = arith.mulf %602, %608 : vector<8x128xf32>
    %610 = arith.addf %596, %609 : vector<8x128xf32>
    %c23_180 = arith.constant 23 : index
    %611 = memref.load %arg1[%c23_180] : memref<54xf32, #tpu.memory_space<smem>>
    %612 = vector.broadcast %611 : f32 to vector<8x128xf32>
    %613 = arith.mulf %599, %612 : vector<8x128xf32>
    %614 = arith.addf %606, %613 : vector<8x128xf32>
    %c50_181 = arith.constant 50 : index
    %615 = memref.load %arg1[%c50_181] : memref<54xf32, #tpu.memory_space<smem>>
    %616 = vector.broadcast %615 : f32 to vector<8x128xf32>
    %617 = arith.mulf %599, %616 : vector<8x128xf32>
    %618 = arith.addf %610, %617 : vector<8x128xf32>
    %c7_i32_182 = arith.constant 7 : i32
    %619 = tpu.dynamic_rotate %599 by %c7_i32_182 dim 0 : vector<8x128xf32>, i32 -> vector<8x128xf32>
    %cst_183 = arith.constant 0.000000e+00 : f32
    %620 = vector.broadcast %cst_183 : f32 to vector<8x128xf32>
    %621 = arith.select %37, %619, %620 : vector<8x128xi1>, vector<8x128xf32>
    %c26_184 = arith.constant 26 : index
    %622 = memref.load %arg1[%c26_184] : memref<54xf32, #tpu.memory_space<smem>>
    %623 = vector.broadcast %622 : f32 to vector<8x128xf32>
    %624 = arith.mulf %621, %623 : vector<8x128xf32>
    %625 = arith.addf %614, %624 : vector<8x128xf32>
    %c53_185 = arith.constant 53 : index
    %626 = memref.load %arg1[%c53_185] : memref<54xf32, #tpu.memory_space<smem>>
    %627 = vector.broadcast %626 : f32 to vector<8x128xf32>
    %628 = arith.mulf %621, %627 : vector<8x128xf32>
    %629 = arith.addf %618, %628 : vector<8x128xf32>
    %630 = vector.shape_cast %527 : vector<8x128xf32> to vector<1x8x128xf32>
    %cst_186 = arith.constant dense<0.000000e+00> : vector<1xf32>
    %631 = vector.multi_reduction <add>, %630, %cst_186 [1, 2] : vector<1x8x128xf32> to vector<1xf32>
    %632 = vector.shape_cast %631 : vector<1xf32> to vector<1x1x1xf32>
    %633 = vector.extract %632[0, 0, 0] : f32 from vector<1x1x1xf32>
    %cst_187 = arith.constant 0.000000e+00 : f32
    %634 = arith.addf %cst_187, %633 : f32
    %635 = arith.mulf %527, %527 : vector<8x128xf32>
    %636 = vector.shape_cast %635 : vector<8x128xf32> to vector<1x8x128xf32>
    %cst_188 = arith.constant dense<0.000000e+00> : vector<1xf32>
    %637 = vector.multi_reduction <add>, %636, %cst_188 [1, 2] : vector<1x8x128xf32> to vector<1xf32>
    %638 = vector.shape_cast %637 : vector<1xf32> to vector<1x1x1xf32>
    %639 = vector.extract %638[0, 0, 0] : f32 from vector<1x1x1xf32>
    %cst_189 = arith.constant 0.000000e+00 : f32
    %640 = arith.addf %cst_189, %639 : f32
    %641 = vector.shape_cast %625 : vector<8x128xf32> to vector<1x8x128xf32>
    %cst_190 = arith.constant dense<0.000000e+00> : vector<1xf32>
    %642 = vector.multi_reduction <add>, %641, %cst_190 [1, 2] : vector<1x8x128xf32> to vector<1xf32>
    %643 = vector.shape_cast %642 : vector<1xf32> to vector<1x1x1xf32>
    %644 = vector.extract %643[0, 0, 0] : f32 from vector<1x1x1xf32>
    %645 = arith.addf %634, %644 : f32
    %646 = arith.mulf %625, %625 : vector<8x128xf32>
    %647 = vector.shape_cast %646 : vector<8x128xf32> to vector<1x8x128xf32>
    %cst_191 = arith.constant dense<0.000000e+00> : vector<1xf32>
    %648 = vector.multi_reduction <add>, %647, %cst_191 [1, 2] : vector<1x8x128xf32> to vector<1xf32>
    %649 = vector.shape_cast %648 : vector<1xf32> to vector<1x1x1xf32>
    %650 = vector.extract %649[0, 0, 0] : f32 from vector<1x1x1xf32>
    %651 = arith.addf %640, %650 : f32
    %cst_192 = arith.constant 4.8828125E-4 : f32
    %652 = arith.mulf %645, %cst_192 : f32
    %cst_193 = arith.constant 4.8828125E-4 : f32
    %653 = arith.mulf %651, %cst_193 : f32
    %654 = arith.mulf %652, %652 : f32
    %655 = arith.subf %653, %654 : f32
    %cst_194 = arith.constant 9.99999974E-6 : f32
    %656 = arith.addf %655, %cst_194 : f32
    %657 = math.rsqrt %656 : f32
    %c0_195 = arith.constant 0 : index
    %658 = memref.load %arg2[%c0_195] : memref<2xf32, #tpu.memory_space<smem>>
    %659 = arith.mulf %657, %658 : f32
    %c0_196 = arith.constant 0 : index
    %660 = memref.load %arg3[%c0_196] : memref<2xf32, #tpu.memory_space<smem>>
    %661 = arith.mulf %652, %659 : f32
    %662 = arith.subf %660, %661 : f32
    %663 = vector.broadcast %659 : f32 to vector<8x128xf32>
    %664 = arith.mulf %527, %663 : vector<8x128xf32>
    %665 = vector.broadcast %662 : f32 to vector<8x128xf32>
    %666 = arith.addf %664, %665 : vector<8x128xf32>
    %cst_197 = arith.constant 0.000000e+00 : f32
    %667 = vector.broadcast %cst_197 : f32 to vector<8x128xf32>
    %668 = arith.maximumf %666, %667 : vector<8x128xf32>
    %669 = vector.broadcast %659 : f32 to vector<8x128xf32>
    %670 = arith.mulf %625, %669 : vector<8x128xf32>
    %671 = vector.broadcast %662 : f32 to vector<8x128xf32>
    %672 = arith.addf %670, %671 : vector<8x128xf32>
    %cst_198 = arith.constant 0.000000e+00 : f32
    %673 = vector.broadcast %cst_198 : f32 to vector<8x128xf32>
    %674 = arith.maximumf %672, %673 : vector<8x128xf32>
    %675 = vector.shape_cast %531 : vector<8x128xf32> to vector<1x8x128xf32>
    %cst_199 = arith.constant dense<0.000000e+00> : vector<1xf32>
    %676 = vector.multi_reduction <add>, %675, %cst_199 [1, 2] : vector<1x8x128xf32> to vector<1xf32>
    %677 = vector.shape_cast %676 : vector<1xf32> to vector<1x1x1xf32>
    %678 = vector.extract %677[0, 0, 0] : f32 from vector<1x1x1xf32>
    %cst_200 = arith.constant 0.000000e+00 : f32
    %679 = arith.addf %cst_200, %678 : f32
    %680 = arith.mulf %531, %531 : vector<8x128xf32>
    %681 = vector.shape_cast %680 : vector<8x128xf32> to vector<1x8x128xf32>
    %cst_201 = arith.constant dense<0.000000e+00> : vector<1xf32>
    %682 = vector.multi_reduction <add>, %681, %cst_201 [1, 2] : vector<1x8x128xf32> to vector<1xf32>
    %683 = vector.shape_cast %682 : vector<1xf32> to vector<1x1x1xf32>
    %684 = vector.extract %683[0, 0, 0] : f32 from vector<1x1x1xf32>
    %cst_202 = arith.constant 0.000000e+00 : f32
    %685 = arith.addf %cst_202, %684 : f32
    %686 = vector.shape_cast %629 : vector<8x128xf32> to vector<1x8x128xf32>
    %cst_203 = arith.constant dense<0.000000e+00> : vector<1xf32>
    %687 = vector.multi_reduction <add>, %686, %cst_203 [1, 2] : vector<1x8x128xf32> to vector<1xf32>
    %688 = vector.shape_cast %687 : vector<1xf32> to vector<1x1x1xf32>
    %689 = vector.extract %688[0, 0, 0] : f32 from vector<1x1x1xf32>
    %690 = arith.addf %679, %689 : f32
    %691 = arith.mulf %629, %629 : vector<8x128xf32>
    %692 = vector.shape_cast %691 : vector<8x128xf32> to vector<1x8x128xf32>
    %cst_204 = arith.constant dense<0.000000e+00> : vector<1xf32>
    %693 = vector.multi_reduction <add>, %692, %cst_204 [1, 2] : vector<1x8x128xf32> to vector<1xf32>
    %694 = vector.shape_cast %693 : vector<1xf32> to vector<1x1x1xf32>
    %695 = vector.extract %694[0, 0, 0] : f32 from vector<1x1x1xf32>
    %696 = arith.addf %685, %695 : f32
    %cst_205 = arith.constant 4.8828125E-4 : f32
    %697 = arith.mulf %690, %cst_205 : f32
    %cst_206 = arith.constant 4.8828125E-4 : f32
    %698 = arith.mulf %696, %cst_206 : f32
    %699 = arith.mulf %697, %697 : f32
    %700 = arith.subf %698, %699 : f32
    %cst_207 = arith.constant 9.99999974E-6 : f32
    %701 = arith.addf %700, %cst_207 : f32
    %702 = math.rsqrt %701 : f32
    %c1_208 = arith.constant 1 : index
    %703 = memref.load %arg2[%c1_208] : memref<2xf32, #tpu.memory_space<smem>>
    %704 = arith.mulf %702, %703 : f32
    %c1_209 = arith.constant 1 : index
    %705 = memref.load %arg3[%c1_209] : memref<2xf32, #tpu.memory_space<smem>>
    %706 = arith.mulf %697, %704 : f32
    %707 = arith.subf %705, %706 : f32
    %708 = vector.broadcast %704 : f32 to vector<8x128xf32>
    %709 = arith.mulf %531, %708 : vector<8x128xf32>
    %710 = vector.broadcast %707 : f32 to vector<8x128xf32>
    %711 = arith.addf %709, %710 : vector<8x128xf32>
    %cst_210 = arith.constant 0.000000e+00 : f32
    %712 = vector.broadcast %cst_210 : f32 to vector<8x128xf32>
    %713 = arith.maximumf %711, %712 : vector<8x128xf32>
    %714 = vector.broadcast %704 : f32 to vector<8x128xf32>
    %715 = arith.mulf %629, %714 : vector<8x128xf32>
    %716 = vector.broadcast %707 : f32 to vector<8x128xf32>
    %717 = arith.addf %715, %716 : vector<8x128xf32>
    %cst_211 = arith.constant 0.000000e+00 : f32
    %718 = vector.broadcast %cst_211 : f32 to vector<8x128xf32>
    %719 = arith.maximumf %717, %718 : vector<8x128xf32>
    %cst_212 = arith.constant 0.000000e+00 : f32
    %720 = vector.broadcast %cst_212 : f32 to vector<8x128xf32>
    %cst_213 = arith.constant 0.000000e+00 : f32
    %721 = vector.broadcast %cst_213 : f32 to vector<8x128xf32>
    %cst_214 = arith.constant 0.000000e+00 : f32
    %722 = vector.broadcast %cst_214 : f32 to vector<8x128xf32>
    %cst_215 = arith.constant 0.000000e+00 : f32
    %723 = vector.broadcast %cst_215 : f32 to vector<8x128xf32>
    %cst_216 = arith.constant 0.000000e+00 : f32
    %724 = vector.broadcast %cst_216 : f32 to vector<8x128xf32>
    %cst_217 = arith.constant 0.000000e+00 : f32
    %725 = vector.broadcast %cst_217 : f32 to vector<8x128xf32>
    %cst_218 = arith.constant 0.000000e+00 : f32
    %726 = vector.broadcast %cst_218 : f32 to vector<8x128xf32>
    %cst_219 = arith.constant 0.000000e+00 : f32
    %727 = vector.broadcast %cst_219 : f32 to vector<8x128xf32>
    %c1_i32_220 = arith.constant 1 : i32
    %728 = tpu.dynamic_rotate %668 by %c1_i32_220 dim 1 : vector<8x128xf32>, i32 -> vector<8x128xf32>
    %cst_221 = arith.constant 0.000000e+00 : f32
    %729 = vector.broadcast %cst_221 : f32 to vector<8x128xf32>
    %730 = arith.select %10, %728, %729 : vector<8x128xi1>, vector<8x128xf32>
    %c1_i32_222 = arith.constant 1 : i32
    %731 = tpu.dynamic_rotate %730 by %c1_i32_222 dim 0 : vector<8x128xf32>, i32 -> vector<8x128xf32>
    %cst_223 = arith.constant 0.000000e+00 : f32
    %732 = vector.broadcast %cst_223 : f32 to vector<8x128xf32>
    %733 = arith.select %28, %731, %732 : vector<8x128xi1>, vector<8x128xf32>
    %c0_224 = arith.constant 0 : index
    %734 = memref.load %arg4[%c0_224] : memref<72xf32, #tpu.memory_space<smem>>
    %735 = vector.broadcast %734 : f32 to vector<8x128xf32>
    %736 = arith.mulf %733, %735 : vector<8x128xf32>
    %737 = arith.addf %720, %736 : vector<8x128xf32>
    %c18_225 = arith.constant 18 : index
    %738 = memref.load %arg4[%c18_225] : memref<72xf32, #tpu.memory_space<smem>>
    %739 = vector.broadcast %738 : f32 to vector<8x128xf32>
    %740 = arith.mulf %733, %739 : vector<8x128xf32>
    %741 = arith.addf %722, %740 : vector<8x128xf32>
    %c36_226 = arith.constant 36 : index
    %742 = memref.load %arg4[%c36_226] : memref<72xf32, #tpu.memory_space<smem>>
    %743 = vector.broadcast %742 : f32 to vector<8x128xf32>
    %744 = arith.mulf %733, %743 : vector<8x128xf32>
    %745 = arith.addf %724, %744 : vector<8x128xf32>
    %c54 = arith.constant 54 : index
    %746 = memref.load %arg4[%c54] : memref<72xf32, #tpu.memory_space<smem>>
    %747 = vector.broadcast %746 : f32 to vector<8x128xf32>
    %748 = arith.mulf %733, %747 : vector<8x128xf32>
    %749 = arith.addf %726, %748 : vector<8x128xf32>
    %c3_227 = arith.constant 3 : index
    %750 = memref.load %arg4[%c3_227] : memref<72xf32, #tpu.memory_space<smem>>
    %751 = vector.broadcast %750 : f32 to vector<8x128xf32>
    %752 = arith.mulf %730, %751 : vector<8x128xf32>
    %753 = arith.addf %737, %752 : vector<8x128xf32>
    %c21_228 = arith.constant 21 : index
    %754 = memref.load %arg4[%c21_228] : memref<72xf32, #tpu.memory_space<smem>>
    %755 = vector.broadcast %754 : f32 to vector<8x128xf32>
    %756 = arith.mulf %730, %755 : vector<8x128xf32>
    %757 = arith.addf %741, %756 : vector<8x128xf32>
    %c39_229 = arith.constant 39 : index
    %758 = memref.load %arg4[%c39_229] : memref<72xf32, #tpu.memory_space<smem>>
    %759 = vector.broadcast %758 : f32 to vector<8x128xf32>
    %760 = arith.mulf %730, %759 : vector<8x128xf32>
    %761 = arith.addf %745, %760 : vector<8x128xf32>
    %c57 = arith.constant 57 : index
    %762 = memref.load %arg4[%c57] : memref<72xf32, #tpu.memory_space<smem>>
    %763 = vector.broadcast %762 : f32 to vector<8x128xf32>
    %764 = arith.mulf %730, %763 : vector<8x128xf32>
    %765 = arith.addf %749, %764 : vector<8x128xf32>
    %c7_i32_230 = arith.constant 7 : i32
    %766 = tpu.dynamic_rotate %730 by %c7_i32_230 dim 0 : vector<8x128xf32>, i32 -> vector<8x128xf32>
    %cst_231 = arith.constant 0.000000e+00 : f32
    %767 = vector.broadcast %cst_231 : f32 to vector<8x128xf32>
    %768 = arith.select %37, %766, %767 : vector<8x128xi1>, vector<8x128xf32>
    %c6_232 = arith.constant 6 : index
    %769 = memref.load %arg4[%c6_232] : memref<72xf32, #tpu.memory_space<smem>>
    %770 = vector.broadcast %769 : f32 to vector<8x128xf32>
    %771 = arith.mulf %768, %770 : vector<8x128xf32>
    %772 = arith.addf %753, %771 : vector<8x128xf32>
    %c24_233 = arith.constant 24 : index
    %773 = memref.load %arg4[%c24_233] : memref<72xf32, #tpu.memory_space<smem>>
    %774 = vector.broadcast %773 : f32 to vector<8x128xf32>
    %775 = arith.mulf %768, %774 : vector<8x128xf32>
    %776 = arith.addf %757, %775 : vector<8x128xf32>
    %c42_234 = arith.constant 42 : index
    %777 = memref.load %arg4[%c42_234] : memref<72xf32, #tpu.memory_space<smem>>
    %778 = vector.broadcast %777 : f32 to vector<8x128xf32>
    %779 = arith.mulf %768, %778 : vector<8x128xf32>
    %780 = arith.addf %761, %779 : vector<8x128xf32>
    %c60 = arith.constant 60 : index
    %781 = memref.load %arg4[%c60] : memref<72xf32, #tpu.memory_space<smem>>
    %782 = vector.broadcast %781 : f32 to vector<8x128xf32>
    %783 = arith.mulf %768, %782 : vector<8x128xf32>
    %784 = arith.addf %765, %783 : vector<8x128xf32>
    %c1_i32_235 = arith.constant 1 : i32
    %785 = tpu.dynamic_rotate %668 by %c1_i32_235 dim 0 : vector<8x128xf32>, i32 -> vector<8x128xf32>
    %cst_236 = arith.constant 0.000000e+00 : f32
    %786 = vector.broadcast %cst_236 : f32 to vector<8x128xf32>
    %787 = arith.select %28, %785, %786 : vector<8x128xi1>, vector<8x128xf32>
    %c1_237 = arith.constant 1 : index
    %788 = memref.load %arg4[%c1_237] : memref<72xf32, #tpu.memory_space<smem>>
    %789 = vector.broadcast %788 : f32 to vector<8x128xf32>
    %790 = arith.mulf %787, %789 : vector<8x128xf32>
    %791 = arith.addf %772, %790 : vector<8x128xf32>
    %c19_238 = arith.constant 19 : index
    %792 = memref.load %arg4[%c19_238] : memref<72xf32, #tpu.memory_space<smem>>
    %793 = vector.broadcast %792 : f32 to vector<8x128xf32>
    %794 = arith.mulf %787, %793 : vector<8x128xf32>
    %795 = arith.addf %776, %794 : vector<8x128xf32>
    %c37_239 = arith.constant 37 : index
    %796 = memref.load %arg4[%c37_239] : memref<72xf32, #tpu.memory_space<smem>>
    %797 = vector.broadcast %796 : f32 to vector<8x128xf32>
    %798 = arith.mulf %787, %797 : vector<8x128xf32>
    %799 = arith.addf %780, %798 : vector<8x128xf32>
    %c55 = arith.constant 55 : index
    %800 = memref.load %arg4[%c55] : memref<72xf32, #tpu.memory_space<smem>>
    %801 = vector.broadcast %800 : f32 to vector<8x128xf32>
    %802 = arith.mulf %787, %801 : vector<8x128xf32>
    %803 = arith.addf %784, %802 : vector<8x128xf32>
    %c4_240 = arith.constant 4 : index
    %804 = memref.load %arg4[%c4_240] : memref<72xf32, #tpu.memory_space<smem>>
    %805 = vector.broadcast %804 : f32 to vector<8x128xf32>
    %806 = arith.mulf %668, %805 : vector<8x128xf32>
    %807 = arith.addf %791, %806 : vector<8x128xf32>
    %c22_241 = arith.constant 22 : index
    %808 = memref.load %arg4[%c22_241] : memref<72xf32, #tpu.memory_space<smem>>
    %809 = vector.broadcast %808 : f32 to vector<8x128xf32>
    %810 = arith.mulf %668, %809 : vector<8x128xf32>
    %811 = arith.addf %795, %810 : vector<8x128xf32>
    %c40_242 = arith.constant 40 : index
    %812 = memref.load %arg4[%c40_242] : memref<72xf32, #tpu.memory_space<smem>>
    %813 = vector.broadcast %812 : f32 to vector<8x128xf32>
    %814 = arith.mulf %668, %813 : vector<8x128xf32>
    %815 = arith.addf %799, %814 : vector<8x128xf32>
    %c58 = arith.constant 58 : index
    %816 = memref.load %arg4[%c58] : memref<72xf32, #tpu.memory_space<smem>>
    %817 = vector.broadcast %816 : f32 to vector<8x128xf32>
    %818 = arith.mulf %668, %817 : vector<8x128xf32>
    %819 = arith.addf %803, %818 : vector<8x128xf32>
    %c7_i32_243 = arith.constant 7 : i32
    %820 = tpu.dynamic_rotate %668 by %c7_i32_243 dim 0 : vector<8x128xf32>, i32 -> vector<8x128xf32>
    %cst_244 = arith.constant 0.000000e+00 : f32
    %821 = vector.broadcast %cst_244 : f32 to vector<8x128xf32>
    %822 = arith.select %37, %820, %821 : vector<8x128xi1>, vector<8x128xf32>
    %c7_245 = arith.constant 7 : index
    %823 = memref.load %arg4[%c7_245] : memref<72xf32, #tpu.memory_space<smem>>
    %824 = vector.broadcast %823 : f32 to vector<8x128xf32>
    %825 = arith.mulf %822, %824 : vector<8x128xf32>
    %826 = arith.addf %807, %825 : vector<8x128xf32>
    %c25_246 = arith.constant 25 : index
    %827 = memref.load %arg4[%c25_246] : memref<72xf32, #tpu.memory_space<smem>>
    %828 = vector.broadcast %827 : f32 to vector<8x128xf32>
    %829 = arith.mulf %822, %828 : vector<8x128xf32>
    %830 = arith.addf %811, %829 : vector<8x128xf32>
    %c43_247 = arith.constant 43 : index
    %831 = memref.load %arg4[%c43_247] : memref<72xf32, #tpu.memory_space<smem>>
    %832 = vector.broadcast %831 : f32 to vector<8x128xf32>
    %833 = arith.mulf %822, %832 : vector<8x128xf32>
    %834 = arith.addf %815, %833 : vector<8x128xf32>
    %c61 = arith.constant 61 : index
    %835 = memref.load %arg4[%c61] : memref<72xf32, #tpu.memory_space<smem>>
    %836 = vector.broadcast %835 : f32 to vector<8x128xf32>
    %837 = arith.mulf %822, %836 : vector<8x128xf32>
    %838 = arith.addf %819, %837 : vector<8x128xf32>
    %c127_i32_248 = arith.constant 127 : i32
    %839 = tpu.dynamic_rotate %668 by %c127_i32_248 dim 1 : vector<8x128xf32>, i32 -> vector<8x128xf32>
    %cst_249 = arith.constant 0.000000e+00 : f32
    %840 = vector.broadcast %cst_249 : f32 to vector<8x128xf32>
    %841 = arith.select %19, %839, %840 : vector<8x128xi1>, vector<8x128xf32>
    %c1_i32_250 = arith.constant 1 : i32
    %842 = tpu.dynamic_rotate %841 by %c1_i32_250 dim 0 : vector<8x128xf32>, i32 -> vector<8x128xf32>
    %cst_251 = arith.constant 0.000000e+00 : f32
    %843 = vector.broadcast %cst_251 : f32 to vector<8x128xf32>
    %844 = arith.select %28, %842, %843 : vector<8x128xi1>, vector<8x128xf32>
    %c2_252 = arith.constant 2 : index
    %845 = memref.load %arg4[%c2_252] : memref<72xf32, #tpu.memory_space<smem>>
    %846 = vector.broadcast %845 : f32 to vector<8x128xf32>
    %847 = arith.mulf %844, %846 : vector<8x128xf32>
    %848 = arith.addf %826, %847 : vector<8x128xf32>
    %c20_253 = arith.constant 20 : index
    %849 = memref.load %arg4[%c20_253] : memref<72xf32, #tpu.memory_space<smem>>
    %850 = vector.broadcast %849 : f32 to vector<8x128xf32>
    %851 = arith.mulf %844, %850 : vector<8x128xf32>
    %852 = arith.addf %830, %851 : vector<8x128xf32>
    %c38_254 = arith.constant 38 : index
    %853 = memref.load %arg4[%c38_254] : memref<72xf32, #tpu.memory_space<smem>>
    %854 = vector.broadcast %853 : f32 to vector<8x128xf32>
    %855 = arith.mulf %844, %854 : vector<8x128xf32>
    %856 = arith.addf %834, %855 : vector<8x128xf32>
    %c56 = arith.constant 56 : index
    %857 = memref.load %arg4[%c56] : memref<72xf32, #tpu.memory_space<smem>>
    %858 = vector.broadcast %857 : f32 to vector<8x128xf32>
    %859 = arith.mulf %844, %858 : vector<8x128xf32>
    %860 = arith.addf %838, %859 : vector<8x128xf32>
    %c5_255 = arith.constant 5 : index
    %861 = memref.load %arg4[%c5_255] : memref<72xf32, #tpu.memory_space<smem>>
    %862 = vector.broadcast %861 : f32 to vector<8x128xf32>
    %863 = arith.mulf %841, %862 : vector<8x128xf32>
    %864 = arith.addf %848, %863 : vector<8x128xf32>
    %c23_256 = arith.constant 23 : index
    %865 = memref.load %arg4[%c23_256] : memref<72xf32, #tpu.memory_space<smem>>
    %866 = vector.broadcast %865 : f32 to vector<8x128xf32>
    %867 = arith.mulf %841, %866 : vector<8x128xf32>
    %868 = arith.addf %852, %867 : vector<8x128xf32>
    %c41_257 = arith.constant 41 : index
    %869 = memref.load %arg4[%c41_257] : memref<72xf32, #tpu.memory_space<smem>>
    %870 = vector.broadcast %869 : f32 to vector<8x128xf32>
    %871 = arith.mulf %841, %870 : vector<8x128xf32>
    %872 = arith.addf %856, %871 : vector<8x128xf32>
    %c59 = arith.constant 59 : index
    %873 = memref.load %arg4[%c59] : memref<72xf32, #tpu.memory_space<smem>>
    %874 = vector.broadcast %873 : f32 to vector<8x128xf32>
    %875 = arith.mulf %841, %874 : vector<8x128xf32>
    %876 = arith.addf %860, %875 : vector<8x128xf32>
    %c7_i32_258 = arith.constant 7 : i32
    %877 = tpu.dynamic_rotate %841 by %c7_i32_258 dim 0 : vector<8x128xf32>, i32 -> vector<8x128xf32>
    %cst_259 = arith.constant 0.000000e+00 : f32
    %878 = vector.broadcast %cst_259 : f32 to vector<8x128xf32>
    %879 = arith.select %37, %877, %878 : vector<8x128xi1>, vector<8x128xf32>
    %c8_260 = arith.constant 8 : index
    %880 = memref.load %arg4[%c8_260] : memref<72xf32, #tpu.memory_space<smem>>
    %881 = vector.broadcast %880 : f32 to vector<8x128xf32>
    %882 = arith.mulf %879, %881 : vector<8x128xf32>
    %883 = arith.addf %864, %882 : vector<8x128xf32>
    %c26_261 = arith.constant 26 : index
    %884 = memref.load %arg4[%c26_261] : memref<72xf32, #tpu.memory_space<smem>>
    %885 = vector.broadcast %884 : f32 to vector<8x128xf32>
    %886 = arith.mulf %879, %885 : vector<8x128xf32>
    %887 = arith.addf %868, %886 : vector<8x128xf32>
    %c44_262 = arith.constant 44 : index
    %888 = memref.load %arg4[%c44_262] : memref<72xf32, #tpu.memory_space<smem>>
    %889 = vector.broadcast %888 : f32 to vector<8x128xf32>
    %890 = arith.mulf %879, %889 : vector<8x128xf32>
    %891 = arith.addf %872, %890 : vector<8x128xf32>
    %c62 = arith.constant 62 : index
    %892 = memref.load %arg4[%c62] : memref<72xf32, #tpu.memory_space<smem>>
    %893 = vector.broadcast %892 : f32 to vector<8x128xf32>
    %894 = arith.mulf %879, %893 : vector<8x128xf32>
    %895 = arith.addf %876, %894 : vector<8x128xf32>
    %c1_i32_263 = arith.constant 1 : i32
    %896 = tpu.dynamic_rotate %674 by %c1_i32_263 dim 1 : vector<8x128xf32>, i32 -> vector<8x128xf32>
    %cst_264 = arith.constant 0.000000e+00 : f32
    %897 = vector.broadcast %cst_264 : f32 to vector<8x128xf32>
    %898 = arith.select %10, %896, %897 : vector<8x128xi1>, vector<8x128xf32>
    %c1_i32_265 = arith.constant 1 : i32
    %899 = tpu.dynamic_rotate %898 by %c1_i32_265 dim 0 : vector<8x128xf32>, i32 -> vector<8x128xf32>
    %cst_266 = arith.constant 0.000000e+00 : f32
    %900 = vector.broadcast %cst_266 : f32 to vector<8x128xf32>
    %901 = arith.select %28, %899, %900 : vector<8x128xi1>, vector<8x128xf32>
    %c0_267 = arith.constant 0 : index
    %902 = memref.load %arg4[%c0_267] : memref<72xf32, #tpu.memory_space<smem>>
    %903 = vector.broadcast %902 : f32 to vector<8x128xf32>
    %904 = arith.mulf %901, %903 : vector<8x128xf32>
    %905 = arith.addf %721, %904 : vector<8x128xf32>
    %c18_268 = arith.constant 18 : index
    %906 = memref.load %arg4[%c18_268] : memref<72xf32, #tpu.memory_space<smem>>
    %907 = vector.broadcast %906 : f32 to vector<8x128xf32>
    %908 = arith.mulf %901, %907 : vector<8x128xf32>
    %909 = arith.addf %723, %908 : vector<8x128xf32>
    %c36_269 = arith.constant 36 : index
    %910 = memref.load %arg4[%c36_269] : memref<72xf32, #tpu.memory_space<smem>>
    %911 = vector.broadcast %910 : f32 to vector<8x128xf32>
    %912 = arith.mulf %901, %911 : vector<8x128xf32>
    %913 = arith.addf %725, %912 : vector<8x128xf32>
    %c54_270 = arith.constant 54 : index
    %914 = memref.load %arg4[%c54_270] : memref<72xf32, #tpu.memory_space<smem>>
    %915 = vector.broadcast %914 : f32 to vector<8x128xf32>
    %916 = arith.mulf %901, %915 : vector<8x128xf32>
    %917 = arith.addf %727, %916 : vector<8x128xf32>
    %c3_271 = arith.constant 3 : index
    %918 = memref.load %arg4[%c3_271] : memref<72xf32, #tpu.memory_space<smem>>
    %919 = vector.broadcast %918 : f32 to vector<8x128xf32>
    %920 = arith.mulf %898, %919 : vector<8x128xf32>
    %921 = arith.addf %905, %920 : vector<8x128xf32>
    %c21_272 = arith.constant 21 : index
    %922 = memref.load %arg4[%c21_272] : memref<72xf32, #tpu.memory_space<smem>>
    %923 = vector.broadcast %922 : f32 to vector<8x128xf32>
    %924 = arith.mulf %898, %923 : vector<8x128xf32>
    %925 = arith.addf %909, %924 : vector<8x128xf32>
    %c39_273 = arith.constant 39 : index
    %926 = memref.load %arg4[%c39_273] : memref<72xf32, #tpu.memory_space<smem>>
    %927 = vector.broadcast %926 : f32 to vector<8x128xf32>
    %928 = arith.mulf %898, %927 : vector<8x128xf32>
    %929 = arith.addf %913, %928 : vector<8x128xf32>
    %c57_274 = arith.constant 57 : index
    %930 = memref.load %arg4[%c57_274] : memref<72xf32, #tpu.memory_space<smem>>
    %931 = vector.broadcast %930 : f32 to vector<8x128xf32>
    %932 = arith.mulf %898, %931 : vector<8x128xf32>
    %933 = arith.addf %917, %932 : vector<8x128xf32>
    %c7_i32_275 = arith.constant 7 : i32
    %934 = tpu.dynamic_rotate %898 by %c7_i32_275 dim 0 : vector<8x128xf32>, i32 -> vector<8x128xf32>
    %cst_276 = arith.constant 0.000000e+00 : f32
    %935 = vector.broadcast %cst_276 : f32 to vector<8x128xf32>
    %936 = arith.select %37, %934, %935 : vector<8x128xi1>, vector<8x128xf32>
    %c6_277 = arith.constant 6 : index
    %937 = memref.load %arg4[%c6_277] : memref<72xf32, #tpu.memory_space<smem>>
    %938 = vector.broadcast %937 : f32 to vector<8x128xf32>
    %939 = arith.mulf %936, %938 : vector<8x128xf32>
    %940 = arith.addf %921, %939 : vector<8x128xf32>
    %c24_278 = arith.constant 24 : index
    %941 = memref.load %arg4[%c24_278] : memref<72xf32, #tpu.memory_space<smem>>
    %942 = vector.broadcast %941 : f32 to vector<8x128xf32>
    %943 = arith.mulf %936, %942 : vector<8x128xf32>
    %944 = arith.addf %925, %943 : vector<8x128xf32>
    %c42_279 = arith.constant 42 : index
    %945 = memref.load %arg4[%c42_279] : memref<72xf32, #tpu.memory_space<smem>>
    %946 = vector.broadcast %945 : f32 to vector<8x128xf32>
    %947 = arith.mulf %936, %946 : vector<8x128xf32>
    %948 = arith.addf %929, %947 : vector<8x128xf32>
    %c60_280 = arith.constant 60 : index
    %949 = memref.load %arg4[%c60_280] : memref<72xf32, #tpu.memory_space<smem>>
    %950 = vector.broadcast %949 : f32 to vector<8x128xf32>
    %951 = arith.mulf %936, %950 : vector<8x128xf32>
    %952 = arith.addf %933, %951 : vector<8x128xf32>
    %c1_i32_281 = arith.constant 1 : i32
    %953 = tpu.dynamic_rotate %674 by %c1_i32_281 dim 0 : vector<8x128xf32>, i32 -> vector<8x128xf32>
    %cst_282 = arith.constant 0.000000e+00 : f32
    %954 = vector.broadcast %cst_282 : f32 to vector<8x128xf32>
    %955 = arith.select %28, %953, %954 : vector<8x128xi1>, vector<8x128xf32>
    %c1_283 = arith.constant 1 : index
    %956 = memref.load %arg4[%c1_283] : memref<72xf32, #tpu.memory_space<smem>>
    %957 = vector.broadcast %956 : f32 to vector<8x128xf32>
    %958 = arith.mulf %955, %957 : vector<8x128xf32>
    %959 = arith.addf %940, %958 : vector<8x128xf32>
    %c19_284 = arith.constant 19 : index
    %960 = memref.load %arg4[%c19_284] : memref<72xf32, #tpu.memory_space<smem>>
    %961 = vector.broadcast %960 : f32 to vector<8x128xf32>
    %962 = arith.mulf %955, %961 : vector<8x128xf32>
    %963 = arith.addf %944, %962 : vector<8x128xf32>
    %c37_285 = arith.constant 37 : index
    %964 = memref.load %arg4[%c37_285] : memref<72xf32, #tpu.memory_space<smem>>
    %965 = vector.broadcast %964 : f32 to vector<8x128xf32>
    %966 = arith.mulf %955, %965 : vector<8x128xf32>
    %967 = arith.addf %948, %966 : vector<8x128xf32>
    %c55_286 = arith.constant 55 : index
    %968 = memref.load %arg4[%c55_286] : memref<72xf32, #tpu.memory_space<smem>>
    %969 = vector.broadcast %968 : f32 to vector<8x128xf32>
    %970 = arith.mulf %955, %969 : vector<8x128xf32>
    %971 = arith.addf %952, %970 : vector<8x128xf32>
    %c4_287 = arith.constant 4 : index
    %972 = memref.load %arg4[%c4_287] : memref<72xf32, #tpu.memory_space<smem>>
    %973 = vector.broadcast %972 : f32 to vector<8x128xf32>
    %974 = arith.mulf %674, %973 : vector<8x128xf32>
    %975 = arith.addf %959, %974 : vector<8x128xf32>
    %c22_288 = arith.constant 22 : index
    %976 = memref.load %arg4[%c22_288] : memref<72xf32, #tpu.memory_space<smem>>
    %977 = vector.broadcast %976 : f32 to vector<8x128xf32>
    %978 = arith.mulf %674, %977 : vector<8x128xf32>
    %979 = arith.addf %963, %978 : vector<8x128xf32>
    %c40_289 = arith.constant 40 : index
    %980 = memref.load %arg4[%c40_289] : memref<72xf32, #tpu.memory_space<smem>>
    %981 = vector.broadcast %980 : f32 to vector<8x128xf32>
    %982 = arith.mulf %674, %981 : vector<8x128xf32>
    %983 = arith.addf %967, %982 : vector<8x128xf32>
    %c58_290 = arith.constant 58 : index
    %984 = memref.load %arg4[%c58_290] : memref<72xf32, #tpu.memory_space<smem>>
    %985 = vector.broadcast %984 : f32 to vector<8x128xf32>
    %986 = arith.mulf %674, %985 : vector<8x128xf32>
    %987 = arith.addf %971, %986 : vector<8x128xf32>
    %c7_i32_291 = arith.constant 7 : i32
    %988 = tpu.dynamic_rotate %674 by %c7_i32_291 dim 0 : vector<8x128xf32>, i32 -> vector<8x128xf32>
    %cst_292 = arith.constant 0.000000e+00 : f32
    %989 = vector.broadcast %cst_292 : f32 to vector<8x128xf32>
    %990 = arith.select %37, %988, %989 : vector<8x128xi1>, vector<8x128xf32>
    %c7_293 = arith.constant 7 : index
    %991 = memref.load %arg4[%c7_293] : memref<72xf32, #tpu.memory_space<smem>>
    %992 = vector.broadcast %991 : f32 to vector<8x128xf32>
    %993 = arith.mulf %990, %992 : vector<8x128xf32>
    %994 = arith.addf %975, %993 : vector<8x128xf32>
    %c25_294 = arith.constant 25 : index
    %995 = memref.load %arg4[%c25_294] : memref<72xf32, #tpu.memory_space<smem>>
    %996 = vector.broadcast %995 : f32 to vector<8x128xf32>
    %997 = arith.mulf %990, %996 : vector<8x128xf32>
    %998 = arith.addf %979, %997 : vector<8x128xf32>
    %c43_295 = arith.constant 43 : index
    %999 = memref.load %arg4[%c43_295] : memref<72xf32, #tpu.memory_space<smem>>
    %1000 = vector.broadcast %999 : f32 to vector<8x128xf32>
    %1001 = arith.mulf %990, %1000 : vector<8x128xf32>
    %1002 = arith.addf %983, %1001 : vector<8x128xf32>
    %c61_296 = arith.constant 61 : index
    %1003 = memref.load %arg4[%c61_296] : memref<72xf32, #tpu.memory_space<smem>>
    %1004 = vector.broadcast %1003 : f32 to vector<8x128xf32>
    %1005 = arith.mulf %990, %1004 : vector<8x128xf32>
    %1006 = arith.addf %987, %1005 : vector<8x128xf32>
    %c127_i32_297 = arith.constant 127 : i32
    %1007 = tpu.dynamic_rotate %674 by %c127_i32_297 dim 1 : vector<8x128xf32>, i32 -> vector<8x128xf32>
    %cst_298 = arith.constant 0.000000e+00 : f32
    %1008 = vector.broadcast %cst_298 : f32 to vector<8x128xf32>
    %1009 = arith.select %19, %1007, %1008 : vector<8x128xi1>, vector<8x128xf32>
    %c1_i32_299 = arith.constant 1 : i32
    %1010 = tpu.dynamic_rotate %1009 by %c1_i32_299 dim 0 : vector<8x128xf32>, i32 -> vector<8x128xf32>
    %cst_300 = arith.constant 0.000000e+00 : f32
    %1011 = vector.broadcast %cst_300 : f32 to vector<8x128xf32>
    %1012 = arith.select %28, %1010, %1011 : vector<8x128xi1>, vector<8x128xf32>
    %c2_301 = arith.constant 2 : index
    %1013 = memref.load %arg4[%c2_301] : memref<72xf32, #tpu.memory_space<smem>>
    %1014 = vector.broadcast %1013 : f32 to vector<8x128xf32>
    %1015 = arith.mulf %1012, %1014 : vector<8x128xf32>
    %1016 = arith.addf %994, %1015 : vector<8x128xf32>
    %c20_302 = arith.constant 20 : index
    %1017 = memref.load %arg4[%c20_302] : memref<72xf32, #tpu.memory_space<smem>>
    %1018 = vector.broadcast %1017 : f32 to vector<8x128xf32>
    %1019 = arith.mulf %1012, %1018 : vector<8x128xf32>
    %1020 = arith.addf %998, %1019 : vector<8x128xf32>
    %c38_303 = arith.constant 38 : index
    %1021 = memref.load %arg4[%c38_303] : memref<72xf32, #tpu.memory_space<smem>>
    %1022 = vector.broadcast %1021 : f32 to vector<8x128xf32>
    %1023 = arith.mulf %1012, %1022 : vector<8x128xf32>
    %1024 = arith.addf %1002, %1023 : vector<8x128xf32>
    %c56_304 = arith.constant 56 : index
    %1025 = memref.load %arg4[%c56_304] : memref<72xf32, #tpu.memory_space<smem>>
    %1026 = vector.broadcast %1025 : f32 to vector<8x128xf32>
    %1027 = arith.mulf %1012, %1026 : vector<8x128xf32>
    %1028 = arith.addf %1006, %1027 : vector<8x128xf32>
    %c5_305 = arith.constant 5 : index
    %1029 = memref.load %arg4[%c5_305] : memref<72xf32, #tpu.memory_space<smem>>
    %1030 = vector.broadcast %1029 : f32 to vector<8x128xf32>
    %1031 = arith.mulf %1009, %1030 : vector<8x128xf32>
    %1032 = arith.addf %1016, %1031 : vector<8x128xf32>
    %c23_306 = arith.constant 23 : index
    %1033 = memref.load %arg4[%c23_306] : memref<72xf32, #tpu.memory_space<smem>>
    %1034 = vector.broadcast %1033 : f32 to vector<8x128xf32>
    %1035 = arith.mulf %1009, %1034 : vector<8x128xf32>
    %1036 = arith.addf %1020, %1035 : vector<8x128xf32>
    %c41_307 = arith.constant 41 : index
    %1037 = memref.load %arg4[%c41_307] : memref<72xf32, #tpu.memory_space<smem>>
    %1038 = vector.broadcast %1037 : f32 to vector<8x128xf32>
    %1039 = arith.mulf %1009, %1038 : vector<8x128xf32>
    %1040 = arith.addf %1024, %1039 : vector<8x128xf32>
    %c59_308 = arith.constant 59 : index
    %1041 = memref.load %arg4[%c59_308] : memref<72xf32, #tpu.memory_space<smem>>
    %1042 = vector.broadcast %1041 : f32 to vector<8x128xf32>
    %1043 = arith.mulf %1009, %1042 : vector<8x128xf32>
    %1044 = arith.addf %1028, %1043 : vector<8x128xf32>
    %c7_i32_309 = arith.constant 7 : i32
    %1045 = tpu.dynamic_rotate %1009 by %c7_i32_309 dim 0 : vector<8x128xf32>, i32 -> vector<8x128xf32>
    %cst_310 = arith.constant 0.000000e+00 : f32
    %1046 = vector.broadcast %cst_310 : f32 to vector<8x128xf32>
    %1047 = arith.select %37, %1045, %1046 : vector<8x128xi1>, vector<8x128xf32>
    %c8_311 = arith.constant 8 : index
    %1048 = memref.load %arg4[%c8_311] : memref<72xf32, #tpu.memory_space<smem>>
    %1049 = vector.broadcast %1048 : f32 to vector<8x128xf32>
    %1050 = arith.mulf %1047, %1049 : vector<8x128xf32>
    %1051 = arith.addf %1032, %1050 : vector<8x128xf32>
    %c26_312 = arith.constant 26 : index
    %1052 = memref.load %arg4[%c26_312] : memref<72xf32, #tpu.memory_space<smem>>
    %1053 = vector.broadcast %1052 : f32 to vector<8x128xf32>
    %1054 = arith.mulf %1047, %1053 : vector<8x128xf32>
    %1055 = arith.addf %1036, %1054 : vector<8x128xf32>
    %c44_313 = arith.constant 44 : index
    %1056 = memref.load %arg4[%c44_313] : memref<72xf32, #tpu.memory_space<smem>>
    %1057 = vector.broadcast %1056 : f32 to vector<8x128xf32>
    %1058 = arith.mulf %1047, %1057 : vector<8x128xf32>
    %1059 = arith.addf %1040, %1058 : vector<8x128xf32>
    %c62_314 = arith.constant 62 : index
    %1060 = memref.load %arg4[%c62_314] : memref<72xf32, #tpu.memory_space<smem>>
    %1061 = vector.broadcast %1060 : f32 to vector<8x128xf32>
    %1062 = arith.mulf %1047, %1061 : vector<8x128xf32>
    %1063 = arith.addf %1044, %1062 : vector<8x128xf32>
    %c1_i32_315 = arith.constant 1 : i32
    %1064 = tpu.dynamic_rotate %713 by %c1_i32_315 dim 1 : vector<8x128xf32>, i32 -> vector<8x128xf32>
    %cst_316 = arith.constant 0.000000e+00 : f32
    %1065 = vector.broadcast %cst_316 : f32 to vector<8x128xf32>
    %1066 = arith.select %10, %1064, %1065 : vector<8x128xi1>, vector<8x128xf32>
    %c1_i32_317 = arith.constant 1 : i32
    %1067 = tpu.dynamic_rotate %1066 by %c1_i32_317 dim 0 : vector<8x128xf32>, i32 -> vector<8x128xf32>
    %cst_318 = arith.constant 0.000000e+00 : f32
    %1068 = vector.broadcast %cst_318 : f32 to vector<8x128xf32>
    %1069 = arith.select %28, %1067, %1068 : vector<8x128xi1>, vector<8x128xf32>
    %c9_319 = arith.constant 9 : index
    %1070 = memref.load %arg4[%c9_319] : memref<72xf32, #tpu.memory_space<smem>>
    %1071 = vector.broadcast %1070 : f32 to vector<8x128xf32>
    %1072 = arith.mulf %1069, %1071 : vector<8x128xf32>
    %1073 = arith.addf %883, %1072 : vector<8x128xf32>
    %c27_320 = arith.constant 27 : index
    %1074 = memref.load %arg4[%c27_320] : memref<72xf32, #tpu.memory_space<smem>>
    %1075 = vector.broadcast %1074 : f32 to vector<8x128xf32>
    %1076 = arith.mulf %1069, %1075 : vector<8x128xf32>
    %1077 = arith.addf %887, %1076 : vector<8x128xf32>
    %c45_321 = arith.constant 45 : index
    %1078 = memref.load %arg4[%c45_321] : memref<72xf32, #tpu.memory_space<smem>>
    %1079 = vector.broadcast %1078 : f32 to vector<8x128xf32>
    %1080 = arith.mulf %1069, %1079 : vector<8x128xf32>
    %1081 = arith.addf %891, %1080 : vector<8x128xf32>
    %c63 = arith.constant 63 : index
    %1082 = memref.load %arg4[%c63] : memref<72xf32, #tpu.memory_space<smem>>
    %1083 = vector.broadcast %1082 : f32 to vector<8x128xf32>
    %1084 = arith.mulf %1069, %1083 : vector<8x128xf32>
    %1085 = arith.addf %895, %1084 : vector<8x128xf32>
    %c12_322 = arith.constant 12 : index
    %1086 = memref.load %arg4[%c12_322] : memref<72xf32, #tpu.memory_space<smem>>
    %1087 = vector.broadcast %1086 : f32 to vector<8x128xf32>
    %1088 = arith.mulf %1066, %1087 : vector<8x128xf32>
    %1089 = arith.addf %1073, %1088 : vector<8x128xf32>
    %c30_323 = arith.constant 30 : index
    %1090 = memref.load %arg4[%c30_323] : memref<72xf32, #tpu.memory_space<smem>>
    %1091 = vector.broadcast %1090 : f32 to vector<8x128xf32>
    %1092 = arith.mulf %1066, %1091 : vector<8x128xf32>
    %1093 = arith.addf %1077, %1092 : vector<8x128xf32>
    %c48_324 = arith.constant 48 : index
    %1094 = memref.load %arg4[%c48_324] : memref<72xf32, #tpu.memory_space<smem>>
    %1095 = vector.broadcast %1094 : f32 to vector<8x128xf32>
    %1096 = arith.mulf %1066, %1095 : vector<8x128xf32>
    %1097 = arith.addf %1081, %1096 : vector<8x128xf32>
    %c66 = arith.constant 66 : index
    %1098 = memref.load %arg4[%c66] : memref<72xf32, #tpu.memory_space<smem>>
    %1099 = vector.broadcast %1098 : f32 to vector<8x128xf32>
    %1100 = arith.mulf %1066, %1099 : vector<8x128xf32>
    %1101 = arith.addf %1085, %1100 : vector<8x128xf32>
    %c7_i32_325 = arith.constant 7 : i32
    %1102 = tpu.dynamic_rotate %1066 by %c7_i32_325 dim 0 : vector<8x128xf32>, i32 -> vector<8x128xf32>
    %cst_326 = arith.constant 0.000000e+00 : f32
    %1103 = vector.broadcast %cst_326 : f32 to vector<8x128xf32>
    %1104 = arith.select %37, %1102, %1103 : vector<8x128xi1>, vector<8x128xf32>
    %c15_327 = arith.constant 15 : index
    %1105 = memref.load %arg4[%c15_327] : memref<72xf32, #tpu.memory_space<smem>>
    %1106 = vector.broadcast %1105 : f32 to vector<8x128xf32>
    %1107 = arith.mulf %1104, %1106 : vector<8x128xf32>
    %1108 = arith.addf %1089, %1107 : vector<8x128xf32>
    %c33_328 = arith.constant 33 : index
    %1109 = memref.load %arg4[%c33_328] : memref<72xf32, #tpu.memory_space<smem>>
    %1110 = vector.broadcast %1109 : f32 to vector<8x128xf32>
    %1111 = arith.mulf %1104, %1110 : vector<8x128xf32>
    %1112 = arith.addf %1093, %1111 : vector<8x128xf32>
    %c51_329 = arith.constant 51 : index
    %1113 = memref.load %arg4[%c51_329] : memref<72xf32, #tpu.memory_space<smem>>
    %1114 = vector.broadcast %1113 : f32 to vector<8x128xf32>
    %1115 = arith.mulf %1104, %1114 : vector<8x128xf32>
    %1116 = arith.addf %1097, %1115 : vector<8x128xf32>
    %c69 = arith.constant 69 : index
    %1117 = memref.load %arg4[%c69] : memref<72xf32, #tpu.memory_space<smem>>
    %1118 = vector.broadcast %1117 : f32 to vector<8x128xf32>
    %1119 = arith.mulf %1104, %1118 : vector<8x128xf32>
    %1120 = arith.addf %1101, %1119 : vector<8x128xf32>
    %c1_i32_330 = arith.constant 1 : i32
    %1121 = tpu.dynamic_rotate %713 by %c1_i32_330 dim 0 : vector<8x128xf32>, i32 -> vector<8x128xf32>
    %cst_331 = arith.constant 0.000000e+00 : f32
    %1122 = vector.broadcast %cst_331 : f32 to vector<8x128xf32>
    %1123 = arith.select %28, %1121, %1122 : vector<8x128xi1>, vector<8x128xf32>
    %c10_332 = arith.constant 10 : index
    %1124 = memref.load %arg4[%c10_332] : memref<72xf32, #tpu.memory_space<smem>>
    %1125 = vector.broadcast %1124 : f32 to vector<8x128xf32>
    %1126 = arith.mulf %1123, %1125 : vector<8x128xf32>
    %1127 = arith.addf %1108, %1126 : vector<8x128xf32>
    %c28_333 = arith.constant 28 : index
    %1128 = memref.load %arg4[%c28_333] : memref<72xf32, #tpu.memory_space<smem>>
    %1129 = vector.broadcast %1128 : f32 to vector<8x128xf32>
    %1130 = arith.mulf %1123, %1129 : vector<8x128xf32>
    %1131 = arith.addf %1112, %1130 : vector<8x128xf32>
    %c46_334 = arith.constant 46 : index
    %1132 = memref.load %arg4[%c46_334] : memref<72xf32, #tpu.memory_space<smem>>
    %1133 = vector.broadcast %1132 : f32 to vector<8x128xf32>
    %1134 = arith.mulf %1123, %1133 : vector<8x128xf32>
    %1135 = arith.addf %1116, %1134 : vector<8x128xf32>
    %c64 = arith.constant 64 : index
    %1136 = memref.load %arg4[%c64] : memref<72xf32, #tpu.memory_space<smem>>
    %1137 = vector.broadcast %1136 : f32 to vector<8x128xf32>
    %1138 = arith.mulf %1123, %1137 : vector<8x128xf32>
    %1139 = arith.addf %1120, %1138 : vector<8x128xf32>
    %c13_335 = arith.constant 13 : index
    %1140 = memref.load %arg4[%c13_335] : memref<72xf32, #tpu.memory_space<smem>>
    %1141 = vector.broadcast %1140 : f32 to vector<8x128xf32>
    %1142 = arith.mulf %713, %1141 : vector<8x128xf32>
    %1143 = arith.addf %1127, %1142 : vector<8x128xf32>
    %c31_336 = arith.constant 31 : index
    %1144 = memref.load %arg4[%c31_336] : memref<72xf32, #tpu.memory_space<smem>>
    %1145 = vector.broadcast %1144 : f32 to vector<8x128xf32>
    %1146 = arith.mulf %713, %1145 : vector<8x128xf32>
    %1147 = arith.addf %1131, %1146 : vector<8x128xf32>
    %c49_337 = arith.constant 49 : index
    %1148 = memref.load %arg4[%c49_337] : memref<72xf32, #tpu.memory_space<smem>>
    %1149 = vector.broadcast %1148 : f32 to vector<8x128xf32>
    %1150 = arith.mulf %713, %1149 : vector<8x128xf32>
    %1151 = arith.addf %1135, %1150 : vector<8x128xf32>
    %c67 = arith.constant 67 : index
    %1152 = memref.load %arg4[%c67] : memref<72xf32, #tpu.memory_space<smem>>
    %1153 = vector.broadcast %1152 : f32 to vector<8x128xf32>
    %1154 = arith.mulf %713, %1153 : vector<8x128xf32>
    %1155 = arith.addf %1139, %1154 : vector<8x128xf32>
    %c7_i32_338 = arith.constant 7 : i32
    %1156 = tpu.dynamic_rotate %713 by %c7_i32_338 dim 0 : vector<8x128xf32>, i32 -> vector<8x128xf32>
    %cst_339 = arith.constant 0.000000e+00 : f32
    %1157 = vector.broadcast %cst_339 : f32 to vector<8x128xf32>
    %1158 = arith.select %37, %1156, %1157 : vector<8x128xi1>, vector<8x128xf32>
    %c16_340 = arith.constant 16 : index
    %1159 = memref.load %arg4[%c16_340] : memref<72xf32, #tpu.memory_space<smem>>
    %1160 = vector.broadcast %1159 : f32 to vector<8x128xf32>
    %1161 = arith.mulf %1158, %1160 : vector<8x128xf32>
    %1162 = arith.addf %1143, %1161 : vector<8x128xf32>
    %c34_341 = arith.constant 34 : index
    %1163 = memref.load %arg4[%c34_341] : memref<72xf32, #tpu.memory_space<smem>>
    %1164 = vector.broadcast %1163 : f32 to vector<8x128xf32>
    %1165 = arith.mulf %1158, %1164 : vector<8x128xf32>
    %1166 = arith.addf %1147, %1165 : vector<8x128xf32>
    %c52_342 = arith.constant 52 : index
    %1167 = memref.load %arg4[%c52_342] : memref<72xf32, #tpu.memory_space<smem>>
    %1168 = vector.broadcast %1167 : f32 to vector<8x128xf32>
    %1169 = arith.mulf %1158, %1168 : vector<8x128xf32>
    %1170 = arith.addf %1151, %1169 : vector<8x128xf32>
    %c70 = arith.constant 70 : index
    %1171 = memref.load %arg4[%c70] : memref<72xf32, #tpu.memory_space<smem>>
    %1172 = vector.broadcast %1171 : f32 to vector<8x128xf32>
    %1173 = arith.mulf %1158, %1172 : vector<8x128xf32>
    %1174 = arith.addf %1155, %1173 : vector<8x128xf32>
    %c127_i32_343 = arith.constant 127 : i32
    %1175 = tpu.dynamic_rotate %713 by %c127_i32_343 dim 1 : vector<8x128xf32>, i32 -> vector<8x128xf32>
    %cst_344 = arith.constant 0.000000e+00 : f32
    %1176 = vector.broadcast %cst_344 : f32 to vector<8x128xf32>
    %1177 = arith.select %19, %1175, %1176 : vector<8x128xi1>, vector<8x128xf32>
    %c1_i32_345 = arith.constant 1 : i32
    %1178 = tpu.dynamic_rotate %1177 by %c1_i32_345 dim 0 : vector<8x128xf32>, i32 -> vector<8x128xf32>
    %cst_346 = arith.constant 0.000000e+00 : f32
    %1179 = vector.broadcast %cst_346 : f32 to vector<8x128xf32>
    %1180 = arith.select %28, %1178, %1179 : vector<8x128xi1>, vector<8x128xf32>
    %c11_347 = arith.constant 11 : index
    %1181 = memref.load %arg4[%c11_347] : memref<72xf32, #tpu.memory_space<smem>>
    %1182 = vector.broadcast %1181 : f32 to vector<8x128xf32>
    %1183 = arith.mulf %1180, %1182 : vector<8x128xf32>
    %1184 = arith.addf %1162, %1183 : vector<8x128xf32>
    %c29_348 = arith.constant 29 : index
    %1185 = memref.load %arg4[%c29_348] : memref<72xf32, #tpu.memory_space<smem>>
    %1186 = vector.broadcast %1185 : f32 to vector<8x128xf32>
    %1187 = arith.mulf %1180, %1186 : vector<8x128xf32>
    %1188 = arith.addf %1166, %1187 : vector<8x128xf32>
    %c47_349 = arith.constant 47 : index
    %1189 = memref.load %arg4[%c47_349] : memref<72xf32, #tpu.memory_space<smem>>
    %1190 = vector.broadcast %1189 : f32 to vector<8x128xf32>
    %1191 = arith.mulf %1180, %1190 : vector<8x128xf32>
    %1192 = arith.addf %1170, %1191 : vector<8x128xf32>
    %c65 = arith.constant 65 : index
    %1193 = memref.load %arg4[%c65] : memref<72xf32, #tpu.memory_space<smem>>
    %1194 = vector.broadcast %1193 : f32 to vector<8x128xf32>
    %1195 = arith.mulf %1180, %1194 : vector<8x128xf32>
    %1196 = arith.addf %1174, %1195 : vector<8x128xf32>
    %c14_350 = arith.constant 14 : index
    %1197 = memref.load %arg4[%c14_350] : memref<72xf32, #tpu.memory_space<smem>>
    %1198 = vector.broadcast %1197 : f32 to vector<8x128xf32>
    %1199 = arith.mulf %1177, %1198 : vector<8x128xf32>
    %1200 = arith.addf %1184, %1199 : vector<8x128xf32>
    %c32_351 = arith.constant 32 : index
    %1201 = memref.load %arg4[%c32_351] : memref<72xf32, #tpu.memory_space<smem>>
    %1202 = vector.broadcast %1201 : f32 to vector<8x128xf32>
    %1203 = arith.mulf %1177, %1202 : vector<8x128xf32>
    %1204 = arith.addf %1188, %1203 : vector<8x128xf32>
    %c50_352 = arith.constant 50 : index
    %1205 = memref.load %arg4[%c50_352] : memref<72xf32, #tpu.memory_space<smem>>
    %1206 = vector.broadcast %1205 : f32 to vector<8x128xf32>
    %1207 = arith.mulf %1177, %1206 : vector<8x128xf32>
    %1208 = arith.addf %1192, %1207 : vector<8x128xf32>
    %c68 = arith.constant 68 : index
    %1209 = memref.load %arg4[%c68] : memref<72xf32, #tpu.memory_space<smem>>
    %1210 = vector.broadcast %1209 : f32 to vector<8x128xf32>
    %1211 = arith.mulf %1177, %1210 : vector<8x128xf32>
    %1212 = arith.addf %1196, %1211 : vector<8x128xf32>
    %c7_i32_353 = arith.constant 7 : i32
    %1213 = tpu.dynamic_rotate %1177 by %c7_i32_353 dim 0 : vector<8x128xf32>, i32 -> vector<8x128xf32>
    %cst_354 = arith.constant 0.000000e+00 : f32
    %1214 = vector.broadcast %cst_354 : f32 to vector<8x128xf32>
    %1215 = arith.select %37, %1213, %1214 : vector<8x128xi1>, vector<8x128xf32>
    %c17_355 = arith.constant 17 : index
    %1216 = memref.load %arg4[%c17_355] : memref<72xf32, #tpu.memory_space<smem>>
    %1217 = vector.broadcast %1216 : f32 to vector<8x128xf32>
    %1218 = arith.mulf %1215, %1217 : vector<8x128xf32>
    %1219 = arith.addf %1200, %1218 : vector<8x128xf32>
    %c35_356 = arith.constant 35 : index
    %1220 = memref.load %arg4[%c35_356] : memref<72xf32, #tpu.memory_space<smem>>
    %1221 = vector.broadcast %1220 : f32 to vector<8x128xf32>
    %1222 = arith.mulf %1215, %1221 : vector<8x128xf32>
    %1223 = arith.addf %1204, %1222 : vector<8x128xf32>
    %c53_357 = arith.constant 53 : index
    %1224 = memref.load %arg4[%c53_357] : memref<72xf32, #tpu.memory_space<smem>>
    %1225 = vector.broadcast %1224 : f32 to vector<8x128xf32>
    %1226 = arith.mulf %1215, %1225 : vector<8x128xf32>
    %1227 = arith.addf %1208, %1226 : vector<8x128xf32>
    %c71 = arith.constant 71 : index
    %1228 = memref.load %arg4[%c71] : memref<72xf32, #tpu.memory_space<smem>>
    %1229 = vector.broadcast %1228 : f32 to vector<8x128xf32>
    %1230 = arith.mulf %1215, %1229 : vector<8x128xf32>
    %1231 = arith.addf %1212, %1230 : vector<8x128xf32>
    %c1_i32_358 = arith.constant 1 : i32
    %1232 = tpu.dynamic_rotate %719 by %c1_i32_358 dim 1 : vector<8x128xf32>, i32 -> vector<8x128xf32>
    %cst_359 = arith.constant 0.000000e+00 : f32
    %1233 = vector.broadcast %cst_359 : f32 to vector<8x128xf32>
    %1234 = arith.select %10, %1232, %1233 : vector<8x128xi1>, vector<8x128xf32>
    %c1_i32_360 = arith.constant 1 : i32
    %1235 = tpu.dynamic_rotate %1234 by %c1_i32_360 dim 0 : vector<8x128xf32>, i32 -> vector<8x128xf32>
    %cst_361 = arith.constant 0.000000e+00 : f32
    %1236 = vector.broadcast %cst_361 : f32 to vector<8x128xf32>
    %1237 = arith.select %28, %1235, %1236 : vector<8x128xi1>, vector<8x128xf32>
    %c9_362 = arith.constant 9 : index
    %1238 = memref.load %arg4[%c9_362] : memref<72xf32, #tpu.memory_space<smem>>
    %1239 = vector.broadcast %1238 : f32 to vector<8x128xf32>
    %1240 = arith.mulf %1237, %1239 : vector<8x128xf32>
    %1241 = arith.addf %1051, %1240 : vector<8x128xf32>
    %c27_363 = arith.constant 27 : index
    %1242 = memref.load %arg4[%c27_363] : memref<72xf32, #tpu.memory_space<smem>>
    %1243 = vector.broadcast %1242 : f32 to vector<8x128xf32>
    %1244 = arith.mulf %1237, %1243 : vector<8x128xf32>
    %1245 = arith.addf %1055, %1244 : vector<8x128xf32>
    %c45_364 = arith.constant 45 : index
    %1246 = memref.load %arg4[%c45_364] : memref<72xf32, #tpu.memory_space<smem>>
    %1247 = vector.broadcast %1246 : f32 to vector<8x128xf32>
    %1248 = arith.mulf %1237, %1247 : vector<8x128xf32>
    %1249 = arith.addf %1059, %1248 : vector<8x128xf32>
    %c63_365 = arith.constant 63 : index
    %1250 = memref.load %arg4[%c63_365] : memref<72xf32, #tpu.memory_space<smem>>
    %1251 = vector.broadcast %1250 : f32 to vector<8x128xf32>
    %1252 = arith.mulf %1237, %1251 : vector<8x128xf32>
    %1253 = arith.addf %1063, %1252 : vector<8x128xf32>
    %c12_366 = arith.constant 12 : index
    %1254 = memref.load %arg4[%c12_366] : memref<72xf32, #tpu.memory_space<smem>>
    %1255 = vector.broadcast %1254 : f32 to vector<8x128xf32>
    %1256 = arith.mulf %1234, %1255 : vector<8x128xf32>
    %1257 = arith.addf %1241, %1256 : vector<8x128xf32>
    %c30_367 = arith.constant 30 : index
    %1258 = memref.load %arg4[%c30_367] : memref<72xf32, #tpu.memory_space<smem>>
    %1259 = vector.broadcast %1258 : f32 to vector<8x128xf32>
    %1260 = arith.mulf %1234, %1259 : vector<8x128xf32>
    %1261 = arith.addf %1245, %1260 : vector<8x128xf32>
    %c48_368 = arith.constant 48 : index
    %1262 = memref.load %arg4[%c48_368] : memref<72xf32, #tpu.memory_space<smem>>
    %1263 = vector.broadcast %1262 : f32 to vector<8x128xf32>
    %1264 = arith.mulf %1234, %1263 : vector<8x128xf32>
    %1265 = arith.addf %1249, %1264 : vector<8x128xf32>
    %c66_369 = arith.constant 66 : index
    %1266 = memref.load %arg4[%c66_369] : memref<72xf32, #tpu.memory_space<smem>>
    %1267 = vector.broadcast %1266 : f32 to vector<8x128xf32>
    %1268 = arith.mulf %1234, %1267 : vector<8x128xf32>
    %1269 = arith.addf %1253, %1268 : vector<8x128xf32>
    %c7_i32_370 = arith.constant 7 : i32
    %1270 = tpu.dynamic_rotate %1234 by %c7_i32_370 dim 0 : vector<8x128xf32>, i32 -> vector<8x128xf32>
    %cst_371 = arith.constant 0.000000e+00 : f32
    %1271 = vector.broadcast %cst_371 : f32 to vector<8x128xf32>
    %1272 = arith.select %37, %1270, %1271 : vector<8x128xi1>, vector<8x128xf32>
    %c15_372 = arith.constant 15 : index
    %1273 = memref.load %arg4[%c15_372] : memref<72xf32, #tpu.memory_space<smem>>
    %1274 = vector.broadcast %1273 : f32 to vector<8x128xf32>
    %1275 = arith.mulf %1272, %1274 : vector<8x128xf32>
    %1276 = arith.addf %1257, %1275 : vector<8x128xf32>
    %c33_373 = arith.constant 33 : index
    %1277 = memref.load %arg4[%c33_373] : memref<72xf32, #tpu.memory_space<smem>>
    %1278 = vector.broadcast %1277 : f32 to vector<8x128xf32>
    %1279 = arith.mulf %1272, %1278 : vector<8x128xf32>
    %1280 = arith.addf %1261, %1279 : vector<8x128xf32>
    %c51_374 = arith.constant 51 : index
    %1281 = memref.load %arg4[%c51_374] : memref<72xf32, #tpu.memory_space<smem>>
    %1282 = vector.broadcast %1281 : f32 to vector<8x128xf32>
    %1283 = arith.mulf %1272, %1282 : vector<8x128xf32>
    %1284 = arith.addf %1265, %1283 : vector<8x128xf32>
    %c69_375 = arith.constant 69 : index
    %1285 = memref.load %arg4[%c69_375] : memref<72xf32, #tpu.memory_space<smem>>
    %1286 = vector.broadcast %1285 : f32 to vector<8x128xf32>
    %1287 = arith.mulf %1272, %1286 : vector<8x128xf32>
    %1288 = arith.addf %1269, %1287 : vector<8x128xf32>
    %c1_i32_376 = arith.constant 1 : i32
    %1289 = tpu.dynamic_rotate %719 by %c1_i32_376 dim 0 : vector<8x128xf32>, i32 -> vector<8x128xf32>
    %cst_377 = arith.constant 0.000000e+00 : f32
    %1290 = vector.broadcast %cst_377 : f32 to vector<8x128xf32>
    %1291 = arith.select %28, %1289, %1290 : vector<8x128xi1>, vector<8x128xf32>
    %c10_378 = arith.constant 10 : index
    %1292 = memref.load %arg4[%c10_378] : memref<72xf32, #tpu.memory_space<smem>>
    %1293 = vector.broadcast %1292 : f32 to vector<8x128xf32>
    %1294 = arith.mulf %1291, %1293 : vector<8x128xf32>
    %1295 = arith.addf %1276, %1294 : vector<8x128xf32>
    %c28_379 = arith.constant 28 : index
    %1296 = memref.load %arg4[%c28_379] : memref<72xf32, #tpu.memory_space<smem>>
    %1297 = vector.broadcast %1296 : f32 to vector<8x128xf32>
    %1298 = arith.mulf %1291, %1297 : vector<8x128xf32>
    %1299 = arith.addf %1280, %1298 : vector<8x128xf32>
    %c46_380 = arith.constant 46 : index
    %1300 = memref.load %arg4[%c46_380] : memref<72xf32, #tpu.memory_space<smem>>
    %1301 = vector.broadcast %1300 : f32 to vector<8x128xf32>
    %1302 = arith.mulf %1291, %1301 : vector<8x128xf32>
    %1303 = arith.addf %1284, %1302 : vector<8x128xf32>
    %c64_381 = arith.constant 64 : index
    %1304 = memref.load %arg4[%c64_381] : memref<72xf32, #tpu.memory_space<smem>>
    %1305 = vector.broadcast %1304 : f32 to vector<8x128xf32>
    %1306 = arith.mulf %1291, %1305 : vector<8x128xf32>
    %1307 = arith.addf %1288, %1306 : vector<8x128xf32>
    %c13_382 = arith.constant 13 : index
    %1308 = memref.load %arg4[%c13_382] : memref<72xf32, #tpu.memory_space<smem>>
    %1309 = vector.broadcast %1308 : f32 to vector<8x128xf32>
    %1310 = arith.mulf %719, %1309 : vector<8x128xf32>
    %1311 = arith.addf %1295, %1310 : vector<8x128xf32>
    %c31_383 = arith.constant 31 : index
    %1312 = memref.load %arg4[%c31_383] : memref<72xf32, #tpu.memory_space<smem>>
    %1313 = vector.broadcast %1312 : f32 to vector<8x128xf32>
    %1314 = arith.mulf %719, %1313 : vector<8x128xf32>
    %1315 = arith.addf %1299, %1314 : vector<8x128xf32>
    %c49_384 = arith.constant 49 : index
    %1316 = memref.load %arg4[%c49_384] : memref<72xf32, #tpu.memory_space<smem>>
    %1317 = vector.broadcast %1316 : f32 to vector<8x128xf32>
    %1318 = arith.mulf %719, %1317 : vector<8x128xf32>
    %1319 = arith.addf %1303, %1318 : vector<8x128xf32>
    %c67_385 = arith.constant 67 : index
    %1320 = memref.load %arg4[%c67_385] : memref<72xf32, #tpu.memory_space<smem>>
    %1321 = vector.broadcast %1320 : f32 to vector<8x128xf32>
    %1322 = arith.mulf %719, %1321 : vector<8x128xf32>
    %1323 = arith.addf %1307, %1322 : vector<8x128xf32>
    %c7_i32_386 = arith.constant 7 : i32
    %1324 = tpu.dynamic_rotate %719 by %c7_i32_386 dim 0 : vector<8x128xf32>, i32 -> vector<8x128xf32>
    %cst_387 = arith.constant 0.000000e+00 : f32
    %1325 = vector.broadcast %cst_387 : f32 to vector<8x128xf32>
    %1326 = arith.select %37, %1324, %1325 : vector<8x128xi1>, vector<8x128xf32>
    %c16_388 = arith.constant 16 : index
    %1327 = memref.load %arg4[%c16_388] : memref<72xf32, #tpu.memory_space<smem>>
    %1328 = vector.broadcast %1327 : f32 to vector<8x128xf32>
    %1329 = arith.mulf %1326, %1328 : vector<8x128xf32>
    %1330 = arith.addf %1311, %1329 : vector<8x128xf32>
    %c34_389 = arith.constant 34 : index
    %1331 = memref.load %arg4[%c34_389] : memref<72xf32, #tpu.memory_space<smem>>
    %1332 = vector.broadcast %1331 : f32 to vector<8x128xf32>
    %1333 = arith.mulf %1326, %1332 : vector<8x128xf32>
    %1334 = arith.addf %1315, %1333 : vector<8x128xf32>
    %c52_390 = arith.constant 52 : index
    %1335 = memref.load %arg4[%c52_390] : memref<72xf32, #tpu.memory_space<smem>>
    %1336 = vector.broadcast %1335 : f32 to vector<8x128xf32>
    %1337 = arith.mulf %1326, %1336 : vector<8x128xf32>
    %1338 = arith.addf %1319, %1337 : vector<8x128xf32>
    %c70_391 = arith.constant 70 : index
    %1339 = memref.load %arg4[%c70_391] : memref<72xf32, #tpu.memory_space<smem>>
    %1340 = vector.broadcast %1339 : f32 to vector<8x128xf32>
    %1341 = arith.mulf %1326, %1340 : vector<8x128xf32>
    %1342 = arith.addf %1323, %1341 : vector<8x128xf32>
    %c127_i32_392 = arith.constant 127 : i32
    %1343 = tpu.dynamic_rotate %719 by %c127_i32_392 dim 1 : vector<8x128xf32>, i32 -> vector<8x128xf32>
    %cst_393 = arith.constant 0.000000e+00 : f32
    %1344 = vector.broadcast %cst_393 : f32 to vector<8x128xf32>
    %1345 = arith.select %19, %1343, %1344 : vector<8x128xi1>, vector<8x128xf32>
    %c1_i32_394 = arith.constant 1 : i32
    %1346 = tpu.dynamic_rotate %1345 by %c1_i32_394 dim 0 : vector<8x128xf32>, i32 -> vector<8x128xf32>
    %cst_395 = arith.constant 0.000000e+00 : f32
    %1347 = vector.broadcast %cst_395 : f32 to vector<8x128xf32>
    %1348 = arith.select %28, %1346, %1347 : vector<8x128xi1>, vector<8x128xf32>
    %c11_396 = arith.constant 11 : index
    %1349 = memref.load %arg4[%c11_396] : memref<72xf32, #tpu.memory_space<smem>>
    %1350 = vector.broadcast %1349 : f32 to vector<8x128xf32>
    %1351 = arith.mulf %1348, %1350 : vector<8x128xf32>
    %1352 = arith.addf %1330, %1351 : vector<8x128xf32>
    %c29_397 = arith.constant 29 : index
    %1353 = memref.load %arg4[%c29_397] : memref<72xf32, #tpu.memory_space<smem>>
    %1354 = vector.broadcast %1353 : f32 to vector<8x128xf32>
    %1355 = arith.mulf %1348, %1354 : vector<8x128xf32>
    %1356 = arith.addf %1334, %1355 : vector<8x128xf32>
    %c47_398 = arith.constant 47 : index
    %1357 = memref.load %arg4[%c47_398] : memref<72xf32, #tpu.memory_space<smem>>
    %1358 = vector.broadcast %1357 : f32 to vector<8x128xf32>
    %1359 = arith.mulf %1348, %1358 : vector<8x128xf32>
    %1360 = arith.addf %1338, %1359 : vector<8x128xf32>
    %c65_399 = arith.constant 65 : index
    %1361 = memref.load %arg4[%c65_399] : memref<72xf32, #tpu.memory_space<smem>>
    %1362 = vector.broadcast %1361 : f32 to vector<8x128xf32>
    %1363 = arith.mulf %1348, %1362 : vector<8x128xf32>
    %1364 = arith.addf %1342, %1363 : vector<8x128xf32>
    %c14_400 = arith.constant 14 : index
    %1365 = memref.load %arg4[%c14_400] : memref<72xf32, #tpu.memory_space<smem>>
    %1366 = vector.broadcast %1365 : f32 to vector<8x128xf32>
    %1367 = arith.mulf %1345, %1366 : vector<8x128xf32>
    %1368 = arith.addf %1352, %1367 : vector<8x128xf32>
    %c32_401 = arith.constant 32 : index
    %1369 = memref.load %arg4[%c32_401] : memref<72xf32, #tpu.memory_space<smem>>
    %1370 = vector.broadcast %1369 : f32 to vector<8x128xf32>
    %1371 = arith.mulf %1345, %1370 : vector<8x128xf32>
    %1372 = arith.addf %1356, %1371 : vector<8x128xf32>
    %c50_402 = arith.constant 50 : index
    %1373 = memref.load %arg4[%c50_402] : memref<72xf32, #tpu.memory_space<smem>>
    %1374 = vector.broadcast %1373 : f32 to vector<8x128xf32>
    %1375 = arith.mulf %1345, %1374 : vector<8x128xf32>
    %1376 = arith.addf %1360, %1375 : vector<8x128xf32>
    %c68_403 = arith.constant 68 : index
    %1377 = memref.load %arg4[%c68_403] : memref<72xf32, #tpu.memory_space<smem>>
    %1378 = vector.broadcast %1377 : f32 to vector<8x128xf32>
    %1379 = arith.mulf %1345, %1378 : vector<8x128xf32>
    %1380 = arith.addf %1364, %1379 : vector<8x128xf32>
    %c7_i32_404 = arith.constant 7 : i32
    %1381 = tpu.dynamic_rotate %1345 by %c7_i32_404 dim 0 : vector<8x128xf32>, i32 -> vector<8x128xf32>
    %cst_405 = arith.constant 0.000000e+00 : f32
    %1382 = vector.broadcast %cst_405 : f32 to vector<8x128xf32>
    %1383 = arith.select %37, %1381, %1382 : vector<8x128xi1>, vector<8x128xf32>
    %c17_406 = arith.constant 17 : index
    %1384 = memref.load %arg4[%c17_406] : memref<72xf32, #tpu.memory_space<smem>>
    %1385 = vector.broadcast %1384 : f32 to vector<8x128xf32>
    %1386 = arith.mulf %1383, %1385 : vector<8x128xf32>
    %1387 = arith.addf %1368, %1386 : vector<8x128xf32>
    %c35_407 = arith.constant 35 : index
    %1388 = memref.load %arg4[%c35_407] : memref<72xf32, #tpu.memory_space<smem>>
    %1389 = vector.broadcast %1388 : f32 to vector<8x128xf32>
    %1390 = arith.mulf %1383, %1389 : vector<8x128xf32>
    %1391 = arith.addf %1372, %1390 : vector<8x128xf32>
    %c53_408 = arith.constant 53 : index
    %1392 = memref.load %arg4[%c53_408] : memref<72xf32, #tpu.memory_space<smem>>
    %1393 = vector.broadcast %1392 : f32 to vector<8x128xf32>
    %1394 = arith.mulf %1383, %1393 : vector<8x128xf32>
    %1395 = arith.addf %1376, %1394 : vector<8x128xf32>
    %c71_409 = arith.constant 71 : index
    %1396 = memref.load %arg4[%c71_409] : memref<72xf32, #tpu.memory_space<smem>>
    %1397 = vector.broadcast %1396 : f32 to vector<8x128xf32>
    %1398 = arith.mulf %1383, %1397 : vector<8x128xf32>
    %1399 = arith.addf %1380, %1398 : vector<8x128xf32>
    %1400 = vector.shape_cast %1219 : vector<8x128xf32> to vector<1x8x128xf32>
    %cst_410 = arith.constant dense<0.000000e+00> : vector<1xf32>
    %1401 = vector.multi_reduction <add>, %1400, %cst_410 [1, 2] : vector<1x8x128xf32> to vector<1xf32>
    %1402 = vector.shape_cast %1401 : vector<1xf32> to vector<1x1x1xf32>
    %1403 = vector.extract %1402[0, 0, 0] : f32 from vector<1x1x1xf32>
    %cst_411 = arith.constant 0.000000e+00 : f32
    %1404 = arith.addf %cst_411, %1403 : f32
    %1405 = arith.mulf %1219, %1219 : vector<8x128xf32>
    %1406 = vector.shape_cast %1405 : vector<8x128xf32> to vector<1x8x128xf32>
    %cst_412 = arith.constant dense<0.000000e+00> : vector<1xf32>
    %1407 = vector.multi_reduction <add>, %1406, %cst_412 [1, 2] : vector<1x8x128xf32> to vector<1xf32>
    %1408 = vector.shape_cast %1407 : vector<1xf32> to vector<1x1x1xf32>
    %1409 = vector.extract %1408[0, 0, 0] : f32 from vector<1x1x1xf32>
    %cst_413 = arith.constant 0.000000e+00 : f32
    %1410 = arith.addf %cst_413, %1409 : f32
    %1411 = vector.shape_cast %1387 : vector<8x128xf32> to vector<1x8x128xf32>
    %cst_414 = arith.constant dense<0.000000e+00> : vector<1xf32>
    %1412 = vector.multi_reduction <add>, %1411, %cst_414 [1, 2] : vector<1x8x128xf32> to vector<1xf32>
    %1413 = vector.shape_cast %1412 : vector<1xf32> to vector<1x1x1xf32>
    %1414 = vector.extract %1413[0, 0, 0] : f32 from vector<1x1x1xf32>
    %1415 = arith.addf %1404, %1414 : f32
    %1416 = arith.mulf %1387, %1387 : vector<8x128xf32>
    %1417 = vector.shape_cast %1416 : vector<8x128xf32> to vector<1x8x128xf32>
    %cst_415 = arith.constant dense<0.000000e+00> : vector<1xf32>
    %1418 = vector.multi_reduction <add>, %1417, %cst_415 [1, 2] : vector<1x8x128xf32> to vector<1xf32>
    %1419 = vector.shape_cast %1418 : vector<1xf32> to vector<1x1x1xf32>
    %1420 = vector.extract %1419[0, 0, 0] : f32 from vector<1x1x1xf32>
    %1421 = arith.addf %1410, %1420 : f32
    %cst_416 = arith.constant 4.8828125E-4 : f32
    %1422 = arith.mulf %1415, %cst_416 : f32
    %cst_417 = arith.constant 4.8828125E-4 : f32
    %1423 = arith.mulf %1421, %cst_417 : f32
    %1424 = arith.mulf %1422, %1422 : f32
    %1425 = arith.subf %1423, %1424 : f32
    %cst_418 = arith.constant 9.99999974E-6 : f32
    %1426 = arith.addf %1425, %cst_418 : f32
    %1427 = math.rsqrt %1426 : f32
    %c0_419 = arith.constant 0 : index
    %1428 = memref.load %arg5[%c0_419] : memref<4xf32, #tpu.memory_space<smem>>
    %1429 = arith.mulf %1427, %1428 : f32
    %c0_420 = arith.constant 0 : index
    %1430 = memref.load %arg6[%c0_420] : memref<4xf32, #tpu.memory_space<smem>>
    %1431 = arith.mulf %1422, %1429 : f32
    %1432 = arith.subf %1430, %1431 : f32
    %1433 = vector.broadcast %1429 : f32 to vector<8x128xf32>
    %1434 = arith.mulf %1219, %1433 : vector<8x128xf32>
    %1435 = vector.broadcast %1432 : f32 to vector<8x128xf32>
    %1436 = arith.addf %1434, %1435 : vector<8x128xf32>
    %cst_421 = arith.constant 0.000000e+00 : f32
    %1437 = vector.broadcast %cst_421 : f32 to vector<8x128xf32>
    %1438 = arith.maximumf %1436, %1437 : vector<8x128xf32>
    %1439 = vector.broadcast %1429 : f32 to vector<8x128xf32>
    %1440 = arith.mulf %1387, %1439 : vector<8x128xf32>
    %1441 = vector.broadcast %1432 : f32 to vector<8x128xf32>
    %1442 = arith.addf %1440, %1441 : vector<8x128xf32>
    %cst_422 = arith.constant 0.000000e+00 : f32
    %1443 = vector.broadcast %cst_422 : f32 to vector<8x128xf32>
    %1444 = arith.maximumf %1442, %1443 : vector<8x128xf32>
    %1445 = vector.shape_cast %1223 : vector<8x128xf32> to vector<1x8x128xf32>
    %cst_423 = arith.constant dense<0.000000e+00> : vector<1xf32>
    %1446 = vector.multi_reduction <add>, %1445, %cst_423 [1, 2] : vector<1x8x128xf32> to vector<1xf32>
    %1447 = vector.shape_cast %1446 : vector<1xf32> to vector<1x1x1xf32>
    %1448 = vector.extract %1447[0, 0, 0] : f32 from vector<1x1x1xf32>
    %cst_424 = arith.constant 0.000000e+00 : f32
    %1449 = arith.addf %cst_424, %1448 : f32
    %1450 = arith.mulf %1223, %1223 : vector<8x128xf32>
    %1451 = vector.shape_cast %1450 : vector<8x128xf32> to vector<1x8x128xf32>
    %cst_425 = arith.constant dense<0.000000e+00> : vector<1xf32>
    %1452 = vector.multi_reduction <add>, %1451, %cst_425 [1, 2] : vector<1x8x128xf32> to vector<1xf32>
    %1453 = vector.shape_cast %1452 : vector<1xf32> to vector<1x1x1xf32>
    %1454 = vector.extract %1453[0, 0, 0] : f32 from vector<1x1x1xf32>
    %cst_426 = arith.constant 0.000000e+00 : f32
    %1455 = arith.addf %cst_426, %1454 : f32
    %1456 = vector.shape_cast %1391 : vector<8x128xf32> to vector<1x8x128xf32>
    %cst_427 = arith.constant dense<0.000000e+00> : vector<1xf32>
    %1457 = vector.multi_reduction <add>, %1456, %cst_427 [1, 2] : vector<1x8x128xf32> to vector<1xf32>
    %1458 = vector.shape_cast %1457 : vector<1xf32> to vector<1x1x1xf32>
    %1459 = vector.extract %1458[0, 0, 0] : f32 from vector<1x1x1xf32>
    %1460 = arith.addf %1449, %1459 : f32
    %1461 = arith.mulf %1391, %1391 : vector<8x128xf32>
    %1462 = vector.shape_cast %1461 : vector<8x128xf32> to vector<1x8x128xf32>
    %cst_428 = arith.constant dense<0.000000e+00> : vector<1xf32>
    %1463 = vector.multi_reduction <add>, %1462, %cst_428 [1, 2] : vector<1x8x128xf32> to vector<1xf32>
    %1464 = vector.shape_cast %1463 : vector<1xf32> to vector<1x1x1xf32>
    %1465 = vector.extract %1464[0, 0, 0] : f32 from vector<1x1x1xf32>
    %1466 = arith.addf %1455, %1465 : f32
    %cst_429 = arith.constant 4.8828125E-4 : f32
    %1467 = arith.mulf %1460, %cst_429 : f32
    %cst_430 = arith.constant 4.8828125E-4 : f32
    %1468 = arith.mulf %1466, %cst_430 : f32
    %1469 = arith.mulf %1467, %1467 : f32
    %1470 = arith.subf %1468, %1469 : f32
    %cst_431 = arith.constant 9.99999974E-6 : f32
    %1471 = arith.addf %1470, %cst_431 : f32
    %1472 = math.rsqrt %1471 : f32
    %c1_432 = arith.constant 1 : index
    %1473 = memref.load %arg5[%c1_432] : memref<4xf32, #tpu.memory_space<smem>>
    %1474 = arith.mulf %1472, %1473 : f32
    %c1_433 = arith.constant 1 : index
    %1475 = memref.load %arg6[%c1_433] : memref<4xf32, #tpu.memory_space<smem>>
    %1476 = arith.mulf %1467, %1474 : f32
    %1477 = arith.subf %1475, %1476 : f32
    %1478 = vector.broadcast %1474 : f32 to vector<8x128xf32>
    %1479 = arith.mulf %1223, %1478 : vector<8x128xf32>
    %1480 = vector.broadcast %1477 : f32 to vector<8x128xf32>
    %1481 = arith.addf %1479, %1480 : vector<8x128xf32>
    %cst_434 = arith.constant 0.000000e+00 : f32
    %1482 = vector.broadcast %cst_434 : f32 to vector<8x128xf32>
    %1483 = arith.maximumf %1481, %1482 : vector<8x128xf32>
    %1484 = vector.broadcast %1474 : f32 to vector<8x128xf32>
    %1485 = arith.mulf %1391, %1484 : vector<8x128xf32>
    %1486 = vector.broadcast %1477 : f32 to vector<8x128xf32>
    %1487 = arith.addf %1485, %1486 : vector<8x128xf32>
    %cst_435 = arith.constant 0.000000e+00 : f32
    %1488 = vector.broadcast %cst_435 : f32 to vector<8x128xf32>
    %1489 = arith.maximumf %1487, %1488 : vector<8x128xf32>
    %1490 = vector.shape_cast %1227 : vector<8x128xf32> to vector<1x8x128xf32>
    %cst_436 = arith.constant dense<0.000000e+00> : vector<1xf32>
    %1491 = vector.multi_reduction <add>, %1490, %cst_436 [1, 2] : vector<1x8x128xf32> to vector<1xf32>
    %1492 = vector.shape_cast %1491 : vector<1xf32> to vector<1x1x1xf32>
    %1493 = vector.extract %1492[0, 0, 0] : f32 from vector<1x1x1xf32>
    %cst_437 = arith.constant 0.000000e+00 : f32
    %1494 = arith.addf %cst_437, %1493 : f32
    %1495 = arith.mulf %1227, %1227 : vector<8x128xf32>
    %1496 = vector.shape_cast %1495 : vector<8x128xf32> to vector<1x8x128xf32>
    %cst_438 = arith.constant dense<0.000000e+00> : vector<1xf32>
    %1497 = vector.multi_reduction <add>, %1496, %cst_438 [1, 2] : vector<1x8x128xf32> to vector<1xf32>
    %1498 = vector.shape_cast %1497 : vector<1xf32> to vector<1x1x1xf32>
    %1499 = vector.extract %1498[0, 0, 0] : f32 from vector<1x1x1xf32>
    %cst_439 = arith.constant 0.000000e+00 : f32
    %1500 = arith.addf %cst_439, %1499 : f32
    %1501 = vector.shape_cast %1395 : vector<8x128xf32> to vector<1x8x128xf32>
    %cst_440 = arith.constant dense<0.000000e+00> : vector<1xf32>
    %1502 = vector.multi_reduction <add>, %1501, %cst_440 [1, 2] : vector<1x8x128xf32> to vector<1xf32>
    %1503 = vector.shape_cast %1502 : vector<1xf32> to vector<1x1x1xf32>
    %1504 = vector.extract %1503[0, 0, 0] : f32 from vector<1x1x1xf32>
    %1505 = arith.addf %1494, %1504 : f32
    %1506 = arith.mulf %1395, %1395 : vector<8x128xf32>
    %1507 = vector.shape_cast %1506 : vector<8x128xf32> to vector<1x8x128xf32>
    %cst_441 = arith.constant dense<0.000000e+00> : vector<1xf32>
    %1508 = vector.multi_reduction <add>, %1507, %cst_441 [1, 2] : vector<1x8x128xf32> to vector<1xf32>
    %1509 = vector.shape_cast %1508 : vector<1xf32> to vector<1x1x1xf32>
    %1510 = vector.extract %1509[0, 0, 0] : f32 from vector<1x1x1xf32>
    %1511 = arith.addf %1500, %1510 : f32
    %cst_442 = arith.constant 4.8828125E-4 : f32
    %1512 = arith.mulf %1505, %cst_442 : f32
    %cst_443 = arith.constant 4.8828125E-4 : f32
    %1513 = arith.mulf %1511, %cst_443 : f32
    %1514 = arith.mulf %1512, %1512 : f32
    %1515 = arith.subf %1513, %1514 : f32
    %cst_444 = arith.constant 9.99999974E-6 : f32
    %1516 = arith.addf %1515, %cst_444 : f32
    %1517 = math.rsqrt %1516 : f32
    %c2_445 = arith.constant 2 : index
    %1518 = memref.load %arg5[%c2_445] : memref<4xf32, #tpu.memory_space<smem>>
    %1519 = arith.mulf %1517, %1518 : f32
    %c2_446 = arith.constant 2 : index
    %1520 = memref.load %arg6[%c2_446] : memref<4xf32, #tpu.memory_space<smem>>
    %1521 = arith.mulf %1512, %1519 : f32
    %1522 = arith.subf %1520, %1521 : f32
    %1523 = vector.broadcast %1519 : f32 to vector<8x128xf32>
    %1524 = arith.mulf %1227, %1523 : vector<8x128xf32>
    %1525 = vector.broadcast %1522 : f32 to vector<8x128xf32>
    %1526 = arith.addf %1524, %1525 : vector<8x128xf32>
    %cst_447 = arith.constant 0.000000e+00 : f32
    %1527 = vector.broadcast %cst_447 : f32 to vector<8x128xf32>
    %1528 = arith.maximumf %1526, %1527 : vector<8x128xf32>
    %1529 = vector.broadcast %1519 : f32 to vector<8x128xf32>
    %1530 = arith.mulf %1395, %1529 : vector<8x128xf32>
    %1531 = vector.broadcast %1522 : f32 to vector<8x128xf32>
    %1532 = arith.addf %1530, %1531 : vector<8x128xf32>
    %cst_448 = arith.constant 0.000000e+00 : f32
    %1533 = vector.broadcast %cst_448 : f32 to vector<8x128xf32>
    %1534 = arith.maximumf %1532, %1533 : vector<8x128xf32>
    %1535 = vector.shape_cast %1231 : vector<8x128xf32> to vector<1x8x128xf32>
    %cst_449 = arith.constant dense<0.000000e+00> : vector<1xf32>
    %1536 = vector.multi_reduction <add>, %1535, %cst_449 [1, 2] : vector<1x8x128xf32> to vector<1xf32>
    %1537 = vector.shape_cast %1536 : vector<1xf32> to vector<1x1x1xf32>
    %1538 = vector.extract %1537[0, 0, 0] : f32 from vector<1x1x1xf32>
    %cst_450 = arith.constant 0.000000e+00 : f32
    %1539 = arith.addf %cst_450, %1538 : f32
    %1540 = arith.mulf %1231, %1231 : vector<8x128xf32>
    %1541 = vector.shape_cast %1540 : vector<8x128xf32> to vector<1x8x128xf32>
    %cst_451 = arith.constant dense<0.000000e+00> : vector<1xf32>
    %1542 = vector.multi_reduction <add>, %1541, %cst_451 [1, 2] : vector<1x8x128xf32> to vector<1xf32>
    %1543 = vector.shape_cast %1542 : vector<1xf32> to vector<1x1x1xf32>
    %1544 = vector.extract %1543[0, 0, 0] : f32 from vector<1x1x1xf32>
    %cst_452 = arith.constant 0.000000e+00 : f32
    %1545 = arith.addf %cst_452, %1544 : f32
    %1546 = vector.shape_cast %1399 : vector<8x128xf32> to vector<1x8x128xf32>
    %cst_453 = arith.constant dense<0.000000e+00> : vector<1xf32>
    %1547 = vector.multi_reduction <add>, %1546, %cst_453 [1, 2] : vector<1x8x128xf32> to vector<1xf32>
    %1548 = vector.shape_cast %1547 : vector<1xf32> to vector<1x1x1xf32>
    %1549 = vector.extract %1548[0, 0, 0] : f32 from vector<1x1x1xf32>
    %1550 = arith.addf %1539, %1549 : f32
    %1551 = arith.mulf %1399, %1399 : vector<8x128xf32>
    %1552 = vector.shape_cast %1551 : vector<8x128xf32> to vector<1x8x128xf32>
    %cst_454 = arith.constant dense<0.000000e+00> : vector<1xf32>
    %1553 = vector.multi_reduction <add>, %1552, %cst_454 [1, 2] : vector<1x8x128xf32> to vector<1xf32>
    %1554 = vector.shape_cast %1553 : vector<1xf32> to vector<1x1x1xf32>
    %1555 = vector.extract %1554[0, 0, 0] : f32 from vector<1x1x1xf32>
    %1556 = arith.addf %1545, %1555 : f32
    %cst_455 = arith.constant 4.8828125E-4 : f32
    %1557 = arith.mulf %1550, %cst_455 : f32
    %cst_456 = arith.constant 4.8828125E-4 : f32
    %1558 = arith.mulf %1556, %cst_456 : f32
    %1559 = arith.mulf %1557, %1557 : f32
    %1560 = arith.subf %1558, %1559 : f32
    %cst_457 = arith.constant 9.99999974E-6 : f32
    %1561 = arith.addf %1560, %cst_457 : f32
    %1562 = math.rsqrt %1561 : f32
    %c3_458 = arith.constant 3 : index
    %1563 = memref.load %arg5[%c3_458] : memref<4xf32, #tpu.memory_space<smem>>
    %1564 = arith.mulf %1562, %1563 : f32
    %c3_459 = arith.constant 3 : index
    %1565 = memref.load %arg6[%c3_459] : memref<4xf32, #tpu.memory_space<smem>>
    %1566 = arith.mulf %1557, %1564 : f32
    %1567 = arith.subf %1565, %1566 : f32
    %1568 = vector.broadcast %1564 : f32 to vector<8x128xf32>
    %1569 = arith.mulf %1231, %1568 : vector<8x128xf32>
    %1570 = vector.broadcast %1567 : f32 to vector<8x128xf32>
    %1571 = arith.addf %1569, %1570 : vector<8x128xf32>
    %cst_460 = arith.constant 0.000000e+00 : f32
    %1572 = vector.broadcast %cst_460 : f32 to vector<8x128xf32>
    %1573 = arith.maximumf %1571, %1572 : vector<8x128xf32>
    %1574 = vector.broadcast %1564 : f32 to vector<8x128xf32>
    %1575 = arith.mulf %1399, %1574 : vector<8x128xf32>
    %1576 = vector.broadcast %1567 : f32 to vector<8x128xf32>
    %1577 = arith.addf %1575, %1576 : vector<8x128xf32>
    %cst_461 = arith.constant 0.000000e+00 : f32
    %1578 = vector.broadcast %cst_461 : f32 to vector<8x128xf32>
    %1579 = arith.maximumf %1577, %1578 : vector<8x128xf32>
    %1580 = tpu.concatenate %1438, %1483, %1528, %1573, %1444, %1489, %1534, %1579 in 0 : vector<8x128xf32>, vector<8x128xf32>, vector<8x128xf32>, vector<8x128xf32>, vector<8x128xf32>, vector<8x128xf32>, vector<8x128xf32>, vector<8x128xf32> -> vector<64x128xf32>
    %c0_462 = arith.constant 0 : index
    %c0_463 = arith.constant 0 : index
    %1581 = vector.load %arg7[%c0_462, %c0_463] : memref<128x10xf32, #tpu.memory_space<vmem>>, vector<128x10xf32>
    %cst_464 = arith.constant dense<0.000000e+00> : vector<64x10xf32>
    %1582 = tpu.matmul %1580, %1581, %cst_464 {dimension_numbers = #tpu.dot_dimension_numbers<[1], [0], [0], [1], [0, 0, 1, 1], [], []>} : vector<64x128xf32>, vector<128x10xf32>, vector<64x10xf32> -> vector<64x10xf32>
    %c0_465 = arith.constant 0 : index
    %c0_466 = arith.constant 0 : index
    %1583 = vector.load %arg8[%c0_465, %c0_466] : memref<1x10xf32, #tpu.memory_space<vmem>>, vector<1x10xf32>
    %1584 = vector.broadcast %1583 : vector<1x10xf32> to vector<64x10xf32>
    %1585 = arith.addf %1582, %1584 : vector<64x10xf32>
    %1586 = vector.extract_strided_slice %1585 {offsets = [0, 0], sizes = [8, 10], strides = [1, 1]} : vector<64x10xf32> to vector<8x10xf32>
    %c0_467 = arith.constant 0 : index
    %c0_468 = arith.constant 0 : index
    %c0_469 = arith.constant 0 : index
    %c0_470 = arith.constant 0 : index
    %1587 = vector.load %arg9[%c0_467, %c0_468, %c0_469, %c0_470] : memref<2x4x8x10xf32, #tpu.memory_space<vmem>>, vector<1x1x8x10xf32>
    %1588 = vector.shape_cast %1587 : vector<1x1x8x10xf32> to vector<8x10xf32>
    %1589 = vector.shape_cast %1586 : vector<8x10xf32> to vector<1x1x8x10xf32>
    tpu.vector_store %arg9[%c0_467, %c0_468, %c0_469, %c0_470], %1589 {strides = array<i32>} : memref<2x4x8x10xf32, #tpu.memory_space<vmem>>, vector<1x1x8x10xf32>,
    %1590 = vector.extract_strided_slice %1585 {offsets = [8, 0], sizes = [8, 10], strides = [1, 1]} : vector<64x10xf32> to vector<8x10xf32>
    %c0_471 = arith.constant 0 : index
    %c1_472 = arith.constant 1 : index
    %c0_473 = arith.constant 0 : index
    %c0_474 = arith.constant 0 : index
    %1591 = vector.load %arg9[%c0_471, %c1_472, %c0_473, %c0_474] : memref<2x4x8x10xf32, #tpu.memory_space<vmem>>, vector<1x1x8x10xf32>
    %1592 = vector.shape_cast %1591 : vector<1x1x8x10xf32> to vector<8x10xf32>
    %1593 = vector.shape_cast %1590 : vector<8x10xf32> to vector<1x1x8x10xf32>
    tpu.vector_store %arg9[%c0_471, %c1_472, %c0_473, %c0_474], %1593 {strides = array<i32>} : memref<2x4x8x10xf32, #tpu.memory_space<vmem>>, vector<1x1x8x10xf32>,
    %1594 = vector.extract_strided_slice %1585 {offsets = [16, 0], sizes = [8, 10], strides = [1, 1]} : vector<64x10xf32> to vector<8x10xf32>
    %c0_475 = arith.constant 0 : index
    %c2_476 = arith.constant 2 : index
    %c0_477 = arith.constant 0 : index
    %c0_478 = arith.constant 0 : index
    %1595 = vector.load %arg9[%c0_475, %c2_476, %c0_477, %c0_478] : memref<2x4x8x10xf32, #tpu.memory_space<vmem>>, vector<1x1x8x10xf32>
    %1596 = vector.shape_cast %1595 : vector<1x1x8x10xf32> to vector<8x10xf32>
    %1597 = vector.shape_cast %1594 : vector<8x10xf32> to vector<1x1x8x10xf32>
    tpu.vector_store %arg9[%c0_475, %c2_476, %c0_477, %c0_478], %1597 {strides = array<i32>} : memref<2x4x8x10xf32, #tpu.memory_space<vmem>>, vector<1x1x8x10xf32>,
    %1598 = vector.extract_strided_slice %1585 {offsets = [24, 0], sizes = [8, 10], strides = [1, 1]} : vector<64x10xf32> to vector<8x10xf32>
    %c0_479 = arith.constant 0 : index
    %c3_480 = arith.constant 3 : index
    %c0_481 = arith.constant 0 : index
    %c0_482 = arith.constant 0 : index
    %1599 = vector.load %arg9[%c0_479, %c3_480, %c0_481, %c0_482] : memref<2x4x8x10xf32, #tpu.memory_space<vmem>>, vector<1x1x8x10xf32>
    %1600 = vector.shape_cast %1599 : vector<1x1x8x10xf32> to vector<8x10xf32>
    %1601 = vector.shape_cast %1598 : vector<8x10xf32> to vector<1x1x8x10xf32>
    tpu.vector_store %arg9[%c0_479, %c3_480, %c0_481, %c0_482], %1601 {strides = array<i32>} : memref<2x4x8x10xf32, #tpu.memory_space<vmem>>, vector<1x1x8x10xf32>,
    %1602 = vector.extract_strided_slice %1585 {offsets = [32, 0], sizes = [8, 10], strides = [1, 1]} : vector<64x10xf32> to vector<8x10xf32>
    %c1_483 = arith.constant 1 : index
    %c0_484 = arith.constant 0 : index
    %c0_485 = arith.constant 0 : index
    %c0_486 = arith.constant 0 : index
    %1603 = vector.load %arg9[%c1_483, %c0_484, %c0_485, %c0_486] : memref<2x4x8x10xf32, #tpu.memory_space<vmem>>, vector<1x1x8x10xf32>
    %1604 = vector.shape_cast %1603 : vector<1x1x8x10xf32> to vector<8x10xf32>
    %1605 = vector.shape_cast %1602 : vector<8x10xf32> to vector<1x1x8x10xf32>
    tpu.vector_store %arg9[%c1_483, %c0_484, %c0_485, %c0_486], %1605 {strides = array<i32>} : memref<2x4x8x10xf32, #tpu.memory_space<vmem>>, vector<1x1x8x10xf32>,
    %1606 = vector.extract_strided_slice %1585 {offsets = [40, 0], sizes = [8, 10], strides = [1, 1]} : vector<64x10xf32> to vector<8x10xf32>
    %c1_487 = arith.constant 1 : index
    %c1_488 = arith.constant 1 : index
    %c0_489 = arith.constant 0 : index
    %c0_490 = arith.constant 0 : index
    %1607 = vector.load %arg9[%c1_487, %c1_488, %c0_489, %c0_490] : memref<2x4x8x10xf32, #tpu.memory_space<vmem>>, vector<1x1x8x10xf32>
    %1608 = vector.shape_cast %1607 : vector<1x1x8x10xf32> to vector<8x10xf32>
    %1609 = vector.shape_cast %1606 : vector<8x10xf32> to vector<1x1x8x10xf32>
    tpu.vector_store %arg9[%c1_487, %c1_488, %c0_489, %c0_490], %1609 {strides = array<i32>} : memref<2x4x8x10xf32, #tpu.memory_space<vmem>>, vector<1x1x8x10xf32>,
    %1610 = vector.extract_strided_slice %1585 {offsets = [48, 0], sizes = [8, 10], strides = [1, 1]} : vector<64x10xf32> to vector<8x10xf32>
    %c1_491 = arith.constant 1 : index
    %c2_492 = arith.constant 2 : index
    %c0_493 = arith.constant 0 : index
    %c0_494 = arith.constant 0 : index
    %1611 = vector.load %arg9[%c1_491, %c2_492, %c0_493, %c0_494] : memref<2x4x8x10xf32, #tpu.memory_space<vmem>>, vector<1x1x8x10xf32>
    %1612 = vector.shape_cast %1611 : vector<1x1x8x10xf32> to vector<8x10xf32>
    %1613 = vector.shape_cast %1610 : vector<8x10xf32> to vector<1x1x8x10xf32>
    tpu.vector_store %arg9[%c1_491, %c2_492, %c0_493, %c0_494], %1613 {strides = array<i32>} : memref<2x4x8x10xf32, #tpu.memory_space<vmem>>, vector<1x1x8x10xf32>,
    %1614 = vector.extract_strided_slice %1585 {offsets = [56, 0], sizes = [8, 10], strides = [1, 1]} : vector<64x10xf32> to vector<8x10xf32>
    %c1_495 = arith.constant 1 : index
    %c3_496 = arith.constant 3 : index
    %c0_497 = arith.constant 0 : index
    %c0_498 = arith.constant 0 : index
    %1615 = vector.load %arg9[%c1_495, %c3_496, %c0_497, %c0_498] : memref<2x4x8x10xf32, #tpu.memory_space<vmem>>, vector<1x1x8x10xf32>
    %1616 = vector.shape_cast %1615 : vector<1x1x8x10xf32> to vector<8x10xf32>
    %1617 = vector.shape_cast %1614 : vector<8x10xf32> to vector<1x1x8x10xf32>
    tpu.vector_store %arg9[%c1_495, %c3_496, %c0_497, %c0_498], %1617 {strides = array<i32>} : memref<2x4x8x10xf32, #tpu.memory_space<vmem>>, vector<1x1x8x10xf32>,
    return
  }
}

</mosaic_0001>

<bundles_post_ra>
// kernel: tpu_custom_call.1
= control target key start
LH: loop header
LB: loop body
LE: loop exit
PB: predicated region body
PF: predicated region fallthrough
CT: control target
= control target key end

     0   :  { %s3666_s0 = inlined_call_operand.vmem [shape: f32[2,3,8,128], index: 0, kind: input, shape index: {}]   ;;  %s3667_s1 = inlined_call_operand.vmem [shape: f32[54], index: 1, kind: input, shape index: {}]   ;;  %s3668_s2 = inlined_call_operand.vmem [shape: f32[2], index: 2, kind: input, shape index: {}]   ;;  %s3669_s3 = inlined_call_operand.vmem [shape: f32[2], index: 3, kind: input, shape index: {}]   ;;  %s3670_s4 = inlined_call_operand.vmem [shape: f32[72], index: 4, kind: input, shape index: {}]   ;;  %s3671_s5 = inlined_call_operand.vmem [shape: f32[4], index: 5, kind: input, shape index: {}]   ;;  %s3672_s6 = inlined_call_operand.vmem [shape: f32[4], index: 6, kind: input, shape index: {}]   ;;  %s3673_s7 = inlined_call_operand.vmem [shape: f32[128,10], index: 7, kind: input, shape index: {}]   ;;  %s3674_s8 = inlined_call_operand.vmem [shape: f32[1,10], index: 8, kind: input, shape index: {}]   ;;  %s3675_s9 = inlined_call_operand.hbm [shape: f32[2,4,8,10], index: 9, kind: output, shape index: {}]  }
   0x1   :  { %3783 = sst [smem:[#allocation67_spill]] %s3673_s7 }
   0x2   :  { %3784 = sst [smem:[#allocation68_spill]] %s3674_s8 }
   0x3   :  { %3785 = sst [smem:[#allocation69_spill]] %s3675_s9 }
   0x4   :  { %14 = vsyncpa [#allocation4], 0 }
   0x5   :  { %15 = vsyncpa [#allocation6], 0 }
   0x6   :  { %16 = vsyncpa [#allocation9], 0 }
   0x7   :  { %17 = vsyncpa [#allocation12], 0  ;;  %s37_s11 = sshll.u32 %s3668_s2, 4  ;;  %s38_s11 = int_to_ptr.vmem [resolvable:$true] %s37_s11 }
   0x8   :  { %18 = vsyncpa [#allocation3], 0  ;;  %s57_s14 = sshll.u32 %s3670_s4, 4  ;;  %s1934_s15 = scalar_lea.vmem %s38_s11, 16  ;;  %s58_s14 = int_to_ptr.vmem [resolvable:$true] %s57_s14 }
   0x9   :  { %p1935_p0 = scmp.ne.s32.totalorder %s38_s11, %s1934_s15  ;;  %p1939_p1 = scmp.lt.s32.totalorder %s38_s11, %s38_s11 }
   0xa   :  { %p1940_p2 = scmp.lt.s32.totalorder %s1934_s15, %s1934_s15 }
   0xc   :  { %p1941_p3 = por %p1940_p2, %p1939_p1 }
   0xe   :  { %p1942_p4 = pnand %p1941_p3, %p1935_p0 }
  0x10   :  { %1945 = shalt.err (!%p1942_p4)
}
  0x11   :  { %s2036_s16 = smov [#allocation5]   ;;  %s1946_s17 = scalar_lea.vmem %s58_s14, 16 }
  0x12   :  { %40 = dma.vmem_to_smem %s38_s11, 16, %s2036_s16, [#allocation6]  }
  0x13   :  { %p1947_p5 = scmp.ne.s32.totalorder %s58_s14, %s1946_s17  ;;  %p1951_p6 = scmp.lt.s32.totalorder %s58_s14, %s58_s14 }
  0x14   :  { %p1952_p7 = scmp.lt.s32.totalorder %s1946_s17, %s1946_s17 }
  0x16   :  { %p1953_p8 = por %p1952_p7, %p1951_p6 }
  0x18   :  { %p1954_p9 = pnand %p1953_p8, %p1947_p5 }
  0x1a   :  { %1957 = shalt.err (!%p1954_p9)
}
  0x1b   :  { %s2037_s2 = smov [#allocation8]   ;;  %s27_s19 = sshll.u32 %s3667_s1, 4  ;;  %s28_s19 = int_to_ptr.vmem [resolvable:$true] %s27_s19 }
  0x1c   :  { %60 = dma.vmem_to_smem %s58_s14, 16, %s2037_s2, [#allocation9]  }
  0x1d   :  { %s47_s22 = sshll.u32 %s3669_s3, 4  ;;  %s1958_s23 = scalar_lea.vmem %s28_s19, 16  ;;  %s48_s22 = int_to_ptr.vmem [resolvable:$true] %s47_s22 }
  0x1e   :  { %p1959_p10 = scmp.ne.s32.totalorder %s28_s19, %s1958_s23  ;;  %p1963_p11 = scmp.lt.s32.totalorder %s28_s19, %s28_s19 }
  0x1f   :  { %p1964_p12 = scmp.lt.s32.totalorder %s1958_s23, %s1958_s23 }
  0x21   :  { %p1965_p13 = por %p1964_p12, %p1963_p11 }
  0x23   :  { %p1966_p0 = pnand %p1965_p13, %p1959_p10 }
  0x25   :  { %1969 = shalt.err (!%p1966_p0)
}
  0x26   :  { %s2038_s24 = smov [#allocation2]   ;;  %s1970_s25 = scalar_lea.vmem %s48_s22, 16 }
  0x27   :  { %30 = dma.vmem_to_smem %s28_s19, 16, %s2038_s24, [#allocation4]  }
  0x28   :  { %p1971_p1 = scmp.ne.s32.totalorder %s48_s22, %s1970_s25  ;;  %p1975_p2 = scmp.lt.s32.totalorder %s48_s22, %s48_s22 }
  0x29   :  { %p1976_p3 = scmp.lt.s32.totalorder %s1970_s25, %s1970_s25 }
  0x2b   :  { %p1977_p4 = por %p1976_p3, %p1975_p2 }
  0x2d   :  { %p1978_p5 = pnand %p1977_p4, %p1971_p1 }
  0x2f   :  { %1981 = shalt.err (!%p1978_p5)
}
  0x30   :  { %s2039_s1 = smov [#allocation7]   ;;  %s67_s27 = sshll.u32 %s3671_s5, 4  ;;  %s68_s27 = int_to_ptr.vmem [resolvable:$true] %s67_s27 }
  0x31   :  { %50 = dma.vmem_to_smem %s48_s22, 16, %s2039_s1, [#allocation6]  }
  0x32   :  { %s77_s30 = sshll.u32 %s3672_s6, 4  ;;  %s1982_s10 = scalar_lea.vmem %s68_s27, 16  ;;  %s78_s30 = int_to_ptr.vmem [resolvable:$true] %s77_s30 }
  0x33   :  { %p1983_p6 = scmp.ne.s32.totalorder %s68_s27, %s1982_s10  ;;  %p1987_p7 = scmp.lt.s32.totalorder %s68_s27, %s68_s27 }
  0x34   :  { %p1988_p8 = scmp.lt.s32.totalorder %s1982_s10, %s1982_s10 }
  0x36   :  { %p1989_p9 = por %p1988_p8, %p1987_p7 }
  0x38   :  { %p1990_p10 = pnand %p1989_p9, %p1983_p6 }
  0x3a   :  { %1993 = shalt.err (!%p1990_p10)
}
  0x3b   :  { %s2040_s11 = smov [#allocation10]   ;;  %s1994_s12 = scalar_lea.vmem %s78_s30, 16 }
  0x3c   :  { %70 = dma.vmem_to_smem %s68_s27, 16, %s2040_s11, [#allocation9]  }
  0x3d   :  { %p1995_p11 = scmp.ne.s32.totalorder %s78_s30, %s1994_s12  ;;  %p1999_p12 = scmp.lt.s32.totalorder %s78_s30, %s78_s30 }
  0x3e   :  { %p2000_p13 = scmp.lt.s32.totalorder %s1994_s12, %s1994_s12 }
  0x40   :  { %p2001_p0 = por %p2000_p13, %p1999_p12 }
  0x42   :  { %p2002_p1 = pnand %p2001_p0, %p1995_p11 }
  0x44   :  { %2005 = shalt.err (!%p2002_p1)
}
  0x45   :  { %s2041_s5 = smov [#allocation11]  }
  0x46   :  { %80 = dma.vmem_to_smem %s78_s30, 16, %s2041_s5, [#allocation12]  }
  0x47   :  { %2026 = dma.done.wait [#allocation4], 16  }
  0x48   :  { %2027 = vsyncadd [#allocation4], 4294967280 }
  0x49   :  { %2028 = dma.done.wait [#allocation6], 32  }
  0x4a   :  { %2029 = vsyncadd [#allocation6], 4294967264 }
  0x4b   :  { %2030 = dma.done.wait [#allocation9], 32  }
  0x4c   :  { %2031 = vsyncadd [#allocation9], 4294967264 }
  0x4d   :  { %2032 = dma.done.wait [#allocation12], 16  }
  0x4e   :  { %2033 = vsyncadd [#allocation12], 4294967280 }
  0x4f   :  { %103 = sfence }
  0x50   :  { %v2118_v0 = vld [vmem:[%s3666_s0] sm:$0xff]  ;;  %s3678_s14 = smov 1   ;;  %s3676_s15 = smov 127   ;;  %v2127_v1 = vld [vmem:[%s3666_s0 + $0x18] sm:$0xff]  ;;  %v2136_v2 = vld [vmem:[%s3666_s0 + $0x8] sm:$0xff]  ;;  %v104_v6 = vlaneseq  ;;  %vm1577_vm4 = vcmask 80896  }
  0x51   :  { %125 = vrot.lane.b32.xlu0 %v2118_v0, %s3678_s14  ;;  %184 = vrot.lane.b32.xlu1 %v2118_v0, %s3676_s15  ;;  %v2141_v3 = vld [vmem:[%s3666_s0 + $0x20] sm:$0xff]  ;;  %v2154_v4 = vld [vmem:[%s3666_s0 + $0x10] sm:$0xff]  ;;  %s2169_s24 = sld [smem:[#allocation2]]  ;;  %v156_v11 = vrot.slane %v2118_v0, 7  ;;  %v236_v12 = vrot.slane %v2127_v1, 7  ;;  %v174_v13 = vrot.slane %v2118_v0, 1 }
  0x52   :  { %v2159_v5 = vld [vmem:[%s3666_s0 + $0x28] sm:$0xff]  ;;  %s2171_s25 = sld [smem:[#allocation2 + $0x1b]]  ;;  %v107_v7 = vshrl.u32 %v104_v6, 7  ;;  %v105_v8 = vand.u32 127, %v104_v6  ;;  %v246_v14 = vrot.slane %v2127_v1, 1  ;;  %v304_v25 = vrot.slane %v2136_v2, 7 }
  0x53   :  { %3786 = vst [vmem:[#allocation19_spill] sm:$0xff] %v2159_v5  ;;  %s2173_s1 = sld [smem:[#allocation2 + $0x3]]  ;;  %v384_v37 = vrot.slane %v2141_v3, 7  ;;  %v322_v41 = vrot.slane %v2136_v2, 1  ;;  %v394_v45 = vrot.slane %v2141_v3, 1 }
  0x54   :  { %s2175_s0 = sld [smem:[#allocation2 + $0x1e]]  ;;  %v2225_v9 = vadd.s32 4294967295, %v107_v7  ;;  %v2227_v10 = vadd.s32 1, %v107_v7  ;;  %v2239_v15 = vadd.s32 4294967295, %v105_v8  ;;  %v2246_v17 = vadd.s32 1, %v105_v8 }
  0x55   :  { %217 = vrot.lane.b32.xlu0 %v2127_v1, %s3678_s14  ;;  %252 = vrot.lane.b32.xlu1 %v2127_v1, %s3676_s15  ;;  %s2177_s3 = sld [smem:[#allocation2 + $0x6]] }
  0x56   :  { %s2179_s26 = sld [smem:[#allocation2 + $0x21]]  ;;  %vm117_vm0 = vcmp.ge.s32.totalorder %v2225_v9, 0  ;;  %vm122_vm1 = vcmp.lt.s32.totalorder %v2227_v10, 8  ;;  %vm109_vm2 = vcmp.ge.s32.totalorder %v2239_v15, 0  ;;  %vm114_vm3 = vcmp.lt.s32.totalorder %v2246_v17, 128 }
  0x57   :  { %3787 = sst [smem:[#allocation20_spill]] %s2169_s24  ;;  %v3704_v16 = vstv %s2169_s24  ;;  %v157_v19 = vsel %vm117_vm0, %v156_v11, 0.0  ;;  %v237_v20 = vsel %vm117_vm0, %v236_v12, 0.0  ;;  %v175_v21 = vsel %vm122_vm1, %v174_v13, 0.0 }
  0x58   :  { %3788 = sst [smem:[#allocation21_spill]] %s2171_s25  ;;  %v3707_v22 = vstv %s2171_s25  ;;  %v247_v24 = vsel %vm122_vm1, %v246_v14, 0.0  ;;  %v305_v40 = vsel %vm117_vm0, %v304_v25, 0.0  ;;  %v385_v53 = vsel %vm117_vm0, %v384_v37, 0.0 }
  0x59   :  { %273 = vrot.lane.b32.xlu0 %v2136_v2, %s3678_s14  ;;  %365 = vrot.lane.b32.xlu1 %v2141_v3, %s3678_s14  ;;  %s2181_s27 = sld [smem:[#allocation2 + $0x1]]  ;;  %v139_v26 = vstv %s2173_s1  ;;  %v323_v57 = vsel %vm122_vm1, %v322_v41, 0.0  ;;  %v395_v61 = vsel %vm122_vm1, %v394_v45, 0.0  ;;  %v542_v37 = vrot.slane %v2159_v5, 1 }
  0x5a   :  { %s2183_s28 = sld [smem:[#allocation2 + $0x1c]]  ;;  %v143_v27 = vstv %s2175_s0 }
  0x5b   :  { %s2185_s29 = sld [smem:[#allocation2 + $0x4]]  ;;  %v3708_v28 = vstv %s2177_s3 }
  0x5c   :  { %3789 = sst [smem:[#allocation22_spill]] %s2179_s26  ;;  %v3711_v30 = vstv %s2179_s26 }
  0x5d   :  { %332 = vrot.lane.b32.xlu0 %v2136_v2, %s3676_s15  ;;  %400 = vrot.lane.b32.xlu1 %v2141_v3, %s3676_s15  ;;  %s2187_s30 = sld [smem:[#allocation2 + $0x1f]] }
  0x5e   :  { %s2189_s10 = sld [smem:[#allocation2 + $0x7]] }
  0x5f   :  { %s2191_s11 = sld [smem:[#allocation2 + $0x22]]  ;;  %v159_v18 = vstv %s2181_s27 }
  0x60   :  { %s2193_s12 = sld [smem:[#allocation2 + $0x2]]  ;;  %v163_v23 = vstv %s2183_s28  ;;  %v2273_v31 = vmul.f32 %v159_v18, %v157_v19  ;;  %v2275_v32 = vmul.f32 %v237_v20, %v159_v18 }
  0x61   :  { %421 = vrot.lane.b32.xlu0 %v2154_v4, %s3678_s14  ;;  %513 = vrot.lane.b32.xlu1 %v2159_v5, %s3678_s14  ;;  %s2195_s5 = sld [smem:[#allocation2 + $0x1d]]  ;;  %v167_v29 = vstv %s2185_s29  ;;  %v2280_v34 = vmul.f32 %v163_v23, %v157_v19  ;;  %v2287_v38 = vmul.f32 %v237_v20, %v163_v23  ;;  %v532_v23 = vrot.slane %v2159_v5, 7 }
  0x62   :  { %s2197_s6 = sld [smem:[#allocation2 + $0x5]]  ;;  %v2290_v39 = vmul.f32 %v167_v29, %v2118_v0  ;;  %v2301_v43 = vmul.f32 %v2127_v1, %v167_v29 }
  0x63   :  { %s2199_s13 = sld [smem:[#allocation2 + $0x20]]  ;;  %v171_v33 = vstv %s2187_s30 }
  0x64   :  { %s2201_s16 = sld [smem:[#allocation2 + $0x8]]  ;;  %v177_v35 = vstv %s2189_s10  ;;  %v2298_v42 = vmul.f32 %v171_v33, %v2118_v0  ;;  %v2304_v44 = vmul.f32 %v2127_v1, %v171_v33  ;;  %v452_v1 = vrot.slane %v2154_v4, 7 }
  0x65   :  { %480 = vrot.lane.b32.xlu0 %v2154_v4, %s3676_s15  ;;  %548 = vrot.lane.b32.xlu1 %v2159_v5, %s3676_s15  ;;  %s2203_s17 = sld [smem:[#allocation2 + $0x23]]  ;;  %v181_v36 = vstv %s2191_s11  ;;  %v2310_v47 = vmul.f32 %v177_v35, %v175_v21  ;;  %v2314_v49 = vmul.f32 %v247_v24, %v177_v35  ;;  %v470_v33 = vrot.slane %v2154_v4, 1 }
  0x66   :  { %3790 = sst [smem:[#allocation23_spill]] %s2193_s12  ;;  %v3712_v46 = vstv %s2193_s12  ;;  %v2312_v48 = vmul.f32 %v181_v36, %v175_v21  ;;  %v2320_v52 = vmul.f32 %v247_v24, %v181_v36  ;;  %v453_v29 = vsel %vm117_vm0, %v452_v1, 0.0 }
  0x67   :  { %3791 = sst [smem:[#allocation24_spill]] %s2195_s5 }
  0x68   :  { %s2205_s2 = sld [smem:[#allocation2 + $0x9]]  ;;  %v3703_v51 = vstv %s2197_s6 }
  0x69   :  { %s2207_s4 = sld [smem:[#allocation2 + $0x24]]  ;;  %v3710_v54 = vstv %s2199_s13 }
  0x6a   :  { %3792 = sst [smem:[#allocation25_spill]] %s2201_s16 }
  0x6b   :  { %3793 = sst [smem:[#allocation26_spill]] %s2203_s17 }
  0x6c   :  { %s2209_s18 = sld [smem:[#allocation2 + $0xc]] }
  0x6d   :  { %s2211_s19 = sld [smem:[#allocation2 + $0x27]] }
  0x6e   :  { %s2213_s20 = sld [smem:[#allocation2 + $0xf]] }
  0x6f   :  { %s2215_s21 = sld [smem:[#allocation2 + $0x2a]] }
  0x70   :  { %s2217_s22 = sld [smem:[#allocation2 + $0xa]] }
  0x71   :  { %s2219_s23 = sld [smem:[#allocation2 + $0x25]] }
  0x72   :  { %s2221_s15 = sld [smem:[#allocation2 + $0xd]] }
  0x73   :  { %s2223_s14 = sld [smem:[#allocation2 + $0x28]] }
  0x74   :  { %s2229_s9 = sld [smem:[#allocation2 + $0x10]] }
  0x75   :  { %3794 = sst [smem:[#allocation27_spill]] %s2215_s21 }
  0x76   :  { %s2234_s8 = sld [smem:[#allocation2 + $0x2b]]  ;;  %v307_v59 = vstv %s2217_s22 }
  0x77   :  { %s2237_s7 = sld [smem:[#allocation2 + $0xb]]  ;;  %v311_v60 = vstv %s2219_s23  ;;  %v2354_v12 = vmul.f32 %v307_v59, %v305_v40  ;;  %v2358_v14 = vmul.f32 %v385_v53, %v307_v59 }
  0x78   :  { %s2257_s24 = sld [smem:[#allocation2 + $0x29]]  ;;  %v315_v0 = vstv %s2221_s15  ;;  %v2356_v13 = vmul.f32 %v311_v60, %v305_v40  ;;  %v2363_v19 = vmul.f32 %v385_v53, %v311_v60  ;;  %v2418_v60 = vsel %vm122_vm1, %v542_v37, 0.0 }
  0x79   :  { %3795 = sst [smem:[#allocation28_spill]] %s2223_s14  ;;  %v2366_v20 = vmul.f32 %v2136_v2, %v315_v0  ;;  %v2376_v25 = vmul.f32 %v2141_v3, %v315_v0  ;;  %v533_v0 = vsel %vm117_vm0, %v532_v23, 0.0 }
  0x7a   :  { %s2241_s14 = sld [smem:[#allocation2 + $0x26]]  ;;  %v325_v18 = vstv %s2229_s9 }
  0x7b   :  { %s2264_s27 = sld [smem:[#allocation2 + $0x11]]  ;;  %v2383_v35 = vmul.f32 %v325_v18, %v323_v57 }
  0x7c   :  { %3796 = sst [smem:[#allocation29_spill]] %s2234_s8 }
  0x7d   :  { %s2248_s8 = sld [smem:[#allocation2 + $0xe]] }
  0x7e   :  { %s2278_s28 = sld [smem:[#allocation2 + $0x12]] }
  0x7f   :  { %s2285_s25 = sld [smem:[#allocation2 + $0x2d]] }
  0x80   :  { %s2295_s29 = sld [smem:[#allocation2 + $0x15]] }
  0x81   :  { %s2307_s30 = sld [smem:[#allocation2 + $0x30]] }
  0x82   :  { %s2316_s10 = sld [smem:[#allocation2 + $0x18]] }
  0x83   :  { %3797 = sst [smem:[#allocation30_spill]] %s2248_s8 }
  0x84   :  { %s2270_s8 = sld [smem:[#allocation2 + $0x2c]] }
  0x85   :  { %s2324_s11 = sld [smem:[#allocation2 + $0x33]] }
  0x86   :  { %s3798_s12 = sld [smem:[#allocation28_spill]] }
  0x87   :  { %s2331_s5 = sld [smem:[#allocation2 + $0x13]] }
  0x88   :  { %s2338_s26 = sld [smem:[#allocation2 + $0x2e]] }
  0x89   :  { %s3799_s17 = sld [smem:[#allocation29_spill]] }
  0x8a   :  { %s2344_s16 = sld [smem:[#allocation2 + $0x14]] }
  0x8b   :  { %s2350_s22 = sld [smem:[#allocation2 + $0x2f]] }
  0x8c   :  { %v319_v11 = vstv %s3798_s12  ;;  %s2361_s15 = sld [smem:[#allocation2 + $0x16]] }
  0x8d   :  { %s3801_s12 = sld [smem:[#allocation30_spill]]  ;;  %v2373_v24 = vmul.f32 %v2136_v2, %v319_v11  ;;  %v2386_v36 = vmul.f32 %v2141_v3, %v319_v11  ;;  %v2388_v2 = vmul.f32 %v395_v61, %v325_v18  ;;  %v455_v11 = vstv %s2331_s5 }
  0x8e   :  { %s2370_s23 = sld [smem:[#allocation2 + $0x19]]  ;;  %v459_v18 = vstv %s2338_s26  ;;  %v2424_v3 = vmul.f32 %v455_v11, %v453_v29  ;;  %v2428_v8 = vmul.f32 %v533_v0, %v455_v11 }
  0x8f   :  { %v329_v21 = vstv %s3799_s17  ;;  %s2380_s9 = sld [smem:[#allocation2 + $0x17]]  ;;  %v2431_v7 = vmul.f32 %v533_v0, %v459_v18 }
  0x90   :  { %s2390_s17 = sld [smem:[#allocation2 + $0x32]]  ;;  %v2395_v45 = vmul.f32 %v329_v21, %v323_v57  ;;  %v2397_v53 = vmul.f32 %v395_v61, %v329_v21  ;;  %v2411_v57 = vsel %vm122_vm1, %v470_v33, 0.0  ;;  %v2426_v33 = vmul.f32 %v459_v18, %v453_v29  ;;  %3805 = vst [vmem:[#allocation32_spill] sm:$0xff] %v2428_v8 }
  0x91   :  { %3800 = sst [smem:[#allocation28_spill]] %s2350_s22  ;;  %3806 = vst [vmem:[#allocation33_spill] sm:$0xff] %v2431_v7 }
  0x92   :  { %s2404_s21 = sld [smem:[#allocation2 + $0x31]]  ;;  %v463_v40 = vstv %s2361_s15 }
  0x93   :  { %s3807_s26 = sld [smem:[#allocation20_spill]]  ;;  %v2442_v6 = vmul.f32 %v2154_v4, %v463_v40 }
  0x94   :  { %3802 = sst [smem:[#allocation29_spill]] %s2370_s23  ;;  %v3698_v21 = vstv %s2370_s23 }
  0x95   :  { %3803 = sst [smem:[#allocation30_spill]] %s2380_s9  ;;  %v2447_v18 = vmul.f32 %v3698_v21, %v2411_v57 }
  0x96   :  { %3804 = sst [smem:[#allocation31_spill]] %s2390_s17 }
  0x97   :  { %s3808_s5 = sld [smem:[#allocation21_spill]] }
  0x98   :  { %s3809_s15 = sld [smem:[#allocation22_spill]] }
  0x99   :  { %s3811_s17 = sld [smem:[#allocation23_spill]] }
  0x9a   :  { %s3812_s22 = sld [smem:[#allocation24_spill]] }
  0x9b   :  { %s3813_s9 = sld [smem:[#allocation25_spill]] }
  0x9c   :  { %s3814_s23 = sld [smem:[#allocation26_spill]] }
  0x9d   :  { %s3831_s1 = sld [smem:[#allocation27_spill]] }
  0x9e   :  { %v3821_v8 = vstv %s3809_s15  ;;  %s2613_s0 = sld [smem:[#allocation2 + $0x34]] }
  0xc3   :  { %v126_v61 = vpop.permute.xlu0 %125  ;;  %v185_v59 = vpop.permute.xlu1 %184 }
  0xc4   :  { %v127_v1 = vsel %vm109_vm2, %v126_v61, 0.0  ;;  %v186_v29 = vsel %vm114_vm3, %v185_v59, 0.0  ;;  %v2450_v61 = vmul.f32 %v2159_v5, %v463_v40  ;;  %v3822_v5 = vstv %s2197_s6 }
  0xc5   :  { %v128_v63 = vrot.slane %v127_v1, 7  ;;  %v146_v0 = vrot.slane %v127_v1, 1  ;;  %v140_v59 = vmul.f32 %v139_v26, %v127_v1  ;;  %v187_v11 = vrot.slane %v186_v29, 7 }
  0xc6   :  { %3810 = vst [vmem:[#allocation34_spill] sm:$0xff] %v2450_v61  ;;  %v205_v23 = vrot.slane %v186_v29, 1  ;;  %v144_v62 = vmul.f32 %v143_v27, %v127_v1  ;;  %v199_v56 = vmul.f32 %v3703_v51, %v186_v29 }
  0xc7   :  { %v129_v37 = vsel %vm117_vm0, %v128_v63, 0.0  ;;  %v147_v58 = vsel %vm122_vm1, %v146_v0, 0.0  ;;  %v218_v21 = vpop.permute.xlu0 %217  ;;  %v253_v40 = vpop.permute.xlu1 %252  ;;  %v203_v63 = vmul.f32 %v3710_v54, %v186_v29  ;;  %v188_v51 = vsel %vm117_vm0, %v187_v11, 0.0 }
  0xc8   :  { %v132_v55 = vmul.f32 %v3704_v16, %v129_v37  ;;  %v136_v50 = vmul.f32 %v3707_v22, %v129_v37  ;;  %v150_v41 = vmul.f32 %v3708_v28, %v147_v58  ;;  %v154_v1 = vmul.f32 %v3711_v30, %v147_v58 }
  0xc9   :  { %v219_v0 = vsel %vm109_vm2, %v218_v21, 0.0  ;;  %v206_v16 = vsel %vm122_vm1, %v205_v23, 0.0  ;;  %v254_v29 = vsel %vm114_vm3, %v253_v40, 0.0  ;;  %v191_v30 = vmul.f32 %v3712_v46, %v188_v51 }
  0xca   :  { %v141_v37 = vadd.f32 %v140_v59, %v132_v55  ;;  %v145_v22 = vadd.f32 %v144_v62, %v136_v50  ;;  %v220_v28 = vrot.slane %v219_v0, 7  ;;  %v226_v58 = vmul.f32 %v219_v0, %v139_v26 }
  0xcb   :  { %v228_v21 = vmul.f32 %v219_v0, %v143_v27  ;;  %v230_v54 = vrot.slane %v219_v0, 1  ;;  %v3815_v50 = vstv %s3812_s22  ;;  %v3816_v23 = vstv %s3807_s26 }
  0xcc   :  { %v151_v11 = vadd.f32 %v150_v41, %v141_v37  ;;  %v155_v61 = vadd.f32 %v154_v1, %v145_v22  ;;  %v221_v55 = vsel %vm117_vm0, %v220_v28, 0.0  ;;  %v195_v62 = vmul.f32 %v3815_v50, %v188_v51  ;;  %v274_v51 = vpop.permute.xlu0 %273 }
  0xcd   :  { %v222_v59 = vmul.f32 %v221_v55, %v3816_v23  ;;  %v3817_v40 = vstv %s3808_s5  ;;  %v231_v26 = vsel %vm122_vm1, %v230_v54, 0.0  ;;  %v3818_v27 = vstv %s3813_s9 }
  0xce   :  { %v224_v7 = vmul.f32 %v221_v55, %v3817_v40  ;;  %v209_v0 = vmul.f32 %v3818_v27, %v206_v16  ;;  %v161_v46 = vadd.f32 %v2273_v31, %v151_v11  ;;  %v165_v41 = vadd.f32 %v2280_v34, %v155_v61 }
  0xcf   :  { %v3819_v22 = vstv %s2177_s3  ;;  %v3820_v37 = vstv %s3814_s23  ;;  %v227_v50 = vadd.f32 %v226_v58, %v222_v59  ;;  %v234_v55 = vmul.f32 %v231_v26, %v3821_v8  ;;  %s3876_s3 = sld [smem:[#allocation31_spill]] }
  0xd0   :  { %v232_v1 = vmul.f32 %v231_v26, %v3819_v22  ;;  %v213_v28 = vmul.f32 %v3820_v37, %v206_v16  ;;  %v229_v23 = vadd.f32 %v228_v21, %v224_v7  ;;  %v255_v40 = vrot.slane %v254_v29, 7 }
  0xd1   :  { %v169_v54 = vadd.f32 %v2290_v39, %v161_v46  ;;  %v173_v27 = vadd.f32 %v2298_v42, %v165_v41  ;;  %v261_v31 = vmul.f32 %v254_v29, %v3822_v5  ;;  %v265_v34 = vrot.slane %v254_v29, 1 }
  0xd2   :  { %v233_v61 = vadd.f32 %v232_v1, %v227_v50  ;;  %v235_v11 = vadd.f32 %v234_v55, %v229_v23  ;;  %v256_v16 = vsel %vm117_vm0, %v255_v40, 0.0  ;;  %v275_v7 = vsel %vm109_vm2, %v274_v51, 0.0  ;;  %v366_v55 = vpop.permute.xlu1 %365 }
  0xd3   :  { %v179_v8 = vadd.f32 %v2310_v47, %v169_v54  ;;  %v183_v39 = vadd.f32 %v2312_v48, %v173_v27  ;;  %v3823_v46 = vstv %s3811_s17  ;;  %v3824_v58 = vstv %s2199_s13 }
  0xd4   :  { %v257_v42 = vmul.f32 %v256_v16, %v3823_v46  ;;  %v263_v5 = vmul.f32 %v254_v29, %v3824_v58  ;;  %v239_v21 = vadd.f32 %v2275_v32, %v233_v61  ;;  %v241_v59 = vadd.f32 %v2287_v38, %v235_v11 }
  0xd5   :  { %v266_v26 = vsel %vm122_vm1, %v265_v34, 0.0  ;;  %v276_v41 = vrot.slane %v275_v7, 7  ;;  %v192_v22 = vadd.f32 %v191_v30, %v179_v8  ;;  %v196_v1 = vadd.f32 %v195_v62, %v183_v39  ;;  %v333_v8 = vpop.permute.xlu0 %332 }
  0xd6   :  { %v3825_v47 = vstv %s3812_s22  ;;  %v3826_v48 = vstv %s3813_s9  ;;  %v243_v50 = vadd.f32 %v2301_v43, %v239_v21  ;;  %v245_v29 = vadd.f32 %v2304_v44, %v241_v59 }
  0xd7   :  { %v259_v37 = vmul.f32 %v256_v16, %v3825_v47  ;;  %v267_v51 = vmul.f32 %v266_v26, %v3826_v48  ;;  %v3827_v32 = vstv %s3814_s23  ;;  %v277_v38 = vsel %vm117_vm0, %v276_v41, 0.0 }
  0xd8   :  { %v269_v23 = vmul.f32 %v266_v26, %v3827_v32  ;;  %v200_v40 = vadd.f32 %v199_v56, %v192_v22  ;;  %v204_v54 = vadd.f32 %v203_v63, %v196_v1  ;;  %v3828_v27 = vstv %s2205_s2 }
  0xd9   :  { %v280_v30 = vmul.f32 %v3828_v27, %v277_v38  ;;  %v3829_v62 = vstv %s2207_s4  ;;  %v249_v61 = vadd.f32 %v2314_v49, %v243_v50  ;;  %v251_v43 = vadd.f32 %v2320_v52, %v245_v29 }
  0xda   :  { %v284_v34 = vmul.f32 %v3829_v62, %v277_v38  ;;  %v3830_v11 = vstv %s2209_s18  ;;  %v294_v44 = vrot.slane %v275_v7, 1  ;;  %v210_v39 = vadd.f32 %v209_v0, %v200_v40 }
  0xdb   :  { %v288_v16 = vmul.f32 %v3830_v11, %v275_v7  ;;  %v214_v46 = vadd.f32 %v213_v28, %v204_v54  ;;  %v3832_v58 = vstv %s2211_s19  ;;  %v367_v56 = vsel %vm109_vm2, %v366_v55, 0.0 }
  0xdc   :  { %v292_v21 = vmul.f32 %v3832_v58, %v275_v7  ;;  %v258_v63 = vadd.f32 %v257_v42, %v249_v61  ;;  %v260_v59 = vadd.f32 %v259_v37, %v251_v43  ;;  %v295_v49 = vsel %vm122_vm1, %v294_v44, 0.0 }
  0xdd   :  { %v368_v52 = vrot.slane %v367_v56, 7  ;;  %v281_v26 = vadd.f32 %v280_v30, %v210_v39  ;;  %v285_v41 = vadd.f32 %v284_v34, %v214_v46  ;;  %v3833_v22 = vstv %s2213_s20 }
  0xde   :  { %v298_v1 = vmul.f32 %v3833_v22, %v295_v49  ;;  %v334_v0 = vsel %vm114_vm3, %v333_v8, 0.0  ;;  %v262_v28 = vadd.f32 %v261_v31, %v258_v63  ;;  %v264_v7 = vadd.f32 %v263_v5, %v260_v59 }
  0xdf   :  { %v3834_v47 = vstv %s3831_s1  ;;  %v369_v42 = vsel %vm117_vm0, %v368_v52, 0.0  ;;  %v289_v37 = vadd.f32 %v288_v16, %v281_v26  ;;  %v293_v50 = vadd.f32 %v292_v21, %v285_v41 }
  0xe0   :  { %v302_v48 = vmul.f32 %v3834_v47, %v295_v49  ;;  %v3835_v29 = vmov %v3828_v27  ;;  %v3836_v38 = vmov %v3829_v62  ;;  %v268_v40 = vadd.f32 %v267_v51, %v262_v28 }
  0xe1   :  { %v370_v32 = vmul.f32 %v369_v42, %v3835_v29  ;;  %v372_v55 = vmul.f32 %v369_v42, %v3836_v38  ;;  %v270_v54 = vadd.f32 %v269_v23, %v264_v7  ;;  %v3837_v27 = vmov %v3830_v11  ;;  %v422_v38 = vpop.permute.xlu0 %421 }
  0xe2   :  { %v374_v30 = vmul.f32 %v367_v56, %v3837_v27  ;;  %v378_v31 = vrot.slane %v367_v56, 1  ;;  %v299_v5 = vadd.f32 %v298_v1, %v289_v37  ;;  %v303_v62 = vadd.f32 %v302_v48, %v293_v50 }
  0xe3   :  { %v3838_v34 = vmov %v3832_v58  ;;  %v335_v43 = vrot.slane %v334_v0, 7  ;;  %v371_v11 = vadd.f32 %v370_v32, %v268_v40  ;;  %v373_v16 = vadd.f32 %v372_v55, %v270_v54 }
  0xe4   :  { %v376_v61 = vmul.f32 %v367_v56, %v3838_v34  ;;  %v379_v44 = vsel %vm122_vm1, %v378_v31, 0.0  ;;  %v3839_v8 = vstv %s3801_s12  ;;  %v309_v51 = vadd.f32 %v2354_v12, %v299_v5  ;;  %v401_v56 = vpop.permute.xlu1 %400 }
  0xe5   :  { %v347_v39 = vmul.f32 %v3839_v8, %v334_v0  ;;  %v313_v23 = vadd.f32 %v2356_v13, %v303_v62  ;;  %v3840_v46 = vmov %v3833_v22  ;;  %v3841_v21 = vmov %v3834_v47 }
  0xe6   :  { %v380_v58 = vmul.f32 %v379_v44, %v3840_v46  ;;  %v382_v63 = vmul.f32 %v379_v44, %v3841_v21  ;;  %v375_v59 = vadd.f32 %v374_v30, %v371_v11  ;;  %v377_v49 = vadd.f32 %v376_v61, %v373_v16 }
  0xe7   :  { %v336_v52 = vsel %vm117_vm0, %v335_v43, 0.0  ;;  %v353_v26 = vrot.slane %v334_v0, 1  ;;  %v317_v41 = vadd.f32 %v2366_v20, %v309_v51  ;;  %v321_v12 = vadd.f32 %v2373_v24, %v313_v23 }
  0xe8   :  { %v3842_v22 = vstv %s2237_s7  ;;  %v3843_v1 = vstv %s2241_s14  ;;  %v381_v7 = vadd.f32 %v380_v58, %v375_v59  ;;  %v383_v47 = vadd.f32 %v382_v63, %v377_v49  ;;  %v514_v59 = vpop.permute.xlu1 %513  ;;  %s2635_s7 = sld [smem:[#allocation2 + $0x1a]] }
  0xe9   :  { %v339_v13 = vmul.f32 %v3842_v22, %v336_v52  ;;  %v343_v28 = vmul.f32 %v3843_v1, %v336_v52  ;;  %v354_v48 = vsel %vm122_vm1, %v353_v26, 0.0  ;;  %v402_v42 = vsel %vm114_vm3, %v401_v56, 0.0  ;;  %s3867_s14 = sld [smem:[#allocation30_spill]] }
  0xea   :  { %v327_v37 = vadd.f32 %v2383_v35, %v317_v41  ;;  %v331_v50 = vadd.f32 %v2395_v45, %v321_v12  ;;  %v3844_v20 = vstv %s2257_s24  ;;  %v3845_v24 = vstv %s2264_s27  ;;  %s2670_s24 = sld [smem:[#allocation2 + $0x35]] }
  0xeb   :  { %v351_v29 = vmul.f32 %v3844_v20, %v334_v0  ;;  %v357_v32 = vmul.f32 %v3845_v24, %v354_v48  ;;  %v387_v55 = vadd.f32 %v2358_v14, %v381_v7  ;;  %v389_v40 = vadd.f32 %v2363_v19, %v383_v47  ;;  %v481_v47 = vpop.permute.xlu0 %480 }
  0xec   :  { %v3846_v54 = vstv %s2270_s8  ;;  %v403_v30 = vrot.slane %v402_v42, 7  ;;  %v340_v31 = vadd.f32 %v339_v13, %v327_v37  ;;  %v344_v5 = vadd.f32 %v343_v28, %v331_v50  ;;  %s3865_s8 = sld [smem:[#allocation29_spill]] }
  0xed   :  { %v361_v27 = vmul.f32 %v3846_v54, %v354_v48  ;;  %v3847_v62 = vmov %v3839_v8  ;;  %v413_v34 = vrot.slane %v402_v42, 1  ;;  %v391_v45 = vadd.f32 %v2376_v25, %v387_v55 }
  0xee   :  { %v409_v35 = vmul.f32 %v402_v42, %v3847_v62  ;;  %v393_v0 = vadd.f32 %v2386_v36, %v389_v40  ;;  %v404_v61 = vsel %vm117_vm0, %v403_v30, 0.0  ;;  %v423_v14 = vsel %vm109_vm2, %v422_v38, 0.0 }
  0xef   :  { %v348_v19 = vadd.f32 %v347_v39, %v340_v31  ;;  %v352_v43 = vadd.f32 %v351_v29, %v344_v5  ;;  %v3848_v11 = vmov %v3842_v22  ;;  %v3849_v44 = vmov %v3843_v1 }
  0xf0   :  { %v405_v16 = vmul.f32 %v404_v61, %v3848_v11  ;;  %v407_v8 = vmul.f32 %v404_v61, %v3849_v44  ;;  %v397_v25 = vadd.f32 %v2388_v2, %v391_v45  ;;  %v399_v36 = vadd.f32 %v2397_v53, %v393_v0 }
  0xf1   :  { %v414_v51 = vsel %vm122_vm1, %v413_v34, 0.0  ;;  %v424_v23 = vrot.slane %v423_v14, 7  ;;  %v358_v39 = vadd.f32 %v357_v32, %v348_v19  ;;  %v362_v46 = vadd.f32 %v361_v27, %v352_v43 }
  0xf2   :  { %v3850_v58 = vmov %v3844_v20  ;;  %v3851_v63 = vmov %v3845_v24  ;;  %v406_v49 = vadd.f32 %v405_v16, %v397_v25  ;;  %v408_v52 = vadd.f32 %v407_v8, %v399_v36 }
  0xf3   :  { %v411_v21 = vmul.f32 %v402_v42, %v3850_v58  ;;  %v415_v56 = vmul.f32 %v414_v51, %v3851_v63  ;;  %v3852_v2 = vmov %v3846_v54  ;;  %v425_v53 = vsel %vm117_vm0, %v424_v23, 0.0  ;;  %v549_v58 = vpop.permute.xlu1 %548 }
  0xf4   :  { %v417_v26 = vmul.f32 %v414_v51, %v3852_v2  ;;  %v3853_v41 = vstv %s2278_s28  ;;  %v3854_v22 = vstv %s2285_s25  ;;  %v3855_v1 = vstv %s2295_s29  ;;  %s3868_s25 = sld [smem:[#allocation28_spill]] }
  0xf5   :  { %v428_v12 = vmul.f32 %v3853_v41, %v425_v53  ;;  %v432_v13 = vmul.f32 %v3854_v22, %v425_v53  ;;  %v436_v28 = vmul.f32 %v3855_v1, %v423_v14  ;;  %v442_v7 = vrot.slane %v423_v14, 1  ;;  %s617_s29 = sld [smem:[#allocation5]] }
  0xf6   :  { %v410_v48 = vadd.f32 %v409_v35, %v406_v49  ;;  %v412_v42 = vadd.f32 %v411_v21, %v408_v52  ;;  %v3856_v37 = vstv %s2307_s30  ;;  %v515_v20 = vsel %vm109_vm2, %v514_v59, 0.0  ;;  %s619_s30 = sld [smem:[#allocation7]] }
  0xf7   :  { %v440_v50 = vmul.f32 %v3856_v37, %v423_v14  ;;  %v429_v29 = vadd.f32 %v428_v12, %v358_v39  ;;  %v433_v24 = vadd.f32 %v432_v13, %v362_v46  ;;  %v443_v32 = vsel %vm122_vm1, %v442_v7, 0.0 }
  0xf8   :  { %v516_v38 = vrot.slane %v515_v20, 7  ;;  %v416_v55 = vadd.f32 %v415_v56, %v410_v48  ;;  %v418_v40 = vadd.f32 %v417_v26, %v412_v42  ;;  %v3857_v54 = vstv %s2316_s10 }
  0xf9   :  { %v446_v27 = vmul.f32 %v3857_v54, %v443_v32  ;;  %v482_v30 = vsel %vm114_vm3, %v481_v47, 0.0  ;;  %v437_v31 = vadd.f32 %v436_v28, %v429_v29  ;;  %v441_v5 = vadd.f32 %v440_v50, %v433_v24  ;;  %v3872_v29 = vld [vmem:[#allocation19_spill] sm:$0xff] }
  0xfa   :  { %v3858_v62 = vstv %s2324_s11  ;;  %v517_v34 = vsel %vm117_vm0, %v516_v38, 0.0  ;;  %v3859_v45 = vmov %v3853_v41  ;;  %v3860_v61 = vmov %v3854_v22 }
  0xfb   :  { %v450_v35 = vmul.f32 %v3858_v62, %v443_v32  ;;  %v518_v0 = vmul.f32 %v517_v34, %v3859_v45  ;;  %v520_v14 = vmul.f32 %v517_v34, %v3860_v61  ;;  %v526_v19 = vrot.slane %v515_v20, 1  ;;  %v3873_v32 = vld [vmem:[#allocation32_spill] sm:$0xff] }
  0xfc   :  { %v477_v43 = vstv %s2613_s0  ;;  %v447_v11 = vadd.f32 %v446_v27, %v437_v31  ;;  %v3861_v44 = vmov %v3855_v1  ;;  %v483_v25 = vrot.slane %v482_v30, 7 }
  0xfd   :  { %v451_v16 = vadd.f32 %v450_v35, %v441_v5  ;;  %v522_v8 = vmul.f32 %v515_v20, %v3861_v44  ;;  %v519_v36 = vadd.f32 %v518_v0, %v416_v55  ;;  %v521_v51 = vadd.f32 %v520_v14, %v418_v40  ;;  %v3874_v55 = vld [vmem:[#allocation33_spill] sm:$0xff]  ;;  %v3879_v0 = vld [vmem:[#allocation34_spill] sm:$0xff] }
  0xfe   :  { %v3862_v23 = vmov %v3856_v37  ;;  %v527_v46 = vsel %vm122_vm1, %v526_v19, 0.0  ;;  %v457_v21 = vadd.f32 %v2424_v3, %v447_v11  ;;  %v3863_v56 = vmov %v3857_v54 }
  0xff   :  { %v524_v39 = vmul.f32 %v515_v20, %v3862_v23  ;;  %v461_v63 = vadd.f32 %v2426_v33, %v451_v16  ;;  %v528_v59 = vmul.f32 %v527_v46, %v3863_v56  ;;  %v3864_v49 = vmov %v3858_v62 }
 0x100   :  { %v530_v52 = vmul.f32 %v527_v46, %v3864_v49  ;;  %v523_v2 = vadd.f32 %v522_v8, %v519_v36  ;;  %v484_v53 = vsel %vm117_vm0, %v483_v25, 0.0  ;;  %v501_v41 = vrot.slane %v482_v30, 1 }
 0x101   :  { %v525_v26 = vadd.f32 %v524_v39, %v521_v51  ;;  %v3866_v12 = vstv %s2344_s16  ;;  %v550_v3 = vsel %vm114_vm3, %v549_v58, 0.0  ;;  %v465_v33 = vadd.f32 %v2442_v6, %v457_v21 }
 0x102   :  { %v487_v22 = vmul.f32 %v3866_v12, %v484_v53  ;;  %v504_v13 = vstv %s2635_s7  ;;  %v529_v1 = vadd.f32 %v528_v59, %v523_v2  ;;  %v551_v7 = vrot.slane %v550_v3, 7 }
 0x103   :  { %v531_v28 = vadd.f32 %v530_v52, %v525_v26  ;;  %v3869_v47 = vstv %s2404_s21  ;;  %v475_v42 = vadd.f32 %v2447_v18, %v465_v33  ;;  %v3870_v37 = vstv %s3865_s8 }
 0x104   :  { %v468_v48 = vmul.f32 %v2154_v4, %v3869_v47  ;;  %v544_v50 = vmul.f32 %v2418_v60, %v3870_v37  ;;  %v478_v20 = vmul.f32 %v477_v43, %v2411_v57  ;;  %v3871_v6 = vmov %v3869_v47 }
 0x105   :  { %v540_v24 = vmul.f32 %v3872_v29, %v3871_v6  ;;  %v535_v38 = vadd.f32 %v3873_v32, %v529_v1  ;;  %v537_v40 = vadd.f32 %v3874_v55, %v531_v28  ;;  %v502_v54 = vsel %vm122_vm1, %v501_v41, 0.0 }
 0x106   :  { %v552_v4 = vsel %vm117_vm0, %v551_v7, 0.0  ;;  %v3875_v18 = vstv %s3867_s14  ;;  %v561_v31 = vrot.slane %v550_v3, 1  ;;  %v488_v5 = vadd.f32 %v487_v22, %v475_v42  ;;  %s3884_s14 = smov 1  }
 0x107   :  { %v495_v27 = vmul.f32 %v3875_v18, %v482_v30  ;;  %v546_v57 = vmul.f32 %v2418_v60, %v477_v43  ;;  %v3877_v62 = vstv %s3868_s25  ;;  %v3878_v34 = vmov %v3866_v12  ;;  %s3885_s25 = smov 127  }
 0x108   :  { %v491_v35 = vmul.f32 %v3877_v62, %v484_v53  ;;  %v553_v45 = vmul.f32 %v552_v4, %v3878_v34  ;;  %v539_v61 = vadd.f32 %v3879_v0, %v535_v38  ;;  %v469_v14 = vadd.f32 %v468_v48, %v461_v63 }
 0x109   :  { %v3880_v19 = vmov %v3877_v62  ;;  %v496_v16 = vadd.f32 %v495_v27, %v488_v5  ;;  %v505_v44 = vmul.f32 %v504_v13, %v502_v54  ;;  %v541_v8 = vadd.f32 %v540_v24, %v537_v40 }
 0x10a   :  { %v555_v11 = vmul.f32 %v552_v4, %v3880_v19  ;;  %v545_v25 = vadd.f32 %v544_v50, %v539_v61  ;;  %v479_v36 = vadd.f32 %v478_v20, %v469_v14  ;;  %v562_v51 = vsel %vm122_vm1, %v561_v31, 0.0 }
 0x10b   :  { %v2701_v60 = vadd.f32 %v505_v44, %v496_v16  ;;  %v508_v43 = vstv %s2670_s24  ;;  %v547_v23 = vadd.f32 %v546_v57, %v541_v8  ;;  %v3881_v39 = vstv %s3876_s3  ;;  %s1671_s3 = sld [smem:[#allocation5 + $0x1]] }
 0x10c   :  { %v499_v46 = vmul.f32 %v3881_v39, %v482_v30  ;;  %v3882_v58 = vmov %v3875_v18  ;;  %v554_v63 = vadd.f32 %v553_v45, %v545_v25  ;;  %v492_v56 = vadd.f32 %v491_v35, %v479_v36 }
 0x10d   :  { %v557_v21 = vmul.f32 %v550_v3, %v3882_v58  ;;  %567 = vadd.xlane.f32.xlu0 %v2701_v60  ;;  %v577_v59 = vmul.f32 %v2701_v60, %v2701_v60  ;;  %v556_v49 = vadd.f32 %v555_v11, %v547_v23  ;;  %v563_v2 = vmul.f32 %v562_v51, %v504_v13 }
 0x10e   :  { %v500_v26 = vadd.f32 %v499_v46, %v492_v56  ;;  %v3883_v53 = vmov %v3881_v39  ;;  %v509_v12 = vmul.f32 %v508_v43, %v502_v54  ;;  %v565_v1 = vmul.f32 %v562_v51, %v508_v43 }
 0x10f   :  { %v558_v52 = vadd.f32 %v557_v21, %v554_v63  ;;  %v559_v41 = vmul.f32 %v550_v3, %v3883_v53  ;;  %578 = vadd.xlane.f32.xlu1 %v577_v59 }
 0x110   :  { %v2715_v30 = vadd.f32 %v509_v12, %v500_v26 }
 0x111   :  { %v2713_v22 = vadd.f32 %v563_v2, %v558_v52  ;;  %v560_v33 = vadd.f32 %v559_v41, %v556_v49 }
 0x112   :  { %v640_v3 = vmul.f32 %v2715_v30, %v2715_v30 }
 0x113   :  { %588 = vadd.xlane.f32.xlu0 %v2713_v22  ;;  %630 = vadd.xlane.f32.xlu1 %v2715_v30  ;;  %v598_v28 = vmul.f32 %v2713_v22, %v2713_v22  ;;  %v2721_v7 = vadd.f32 %v565_v1, %v560_v33 }
 0x115   :  { %v661_v13 = vmul.f32 %v2721_v7, %v2721_v7 }
 0x117   :  { %599 = vadd.xlane.f32.xlu0 %v598_v28  ;;  %651 = vadd.xlane.f32.xlu1 %v2721_v7 }
 0x11b   :  { %641 = vadd.xlane.f32.xlu0 %v640_v3 }
 0x11f   :  { %662 = vadd.xlane.f32.xlu0 %v661_v13 }
 0x196   :  { %v568_v47 = vpop.xlane.xlu0 %567 }
 0x197   :  { %v569_v48 = vrot.slane %v568_v47, 4 }
 0x198   :  { %v579_v42 = vpop.xlane.xlu1 %578 }
 0x199   :  { %v570_v37 = vadd.f32 %v569_v48, %v568_v47  ;;  %v580_v50 = vrot.slane %v579_v42, 4 }
 0x19b   :  { %v571_v20 = vrot.slane %v570_v37, 2  ;;  %v581_v6 = vadd.f32 %v580_v50, %v579_v42 }
 0x19c   :  { %v589_v29 = vpop.xlane.xlu0 %588  ;;  %v631_v11 = vpop.xlane.xlu1 %630 }
 0x19d   :  { %v590_v24 = vrot.slane %v589_v29, 4  ;;  %v582_v32 = vrot.slane %v581_v6, 2  ;;  %v572_v38 = vadd.f32 %v571_v20, %v570_v37  ;;  %v632_v8 = vrot.slane %v631_v11, 4 }
 0x19f   :  { %v591_v55 = vadd.f32 %v590_v24, %v589_v29  ;;  %v573_v54 = vrot.slane %v572_v38, 1  ;;  %v583_v4 = vadd.f32 %v582_v32, %v581_v6  ;;  %v633_v23 = vadd.f32 %v632_v8, %v631_v11 }
 0x1a0   :  { %v600_v40 = vpop.xlane.xlu0 %599  ;;  %v652_v44 = vpop.xlane.xlu1 %651 }
 0x1a1   :  { %v592_v18 = vrot.slane %v591_v55, 2  ;;  %v601_v27 = vrot.slane %v600_v40, 4  ;;  %v574_v31 = vadd.f32 %v573_v54, %v572_v38  ;;  %v584_v5 = vrot.slane %v583_v4, 1 }
 0x1a2   :  { %v653_v51 = vrot.slane %v652_v44, 4  ;;  %v634_v63 = vrot.slane %v633_v23, 2 }
 0x1a3   :  { %v602_v57 = vadd.f32 %v601_v27, %v600_v40  ;;  %v593_v62 = vadd.f32 %v592_v18, %v591_v55  ;;  %1851 = vpush %v574_v31  ;;  %v585_v35 = vadd.f32 %v584_v5, %v583_v4 }
 0x1a4   :  { %v642_v16 = vpop.xlane.xlu0 %641  ;;  %v654_v46 = vadd.f32 %v653_v51, %v652_v44  ;;  %v635_v52 = vadd.f32 %v634_v63, %v633_v23 }
 0x1a5   :  { %v603_v34 = vrot.slane %v602_v57, 2  ;;  %v594_v45 = vrot.slane %v593_v62, 1  ;;  %1853 = vpush %v585_v35  ;;  %v643_v36 = vrot.slane %v642_v16, 4 }
 0x1a6   :  { %v655_v59 = vrot.slane %v654_v46, 2  ;;  %v636_v41 = vrot.slane %v635_v52, 1 }
 0x1a7   :  { %v595_v0 = vadd.f32 %v594_v45, %v593_v62  ;;  %v604_v61 = vadd.f32 %v603_v34, %v602_v57  ;;  %v644_v39 = vadd.f32 %v643_v36, %v642_v16 }
 0x1a8   :  { %v663_v25 = vpop.xlane.xlu0 %662  ;;  %v656_v26 = vadd.f32 %v655_v59, %v654_v46  ;;  %v637_v3 = vadd.f32 %v636_v41, %v635_v52 }
 0x1a9   :  { %1855 = vpush %v595_v0  ;;  %v605_v14 = vrot.slane %v604_v61, 1  ;;  %v664_v43 = vrot.slane %v663_v25, 4  ;;  %v645_v56 = vrot.slane %v644_v39, 2 }
 0x1aa   :  { %v657_v33 = vrot.slane %v656_v26, 1 }
 0x1ab   :  { %v606_v19 = vadd.f32 %v605_v14, %v604_v61  ;;  %v665_v21 = vadd.f32 %v664_v43, %v663_v25  ;;  %v646_v2 = vadd.f32 %v645_v56, %v644_v39 }
 0x1ac   :  { %v658_v47 = vadd.f32 %v657_v33, %v656_v26 }
 0x1ad   :  { %1857 = vpush %v606_v19  ;;  %v666_v49 = vrot.slane %v665_v21, 2  ;;  %v647_v12 = vrot.slane %v646_v2, 1 }
 0x1af   :  { %v667_v53 = vadd.f32 %v666_v49, %v665_v21  ;;  %v648_v13 = vadd.f32 %v647_v12, %v646_v2 }
 0x1b1   :  { %v668_v1 = vrot.slane %v667_v53, 1 }
 0x1b3   :  { %v669_v48 = vadd.f32 %v668_v1, %v667_v53 }
 0x1d4   :  { %s1852_s6 = spop %1851 }
 0x1d6   :  { %s1854_s13 = spop %1853 }
 0x1da   :  { %s1856_s16 = spop %1855 }
 0x1db   :  { %s597_s2 = sadd.f32 %s1856_s16, %s1852_s6 }
 0x1dc   :  { %s1672_s6 = sld [smem:[#allocation7 + $0x1]] }
 0x1dd   :  { %s2728_s4 = smul.f32 0.00048828125, %s597_s2 }
 0x1de   :  { %s1858_s18 = spop %1857 }
 0x1df   :  { %s608_s19 = sadd.f32 %s1858_s18, %s1854_s13  ;;  %s611_s20 = smul.f32 %s2728_s4, %s2728_s4 }
 0x1e0   :  { %s2761_s18 = sld [smem:[#allocation8 + $0x1]] }
 0x1e1   :  { %s610_s21 = smul.f32 0.00048828125, %s608_s19  ;;  %s2763_s19 = sld [smem:[#allocation8 + $0x13]] }
 0x1e3   :  { %s612_s27 = ssub.f32 %s610_s21, %s611_s20 }
 0x1e4   :  { %s2765_s20 = sld [smem:[#allocation8 + $0x25]] }
 0x1e5   :  { %s613_s28 = sadd.f32 1e-05, %s612_s27 }
 0x1e6   :  { %s2767_s21 = sld [smem:[#allocation8 + $0x37]] }
 0x1e7   :  { %v614_v58 = vstv %s613_s28  ;;  %s2769_s27 = sld [smem:[#allocation8 + $0x4]] }
 0x1e8   :  { %1922 = vrsqrt.f32 %v614_v58  ;;  %s2771_s28 = sld [smem:[#allocation8 + $0x16]] }
 0x1ea   :  { %v759_v5 = vstv %s2765_s20 }
 0x1ec   :  { %v763_v57 = vstv %s2767_s21  ;;  %s2997_s21 = sld [smem:[#allocation8 + $0x33]] }
 0x1ed   :  { %v767_v62 = vstv %s2769_s27 }
 0x1ee   :  { %v771_v35 = vstv %s2771_s28 }
 0x1f5   :  { %v1923_v28 = vpop.eup %1922 }
 0x1f6   :  { %1859 = vpush %v1923_v28 }
 0x1f7   :  { %1861 = vpush %v637_v3 }
 0x1f8   :  { %1863 = vpush %v648_v13 }
 0x1f9   :  { %1865 = vpush %v658_v47 }
 0x1fa   :  { %1867 = vpush %v669_v48 }
 0x227   :  { %s1860_s10 = spop %1859 }
 0x228   :  { %s618_s11 = smul.f32 %s1860_s10, %s617_s29  ;;  %s1862_s22 = spop %1861 }
 0x229   :  { %s1864_s12 = spop %1863  ;;  %s2773_s29 = sld [smem:[#allocation8 + $0x28]] }
 0x22a   :  { %s620_s23 = smul.f32 %s618_s11, %s2728_s4  ;;  %v622_v42 = vstv %s618_s11  ;;  %s1866_s9 = spop %1865 }
 0x22b   :  { %s660_s17 = sadd.f32 %s1866_s9, %s1862_s22  ;;  %s1868_s26 = spop %1867  ;;  %v623_v37 = vmul.f32 %v622_v42, %v2701_v60  ;;  %v627_v50 = vmul.f32 %v622_v42, %v2713_v22 }
 0x22c   :  { %s621_s5 = ssub.f32 %s619_s30, %s620_s23 }
 0x22d   :  { %s672_s15 = smul.f32 0.00048828125, %s660_s17  ;;  %s671_s1 = sadd.f32 %s1868_s26, %s1864_s12 }
 0x22e   :  { %v624_v20 = vstv %s621_s5  ;;  %s2775_s30 = sld [smem:[#allocation8 + $0x3a]] }
 0x22f   :  { %v625_v6 = vadd.f32 %v624_v20, %v623_v37  ;;  %v628_v29 = vadd.f32 %v627_v50, %v624_v20  ;;  %s674_s0 = smul.f32 %s672_s15, %s672_s15  ;;  %s2777_s10 = sld [smem:[#allocation8 + $0x7]]  ;;  %v775_v34 = vstv %s2773_s29 }
 0x230   :  { %s673_s7 = smul.f32 0.00048828125, %s671_s1  ;;  %s2779_s11 = sld [smem:[#allocation8 + $0x19]] }
 0x231   :  { %v2735_v24 = vmax.f32 %v625_v6, 0.0  ;;  %v2737_v32 = vmax.f32 %v628_v29, 0.0  ;;  %s2781_s22 = sld [smem:[#allocation8 + $0x2b]] }
 0x232   :  { %s675_s8 = ssub.f32 %s673_s7, %s674_s0 }
 0x233   :  { %855 = vrot.lane.b32.xlu0 %v2737_v32, %s3884_s14  ;;  %693 = vrot.lane.b32.xlu1 %v2735_v24, %s3884_s14  ;;  %s2783_s12 = sld [smem:[#allocation8 + $0x3d]]  ;;  %v886_v58 = vrot.slane %v2737_v32, 7  ;;  %v748_v63 = vrot.slane %v2735_v24, 7  ;;  %v782_v49 = vrot.slane %v2735_v24, 1  ;;  %v2911_v48 = vmul.f32 %v767_v62, %v2735_v24 }
 0x234   :  { %s676_s24 = sadd.f32 1e-05, %s675_s8  ;;  %v779_v45 = vstv %s2775_s30  ;;  %v2916_v42 = vmul.f32 %v771_v35, %v2735_v24  ;;  %v2921_v37 = vmul.f32 %v775_v34, %v2735_v24  ;;  %v904_v29 = vrot.slane %v2737_v32, 1 }
 0x235   :  { %3886 = sst [smem:[#allocation20_spill]] %s2777_s10  ;;  %v785_v0 = vstv %s2777_s10  ;;  %v887_v1 = vsel %vm117_vm0, %v886_v58, 0.0  ;;  %v749_v47 = vsel %vm117_vm0, %v748_v63, 0.0  ;;  %v2928_v50 = vmul.f32 %v779_v45, %v2735_v24 }
 0x236   :  { %v677_v60 = vstv %s676_s24  ;;  %3887 = sst [smem:[#allocation21_spill]] %s2779_s11  ;;  %v789_v61 = vstv %s2779_s11  ;;  %v783_v20 = vsel %vm122_vm1, %v782_v49, 0.0  ;;  %v905_v49 = vsel %vm122_vm1, %v904_v29, 0.0 }
 0x237   :  { %1924 = vrsqrt.f32 %v677_v60  ;;  %800 = vrot.lane.b32.xlu1 %v2735_v24, %s3885_s25  ;;  %3888 = sst [smem:[#allocation22_spill]] %s2781_s22  ;;  %v793_v14 = vstv %s2781_s22  ;;  %v2978_v58 = vmul.f32 %v785_v0, %v783_v20  ;;  %v2985_v63 = vmul.f32 %v789_v61, %v783_v20 }
 0x238   :  { %s2785_s23 = sld [smem:[#allocation8]]  ;;  %v3004_v13 = vmul.f32 %v771_v35, %v2737_v32  ;;  %v3038_v24 = vmul.f32 %v905_v49, %v793_v14 }
 0x239   :  { %s2787_s9 = sld [smem:[#allocation8 + $0x12]]  ;;  %v797_v19 = vstv %s2783_s12 }
 0x23a   :  { %s2789_s17 = sld [smem:[#allocation8 + $0x24]] }
 0x23b   :  { %914 = vrot.lane.b32.xlu1 %v2737_v32, %s3885_s25  ;;  %s2791_s26 = sld [smem:[#allocation8 + $0x36]] }
 0x23c   :  { %s2793_s5 = sld [smem:[#allocation8 + $0x3]] }
 0x23d   :  { %s2797_s1 = sld [smem:[#allocation8 + $0x27]] }
 0x23e   :  { %3889 = sst [smem:[#allocation23_spill]] %s2785_s23  ;;  %v3772_v11 = vstv %s2785_s23 }
 0x23f   :  { %3890 = sst [smem:[#allocation24_spill]] %s2787_s9  ;;  %v3771_v16 = vstv %s2787_s9 }
 0x240   :  { %3891 = sst [smem:[#allocation25_spill]] %s2789_s17  ;;  %v3773_v44 = vstv %s2789_s17 }
 0x241   :  { %3892 = sst [smem:[#allocation26_spill]] %s2791_s26 }
 0x242   :  { %3893 = sst [smem:[#allocation27_spill]] %s2793_s5  ;;  %v715_v25 = vstv %s2793_s5 }
 0x243   :  { %3895 = sst [smem:[#allocation30_spill]] %s2797_s1 }
 0x244   :  { %v1925_v22 = vpop.eup %1924  ;;  %s2799_s0 = sld [smem:[#allocation8 + $0x39]] }
 0x245   :  { %1869 = vpush %v1925_v22  ;;  %s2801_s7 = sld [smem:[#allocation8 + $0x6]] }
 0x246   :  { %s2803_s8 = sld [smem:[#allocation8 + $0x18]] }
 0x247   :  { %s2807_s24 = sld [smem:[#allocation8 + $0x3c]] }
 0x248   :  { %s2875_s22 = sld [smem:[#allocation8 + $0x3e]] }
 0x249   :  { %s2881_s9 = sld [smem:[#allocation8 + $0x9]] }
 0x24a   :  { %3896 = sst [smem:[#allocation28_spill]] %s2799_s0 }
 0x24b   :  { %3897 = sst [smem:[#allocation31_spill]] %s2801_s7 }
 0x24c   :  { %3898 = sst [smem:[#allocation35_spill]] %s2803_s8 }
 0x24d   :  { %3900 = sst [smem:[#allocation37_spill]] %s2807_s24 }
 0x24e   :  { %s2825_s24 = sld [smem:[#allocation8 + $0x34]] }
 0x24f   :  { %s2890_s8 = sld [smem:[#allocation8 + $0x2d]] }
 0x250   :  { %s2923_s0 = sld [smem:[#allocation8 + $0x1e]] }
 0x251   :  { %s2934_s26 = sld [smem:[#allocation8 + $0x30]] }
 0x252   :  { %s2948_s5 = sld [smem:[#allocation8 + $0x42]] }
 0x253   :  { %3949 = sst [smem:[#allocation22_spill]] %s2997_s21 }
 0x254   :  { %3908 = sst [smem:[#allocation45_spill]] %s2825_s24 }
 0x255   :  { %s2841_s24 = sld [smem:[#allocation8 + $0x26]] }
 0x256   :  { %s3011_s1 = sld [smem:[#allocation8 + $0x45]] }
 0x257   :  { %s3952_s29 = sld [smem:[#allocation23_spill]] }
 0x258   :  { %s3953_s30 = sld [smem:[#allocation24_spill]] }
 0x259   :  { %s3974_s12 = sld [smem:[#allocation31_spill]] }
 0x25a   :  { %s3975_s23 = sld [smem:[#allocation35_spill]] }
 0x25b   :  { %3916 = sst [smem:[#allocation53_spill]] %s2841_s24 }
 0x25c   :  { %s2863_s24 = sld [smem:[#allocation8 + $0x1a]] }
 0x25d   :  { %s3180_s7 = sld [smem:[#allocation8 + $0xe]] }
 0x262   :  { %3922 = sst [smem:[#allocation58_spill]] %s2863_s24 }
 0x263   :  { %s3948_s20 = sld [smem:[#allocation58_spill]] }
 0x276   :  { %s1870_s13 = spop %1869 }
 0x277   :  { %s681_s16 = smul.f32 %s1870_s13, %s1671_s3  ;;  %s2811_s3 = sld [smem:[#allocation8 + $0xd]] }
 0x278   :  { %s2815_s13 = sld [smem:[#allocation8 + $0x1c]] }
 0x279   :  { %s683_s2 = smul.f32 %s681_s16, %s672_s15  ;;  %v685_v38 = vstv %s681_s16  ;;  %s2795_s15 = sld [smem:[#allocation8 + $0x15]] }
 0x27a   :  { %v686_v55 = vmul.f32 %v685_v38, %v2715_v30  ;;  %v690_v40 = vmul.f32 %v685_v38, %v2721_v7  ;;  %s2817_s16 = sld [smem:[#allocation8 + $0x1f]]  ;;  %v751_v30 = vstv %s2761_s18  ;;  %v755_v7 = vstv %s2763_s19 }
 0x27b   :  { %s684_s4 = ssub.f32 %s1672_s6, %s683_s2  ;;  %v2938_v60 = vmul.f32 %v887_v1, %v751_v30  ;;  %v2942_v22 = vmul.f32 %v887_v1, %v755_v7  ;;  %v2946_v38 = vmul.f32 %v767_v62, %v2737_v32  ;;  %v2974_v62 = vmul.f32 %v763_v57, %v749_v47 }
 0x27c   :  { %s2813_s6 = sld [smem:[#allocation8 + $0x10]] }
 0x27d   :  { %v687_v54 = vstv %s684_s4  ;;  %3901 = sst [smem:[#allocation38_spill]] %s2811_s3 }
 0x27e   :  { %v688_v4 = vadd.f32 %v687_v54, %v686_v55  ;;  %v691_v18 = vadd.f32 %v690_v40, %v687_v54  ;;  %3903 = sst [smem:[#allocation40_spill]] %s2815_s13  ;;  %v2952_v55 = vmul.f32 %v887_v1, %v759_v5  ;;  %v2956_v40 = vmul.f32 %v887_v1, %v763_v57 }
 0x27f   :  { %3894 = sst [smem:[#allocation29_spill]] %s2795_s15  ;;  %v3774_v36 = vstv %s2795_s15  ;;  %v2960_v54 = vmul.f32 %v751_v30, %v749_v47  ;;  %v2993_v57 = vmul.f32 %v797_v19, %v783_v20  ;;  %v3032_v30 = vmul.f32 %v905_v49, %v789_v61 }
 0x280   :  { %v2749_v27 = vmax.f32 %v688_v4, 0.0  ;;  %v2751_v31 = vmax.f32 %v691_v18, 0.0  ;;  %3904 = sst [smem:[#allocation41_spill]] %s2817_s16  ;;  %v2964_v4 = vmul.f32 %v755_v7, %v749_v47  ;;  %v2970_v18 = vmul.f32 %v759_v5, %v749_v47 }
 0x281   :  { %s2819_s2 = sld [smem:[#allocation8 + $0x22]]  ;;  %v2989_v5 = vmul.f32 %v793_v14, %v783_v20  ;;  %v3009_v20 = vmul.f32 %v775_v34, %v2737_v32  ;;  %v3019_v47 = vmul.f32 %v779_v45, %v2737_v32  ;;  %v3028_v34 = vmul.f32 %v905_v49, %v785_v0 }
 0x282   :  { %1107 = vrot.lane.b32.xlu1 %v2751_v31, %s3884_s14  ;;  %945 = vrot.lane.b32.xlu0 %v2749_v27, %s3884_s14  ;;  %s2805_s14 = sld [smem:[#allocation8 + $0x2a]]  ;;  %v3042_v32 = vmul.f32 %v905_v49, %v797_v19  ;;  %v1000_v61 = vrot.slane %v2749_v27, 7  ;;  %v1034_v14 = vrot.slane %v2749_v27, 1  ;;  %v1138_v19 = vrot.slane %v2751_v31, 7 }
 0x283   :  { %3902 = sst [smem:[#allocation39_spill]] %s2813_s6 }
 0x284   :  { %s2821_s4 = sld [smem:[#allocation8 + $0x2e]]  ;;  %v3066_v28 = vsel %vm117_vm0, %v1000_v61, 0.0  ;;  %v3077_v41 = vsel %vm122_vm1, %v1034_v14, 0.0  ;;  %v3081_v49 = vsel %vm117_vm0, %v1138_v19, 0.0 }
 0x285   :  { %s2827_s3 = sld [smem:[#allocation8 + $0x40]] }
 0x286   :  { %1166 = vrot.lane.b32.xlu1 %v2751_v31, %s3885_s25  ;;  %1052 = vrot.lane.b32.xlu0 %v2749_v27, %s3885_s25  ;;  %s2809_s25 = sld [smem:[#allocation8 + $0xa]] }
 0x287   :  { %3905 = sst [smem:[#allocation42_spill]] %s2819_s2 }
 0x288   :  { %3899 = sst [smem:[#allocation36_spill]] %s2805_s14 }
 0x289   :  { %s2823_s14 = sld [smem:[#allocation8 + $0x31]] }
 0x28a   :  { %3906 = sst [smem:[#allocation43_spill]] %s2821_s4 }
 0x28b   :  { %3909 = sst [smem:[#allocation46_spill]] %s2827_s3 }
 0x28c   :  { %s2829_s6 = sld [smem:[#allocation8 + $0x43]]  ;;  %v1003_v56 = vstv %s2809_s25 }
 0x28d   :  { %s2831_s13 = sld [smem:[#allocation8 + $0x46]]  ;;  %v3101_v6 = vmul.f32 %v1003_v56, %v3066_v28  ;;  %v3125_v39 = vmul.f32 %v3081_v49, %v1003_v56 }
 0x28e   :  { %s2833_s16 = sld [smem:[#allocation8 + $0x5]] }
 0x28f   :  { %3907 = sst [smem:[#allocation44_spill]] %s2823_s14  ;;  %3967 = vst [vmem:[#allocation61_spill] sm:$0xff] %v3125_v39 }
 0x290   :  { %s2835_s2 = sld [smem:[#allocation8 + $0x17]] }
 0x291   :  { %s2837_s4 = sld [smem:[#allocation8 + $0x2]] }
 0x292   :  { %3910 = sst [smem:[#allocation47_spill]] %s2829_s6 }
 0x293   :  { %3911 = sst [smem:[#allocation48_spill]] %s2831_s13 }
 0x294   :  { %3912 = sst [smem:[#allocation49_spill]] %s2833_s16 }
 0x295   :  { %s2839_s14 = sld [smem:[#allocation8 + $0x14]] }
 0x296   :  { %3913 = sst [smem:[#allocation50_spill]] %s2835_s2 }
 0x297   :  { %3914 = sst [smem:[#allocation51_spill]] %s2837_s4 }
 0x298   :  { %s2843_s3 = sld [smem:[#allocation8 + $0x38]] }
 0x299   :  { %s2845_s6 = sld [smem:[#allocation8 + $0x29]] }
 0x29a   :  { %s2851_s4 = sld [smem:[#allocation8 + $0x3b]] }
 0x29b   :  { %3915 = sst [smem:[#allocation52_spill]] %s2839_s14 }
 0x29c   :  { %s3924_s27 = sld [smem:[#allocation38_spill]] }
 0x29d   :  { %s2869_s14 = sld [smem:[#allocation8 + $0x2c]] }
 0x29e   :  { %3917 = sst [smem:[#allocation54_spill]] %s2843_s3 }
 0x29f   :  { %3918 = sst [smem:[#allocation55_spill]] %s2845_s6 }
 0x2a0   :  { %3919 = sst [smem:[#allocation56_spill]] %s2851_s4 }
 0x2a1   :  { %s2857_s3 = sld [smem:[#allocation8 + $0x8]] }
 0x2a2   :  { %s3926_s10 = sld [smem:[#allocation40_spill]]  ;;  %v1019_v59 = vstv %s3924_s27 }
 0x2a3   :  { %s3927_s11 = sld [smem:[#allocation41_spill]]  ;;  %v3073_v33 = vmul.f32 %v1019_v59, %v2749_v27 }
 0x2a4   :  { %s3928_s24 = sld [smem:[#allocation42_spill]] }
 0x2a5   :  { %s3930_s17 = sld [smem:[#allocation44_spill]]  ;;  %v694_v7 = vpop.permute.xlu1 %693  ;;  %v856_v45 = vpop.permute.xlu0 %855  ;;  %3955 = vst [vmem:[#allocation19_spill] sm:$0xff] %v3073_v33 }
 0x2a6   :  { %s2885_s15 = sld [smem:[#allocation8 + $0x1b]]  ;;  %v3023_v35 = vsel %vm109_vm2, %v694_v7, 0.0  ;;  %v1156_v7 = vrot.slane %v2751_v31, 1  ;;  %v857_v1 = vsel %vm109_vm2, %v856_v45, 0.0 }
 0x2a7   :  { %3920 = sst [smem:[#allocation57_spill]] %s2857_s3  ;;  %v696_v29 = vrot.slane %v3023_v35, 7  ;;  %v858_v61 = vrot.slane %v857_v1, 7  ;;  %v730_v19 = vrot.slane %v3023_v35, 1  ;;  %v868_v51 = vmul.f32 %v857_v1, %v715_v25 }
 0x2a8   :  { %s3925_s3 = sld [smem:[#allocation39_spill]]  ;;  %v1007_v2 = vstv %s3926_s10  ;;  %v3090_v21 = vsel %vm122_vm1, %v1156_v7, 0.0  ;;  %v876_v8 = vrot.slane %v857_v1, 1 }
 0x2a9   :  { %v1023_v26 = vstv %s3927_s11  ;;  %s2895_s4 = sld [smem:[#allocation8 + $0x3f]]  ;;  %v697_v45 = vsel %vm117_vm0, %v696_v29, 0.0  ;;  %v3086_v29 = vmul.f32 %v1019_v59, %v2751_v31  ;;  %v3145_v56 = vmul.f32 %v3081_v49, %v1007_v2 }
 0x2aa   :  { %v1041_v53 = vstv %s3928_s24  ;;  %s2903_s6 = sld [smem:[#allocation8 + $0xc]]  ;;  %v3095_v14 = vmul.f32 %v1023_v26, %v2749_v27  ;;  %v3106_v59 = vmul.f32 %v1023_v26, %v2751_v31  ;;  %v700_v0 = vmul.f32 %v3772_v11, %v697_v45 }
 0x2ab   :  { %v3770_v12 = vstv %s3930_s17  ;;  %3936 = sst [smem:[#allocation38_spill]] %s2934_s26  ;;  %3958 = vst [vmem:[#allocation32_spill] sm:$0xff] %v3086_v29  ;;  %v704_v3 = vmul.f32 %v3771_v16, %v697_v45  ;;  %v3140_v23 = vmul.f32 %v1041_v53, %v3077_v41  ;;  %3972 = vst [vmem:[#allocation65_spill] sm:$0xff] %v3145_v56  ;;  %v708_v43 = vmul.f32 %v3773_v44, %v697_v45 }
 0x2ac   :  { %3939 = sst [smem:[#allocation41_spill]] %s2948_s5  ;;  %3961 = vst [vmem:[#allocation33_spill] sm:$0xff] %v3095_v14  ;;  %3963 = vst [vmem:[#allocation34_spill] sm:$0xff] %v3106_v59  ;;  %v3111_v7 = vmul.f32 %v3770_v12, %v2749_v27  ;;  %v3135_v12 = vmul.f32 %v1007_v2, %v3066_v28  ;;  %v716_v16 = vmul.f32 %v715_v25, %v3023_v35  ;;  %v731_v2 = vsel %vm122_vm1, %v730_v19, 0.0 }
 0x2ad   :  { %s3940_s16 = sld [smem:[#allocation52_spill]]  ;;  %3971 = vst [vmem:[#allocation64_spill] sm:$0xff] %v3140_v23  ;;  %v720_v11 = vmul.f32 %v3774_v36, %v3023_v35  ;;  %v3979_v25 = vstv %s3952_s29  ;;  %v3980_v14 = vstv %s3953_s30 }
 0x2ae   :  { %v1037_v52 = vstv %s3925_s3  ;;  %s3941_s24 = sld [smem:[#allocation53_spill]]  ;;  %3964 = vst [vmem:[#allocation59_spill] sm:$0xff] %v3111_v7  ;;  %3970 = vst [vmem:[#allocation63_spill] sm:$0xff] %v3135_v12  ;;  %v717_v59 = vadd.f32 %v716_v16, %v700_v0  ;;  %v3985_v16 = vstv %s3974_s12 }
 0x2af   :  { %s2966_s2 = sld [smem:[#allocation8 + $0xf]]  ;;  %v3120_v46 = vmul.f32 %v1037_v52, %v3077_v41  ;;  %v3130_v26 = vmul.f32 %v3090_v21, %v1037_v52  ;;  %v859_v52 = vsel %vm117_vm0, %v858_v61, 0.0  ;;  %v3164_v61 = vmul.f32 %v3090_v21, %v1041_v53 }
 0x2b0   :  { %s3943_s10 = sld [smem:[#allocation54_spill]]  ;;  %v721_v23 = vadd.f32 %v720_v11, %v704_v3  ;;  %v860_v56 = vmul.f32 %v859_v52, %v3979_v25  ;;  %v862_v29 = vmul.f32 %v859_v52, %v3980_v14  ;;  %v734_v11 = vmul.f32 %v3985_v16, %v731_v2  ;;  %v801_v16 = vpop.permute.xlu1 %800 }
 0x2b1   :  { %s3944_s3 = sld [smem:[#allocation55_spill]]  ;;  %3966 = vst [vmem:[#allocation60_spill] sm:$0xff] %v3120_v46  ;;  %3969 = vst [vmem:[#allocation62_spill] sm:$0xff] %v3130_v26  ;;  %v3986_v3 = vstv %s3975_s23 }
 0x2b2   :  { %s3945_s18 = sld [smem:[#allocation56_spill]]  ;;  %3976 = vst [vmem:[#allocation66_spill] sm:$0xff] %v3164_v61  ;;  %v738_v0 = vmul.f32 %v3986_v3, %v731_v2 }
 0x2b3   :  { %s2981_s19 = sld [smem:[#allocation8 + $0x21]] }
 0x2b4   :  { %s3947_s17 = sld [smem:[#allocation57_spill]] }
 0x2b5   :  { %3942 = sst [smem:[#allocation20_spill]] %s2966_s2 }
 0x2b6   :  { %3950 = sst [smem:[#allocation52_spill]] %s3011_s1 }
 0x2b7   :  { %s3951_s28 = sld [smem:[#allocation44_spill]] }
 0x2b8   :  { %s3959_s13 = sld [smem:[#allocation25_spill]] }
 0x2b9   :  { %3946 = sst [smem:[#allocation21_spill]] %s2981_s19 }
 0x2ba   :  { %s3962_s21 = sld [smem:[#allocation29_spill]] }
 0x2bb   :  { %s3965_s27 = sld [smem:[#allocation26_spill]] }
 0x2bc   :  { %s3968_s11 = sld [smem:[#allocation30_spill]] }
 0x2bd   :  { %s3973_s25 = sld [smem:[#allocation28_spill]] }
 0x2be   :  { %v3981_v12 = vstv %s3959_s13  ;;  %s3983_s1 = sld [smem:[#allocation36_spill]] }
 0x2bf   :  { %v864_v19 = vmul.f32 %v859_v52, %v3981_v12  ;;  %s3188_s19 = sld [smem:[#allocation8 + $0x20]] }
 0x2c0   :  { %s3988_s29 = sld [smem:[#allocation43_spill]] }
 0x2c1   :  { %v3977_v44 = vstv %s3965_s27  ;;  %s3991_s30 = sld [smem:[#allocation37_spill]] }
 0x2c2   :  { %v712_v7 = vmul.f32 %v3977_v44, %v697_v45  ;;  %v3978_v36 = vstv %s3968_s11  ;;  %v3984_v61 = vmov %v3977_v44  ;;  %v3989_v25 = vstv %s3968_s11  ;;  %s3198_s13 = sld [smem:[#allocation8 + $0xb]] }
 0x2c3   :  { %v724_v26 = vmul.f32 %v3978_v36, %v3023_v35  ;;  %v3982_v46 = vstv %s3973_s25  ;;  %v866_v44 = vmul.f32 %v859_v52, %v3984_v61  ;;  %v3987_v36 = vstv %s3962_s21  ;;  %s3992_s27 = sld [smem:[#allocation45_spill]] }
 0x2c4   :  { %v728_v53 = vmul.f32 %v3982_v46, %v3023_v35  ;;  %v870_v14 = vmul.f32 %v857_v1, %v3987_v36  ;;  %v872_v12 = vmul.f32 %v857_v1, %v3989_v25  ;;  %v3990_v39 = vmov %v3982_v46  ;;  %s3202_s21 = sld [smem:[#allocation8 + $0x11]] }
 0x2c5   :  { %v725_v45 = vadd.f32 %v724_v26, %v708_v43  ;;  %v874_v33 = vmul.f32 %v857_v1, %v3990_v39  ;;  %v877_v46 = vsel %vm122_vm1, %v876_v8, 0.0  ;;  %v735_v35 = vadd.f32 %v734_v11, %v717_v59  ;;  %s3204_s11 = sld [smem:[#allocation8 + $0x1d]] }
 0x2c6   :  { %v729_v43 = vadd.f32 %v728_v53, %v712_v7  ;;  %v739_v26 = vadd.f32 %v738_v0, %v721_v23  ;;  %v3993_v52 = vstv %s3983_s1  ;;  %v869_v39 = vadd.f32 %v868_v51, %v860_v56  ;;  %s3213_s25 = sld [smem:[#allocation8 + $0x23]] }
 0x2c7   :  { %v742_v61 = vmul.f32 %v3993_v52, %v731_v2  ;;  %v871_v1 = vadd.f32 %v870_v14, %v862_v29  ;;  %v873_v3 = vadd.f32 %v872_v12, %v864_v19  ;;  %v3994_v8 = vstv %s3988_s29  ;;  %s3228_s2 = sld [smem:[#allocation8 + $0x2f]] }
 0x2c8   :  { %v3209_v36 = vmul.f32 %v3994_v8, %v3066_v28  ;;  %v875_v7 = vadd.f32 %v874_v33, %v866_v44  ;;  %v3995_v53 = vstv %s3991_s30  ;;  %v3997_v51 = vstv %s3974_s12  ;;  %s4001_s5 = sld [smem:[#allocation46_spill]] }
 0x2c9   :  { %v743_v59 = vadd.f32 %v742_v61, %v725_v45  ;;  %v746_v23 = vmul.f32 %v3995_v53, %v731_v2  ;;  %v3996_v11 = vstv %s3992_s27  ;;  %v878_v29 = vmul.f32 %v877_v46, %v3997_v51  ;;  %s4002_s26 = sld [smem:[#allocation47_spill]] }
 0x2ca   :  { %v3218_v0 = vmul.f32 %v3996_v11, %v3077_v41  ;;  %v3998_v56 = vstv %s3975_s23  ;;  %v3999_v14 = vmov %v3993_v52  ;;  %v802_v33 = vsel %vm114_vm3, %v801_v16, 0.0  ;;  %s4009_s12 = sld [smem:[#allocation49_spill]] }
 0x2cb   :  { %v880_v19 = vmul.f32 %v877_v46, %v3998_v56  ;;  %v882_v25 = vmul.f32 %v877_v46, %v3999_v14  ;;  %v4000_v2 = vmov %v3995_v53  ;;  %v747_v45 = vadd.f32 %v746_v23, %v729_v43  ;;  %v915_v14 = vpop.permute.xlu1 %914  ;;  %s4010_s23 = sld [smem:[#allocation50_spill]] }
 0x2cc   :  { %v884_v44 = vmul.f32 %v877_v46, %v4000_v2  ;;  %v753_v12 = vadd.f32 %v2960_v54, %v735_v35  ;;  %v757_v52 = vadd.f32 %v2964_v4, %v739_v26  ;;  %v879_v61 = vadd.f32 %v878_v29, %v869_v39 }
 0x2cd   :  { %v881_v8 = vadd.f32 %v880_v19, %v871_v1  ;;  %v883_v53 = vadd.f32 %v882_v25, %v873_v3  ;;  %v4003_v11 = vstv %s3988_s29  ;;  %v761_v56 = vadd.f32 %v2970_v18, %v743_v59 }
 0x2ce   :  { %v3237_v51 = vmul.f32 %v3081_v49, %v4003_v11  ;;  %v885_v16 = vadd.f32 %v884_v44, %v875_v7  ;;  %v4004_v46 = vstv %s3951_s28  ;;  %v4005_v43 = vstv %s3992_s27  ;;  %s4008_s28 = sld [smem:[#allocation51_spill]] }
 0x2cf   :  { %v3243_v2 = vmul.f32 %v4004_v46, %v2751_v31  ;;  %v3248_v54 = vmul.f32 %v3090_v21, %v4005_v43  ;;  %v803_v4 = vrot.slane %v802_v33, 7  ;;  %v1074_v35 = vstv %s3180_s7 }
 0x2d0   :  { %v4006_v26 = vstv %s4001_s5  ;;  %v4007_v18 = vstv %s4002_s26  ;;  %v765_v3 = vadd.f32 %v2974_v62, %v747_v45  ;;  %v769_v7 = vadd.f32 %v2911_v48, %v753_v12 }
 0x2d1   :  { %v3254_v39 = vmul.f32 %v4006_v26, %v3066_v28  ;;  %v3259_v1 = vmul.f32 %v4007_v18, %v2749_v27  ;;  %v773_v59 = vadd.f32 %v2916_v42, %v757_v52  ;;  %v1078_v23 = vstv %s3188_s19 }
 0x2d2   :  { %v889_v29 = vadd.f32 %v2938_v60, %v879_v61  ;;  %v891_v19 = vadd.f32 %v2942_v22, %v881_v8  ;;  %v893_v28 = vadd.f32 %v2952_v55, %v883_v53  ;;  %v3270_v25 = vsel %vm114_vm3, %v915_v14, 0.0 }
 0x2d3   :  { %v895_v27 = vadd.f32 %v2956_v40, %v885_v16  ;;  %v777_v44 = vadd.f32 %v2921_v37, %v761_v56  ;;  %v1058_v62 = vstv %s3198_s13  ;;  %v1092_v48 = vstv %s3202_s21 }
 0x2d4   :  { %v804_v42 = vsel %vm117_vm0, %v803_v4, 0.0  ;;  %v1062_v60 = vstv %s3204_s11  ;;  %v1096_v22 = vstv %s3213_s25  ;;  %v1066_v55 = vstv %s3228_s2  ;;  %s4082_s2 = sld [smem:[#allocation67_spill]] }
 0x2d5   :  { %v781_v45 = vadd.f32 %v2928_v50, %v765_v3  ;;  %v787_v40 = vadd.f32 %v2978_v58, %v769_v7  ;;  %v791_v37 = vadd.f32 %v2985_v63, %v773_v59  ;;  %v917_v12 = vrot.slane %v3270_v25, 7  ;;  %s1247_s11 = sld [smem:[#allocation10]] }
 0x2d6   :  { %v837_v52 = vrot.slane %v802_v33, 1  ;;  %v897_v61 = vadd.f32 %v2946_v38, %v889_v29  ;;  %v899_v8 = vadd.f32 %v3004_v13, %v891_v19  ;;  %v901_v53 = vadd.f32 %v3009_v20, %v893_v28  ;;  %s1249_s25 = sld [smem:[#allocation11]] }
 0x2d7   :  { %v795_v11 = vadd.f32 %v2989_v5, %v777_v44  ;;  %v4011_v16 = vstv %s4008_s28  ;;  %v4012_v14 = vstv %s3940_s16  ;;  %v903_v58 = vadd.f32 %v3019_v47, %v895_v27 }
 0x2d8   :  { %v807_v56 = vmul.f32 %v4011_v16, %v804_v42  ;;  %v811_v50 = vmul.f32 %v4012_v14, %v804_v42  ;;  %v4013_v63 = vstv %s3941_s24  ;;  %v4014_v43 = vstv %s4009_s12  ;;  %s4057_s24 = sld [smem:[#allocation52_spill]] }
 0x2d9   :  { %v815_v46 = vmul.f32 %v4013_v63, %v804_v42  ;;  %v823_v4 = vmul.f32 %v4014_v43, %v802_v33  ;;  %v4015_v38 = vstv %s4010_s23  ;;  %v4016_v26 = vstv %s3944_s3 }
 0x2da   :  { %v827_v13 = vmul.f32 %v4015_v38, %v802_v33  ;;  %v831_v20 = vmul.f32 %v4016_v26, %v802_v33  ;;  %v799_v5 = vadd.f32 %v2993_v57, %v781_v45  ;;  %v808_v18 = vadd.f32 %v807_v56, %v787_v40 }
 0x2db   :  { %v812_v3 = vadd.f32 %v811_v50, %v791_v37  ;;  %v918_v7 = vsel %vm117_vm0, %v917_v12, 0.0  ;;  %v838_v47 = vsel %vm122_vm1, %v837_v52, 0.0  ;;  %v907_v59 = vadd.f32 %v3028_v34, %v897_v61 }
 0x2dc   :  { %v909_v29 = vadd.f32 %v3032_v30, %v899_v8  ;;  %v911_v19 = vadd.f32 %v3038_v24, %v901_v53  ;;  %v816_v28 = vadd.f32 %v815_v46, %v795_v11  ;;  %v4017_v27 = vstv %s3943_s10  ;;  %s4034_s10 = sld [smem:[#allocation38_spill]] }
 0x2dd   :  { %v819_v44 = vmul.f32 %v4017_v27, %v804_v42  ;;  %v4018_v57 = vstv %s3945_s18  ;;  %v913_v40 = vadd.f32 %v3042_v32, %v903_v58  ;;  %v4019_v37 = vmov %v4011_v16 }
 0x2de   :  { %v835_v45 = vmul.f32 %v4018_v57, %v802_v33  ;;  %v919_v12 = vmul.f32 %v918_v7, %v4019_v37  ;;  %v4020_v52 = vmov %v4012_v14  ;;  %v4021_v34 = vmov %v4013_v63 }
 0x2df   :  { %v921_v16 = vmul.f32 %v918_v7, %v4020_v52  ;;  %v923_v30 = vmul.f32 %v918_v7, %v4021_v34  ;;  %v935_v24 = vrot.slane %v3270_v25, 1  ;;  %v820_v61 = vadd.f32 %v819_v44, %v799_v5 }
 0x2e0   :  { %v824_v8 = vadd.f32 %v823_v4, %v808_v18  ;;  %v828_v42 = vadd.f32 %v827_v13, %v812_v3  ;;  %v4022_v53 = vstv %s3947_s17  ;;  %v920_v33 = vadd.f32 %v919_v12, %v907_v59  ;;  %s4036_s17 = sld [smem:[#allocation41_spill]] }
 0x2e1   :  { %v841_v11 = vmul.f32 %v4022_v53, %v838_v47  ;;  %v922_v56 = vadd.f32 %v921_v16, %v909_v29  ;;  %v924_v32 = vadd.f32 %v923_v30, %v911_v19  ;;  %v4023_v14 = vmov %v4017_v27 }
 0x2e2   :  { %v925_v50 = vmul.f32 %v918_v7, %v4023_v14  ;;  %v832_v58 = vadd.f32 %v831_v20, %v816_v28  ;;  %v4024_v63 = vstv %s3948_s20  ;;  %v4025_v43 = vstv %s2869_s14  ;;  %s4045_s14 = sld [smem:[#allocation21_spill]] }
 0x2e3   :  { %v845_v46 = vmul.f32 %v4024_v63, %v838_v47  ;;  %v849_v38 = vmul.f32 %v4025_v43, %v838_v47  ;;  %v4026_v26 = vstv %s4009_s12  ;;  %v4027_v13 = vstv %s4010_s23 }
 0x2e4   :  { %v927_v27 = vmul.f32 %v3270_v25, %v4026_v26  ;;  %v926_v4 = vadd.f32 %v925_v50, %v913_v40  ;;  %v929_v5 = vmul.f32 %v3270_v25, %v4027_v13  ;;  %v4028_v18 = vstv %s3944_s3  ;;  %s3490_s3 = sld [smem:[#allocation8 + $0x41]] }
 0x2e5   :  { %v931_v3 = vmul.f32 %v3270_v25, %v4028_v18  ;;  %v936_v7 = vsel %vm122_vm1, %v935_v24, 0.0  ;;  %v836_v20 = vadd.f32 %v835_v45, %v820_v61  ;;  %v842_v59 = vadd.f32 %v841_v11, %v824_v8 }
 0x2e6   :  { %v846_v29 = vadd.f32 %v845_v46, %v828_v42  ;;  %v4029_v19 = vstv %s2875_s22  ;;  %v928_v44 = vadd.f32 %v927_v27, %v920_v33  ;;  %v930_v57 = vadd.f32 %v929_v5, %v922_v56  ;;  %s4043_s22 = sld [smem:[#allocation20_spill]] }
 0x2e7   :  { %v853_v28 = vmul.f32 %v4029_v19, %v838_v47  ;;  %v932_v40 = vadd.f32 %v931_v3, %v924_v32  ;;  %v4030_v37 = vstv %s3945_s18  ;;  %v850_v34 = vadd.f32 %v849_v38, %v832_v58 }
 0x2e8   :  { %v933_v12 = vmul.f32 %v3270_v25, %v4030_v37  ;;  %v4031_v30 = vmov %v4022_v53  ;;  %v4032_v8 = vmov %v4024_v63  ;;  %v4033_v53 = vmov %v4025_v43 }
 0x2e9   :  { %v937_v24 = vmul.f32 %v936_v7, %v4031_v30  ;;  %v939_v42 = vmul.f32 %v936_v7, %v4032_v8  ;;  %v941_v25 = vmul.f32 %v936_v7, %v4033_v53  ;;  %v854_v33 = vadd.f32 %v853_v28, %v836_v20 }
 0x2ea   :  { %v934_v61 = vadd.f32 %v933_v12, %v926_v4  ;;  %v4035_v56 = vmov %v4029_v19  ;;  %v4037_v43 = vstv %s2881_s9  ;;  %v4038_v26 = vstv %s2885_s15  ;;  %s3464_s9 = sld [smem:[#allocation8 + $0x32]] }
 0x2eb   :  { %v943_v32 = vmul.f32 %v936_v7, %v4035_v56  ;;  %v938_v58 = vadd.f32 %v937_v24, %v928_v44  ;;  %v940_v63 = vadd.f32 %v939_v42, %v930_v57  ;;  %v942_v15 = vadd.f32 %v941_v25, %v932_v40  ;;  %s4076_s15 = sld [smem:[#allocation48_spill]] }
 0x2ec   :  { %v4039_v4 = vstv %s2890_s8  ;;  %v4040_v5 = vstv %s2895_s4  ;;  %v4041_v7 = vstv %s2903_s6  ;;  %v4042_v19 = vstv %s2923_s0  ;;  %s4055_s0 = sld [smem:[#allocation22_spill]] }
 0x2ed   :  { %v944_v3 = vadd.f32 %v943_v32, %v934_v61  ;;  %v4044_v44 = vstv %s4034_s10  ;;  %v4046_v30 = vstv %s4036_s17  ;;  %v4047_v61 = vmov %v4041_v7  ;;  %s3482_s8 = sld [smem:[#allocation8 + $0x35]] }
 0x2ee   :  { %v4048_v42 = vmov %v4042_v19  ;;  %v4049_v32 = vstv %s4043_s22  ;;  %s3515_s6 = sld [smem:[#allocation8 + $0x44]] }
 0x2f4   :  { %v946_v52 = vpop.permute.xlu0 %945  ;;  %v1108_v16 = vpop.permute.xlu1 %1107 }
 0x2f5   :  { %v947_v45 = vsel %vm109_vm2, %v946_v52, 0.0  ;;  %v1109_v47 = vsel %vm109_vm2, %v1108_v16, 0.0 }
 0x2f6   :  { %v948_v11 = vrot.slane %v947_v45, 7  ;;  %v982_v14 = vrot.slane %v947_v45, 1  ;;  %v1110_v50 = vrot.slane %v1109_v47, 7  ;;  %v968_v20 = vmul.f32 %v4041_v7, %v947_v45 }
 0x2f7   :  { %v972_v28 = vmul.f32 %v4042_v19, %v947_v45  ;;  %v976_v57 = vmul.f32 %v4044_v44, %v947_v45  ;;  %v980_v24 = vmul.f32 %v4046_v30, %v947_v45  ;;  %v1120_v8 = vmul.f32 %v1109_v47, %v4047_v61 }
 0x2f8   :  { %v949_v46 = vsel %vm117_vm0, %v948_v11, 0.0  ;;  %v1053_v40 = vpop.permute.xlu0 %1052  ;;  %v983_v52 = vsel %vm122_vm1, %v982_v14, 0.0  ;;  %v1111_v16 = vsel %vm117_vm0, %v1110_v50, 0.0  ;;  %v1122_v53 = vmul.f32 %v1109_v47, %v4048_v42 }
 0x2f9   :  { %v952_v38 = vmul.f32 %v4037_v43, %v949_v46  ;;  %v956_v27 = vmul.f32 %v4038_v26, %v949_v46  ;;  %v960_v13 = vmul.f32 %v4039_v4, %v949_v46  ;;  %v964_v18 = vmul.f32 %v4040_v5, %v949_v46 }
 0x2fa   :  { %v1128_v25 = vrot.slane %v1109_v47, 1  ;;  %v3386_v56 = vsel %vm114_vm3, %v1053_v40, 0.0  ;;  %v986_v14 = vmul.f32 %v4049_v32, %v983_v52  ;;  %v4050_v50 = vmov %v4037_v43 }
 0x2fb   :  { %v953_v37 = vadd.f32 %v952_v38, %v842_v59  ;;  %v957_v12 = vadd.f32 %v956_v27, %v846_v29  ;;  %v961_v11 = vadd.f32 %v960_v13, %v850_v34  ;;  %v965_v59 = vadd.f32 %v964_v18, %v854_v33  ;;  %v1167_v27 = vpop.permute.xlu1 %1166 }
 0x2fc   :  { %v1112_v46 = vmul.f32 %v1111_v16, %v4050_v50  ;;  %v4051_v43 = vmov %v4038_v26  ;;  %v4052_v38 = vmov %v4039_v4  ;;  %v4053_v5 = vstv %s4045_s14 }
 0x2fd   :  { %v969_v29 = vadd.f32 %v968_v20, %v953_v37  ;;  %v1114_v45 = vmul.f32 %v1111_v16, %v4051_v43  ;;  %v1116_v26 = vmul.f32 %v1111_v16, %v4052_v38  ;;  %v973_v4 = vadd.f32 %v972_v28, %v957_v12 }
 0x2fe   :  { %v990_v7 = vmul.f32 %v4053_v5, %v983_v52  ;;  %v4054_v34 = vmov %v4044_v44  ;;  %v4056_v13 = vmov %v4046_v30  ;;  %v1113_v19 = vadd.f32 %v1112_v46, %v938_v58 }
 0x2ff   :  { %v1124_v33 = vmul.f32 %v1109_v47, %v4054_v34  ;;  %v1126_v18 = vmul.f32 %v1109_v47, %v4056_v13  ;;  %v987_v20 = vadd.f32 %v986_v14, %v969_v29  ;;  %v1115_v44 = vadd.f32 %v1114_v45, %v940_v63 }
 0x300   :  { %v4058_v40 = vstv %s2895_s4  ;;  %v1117_v30 = vadd.f32 %v1116_v26, %v942_v15  ;;  %v1129_v61 = vsel %vm122_vm1, %v1128_v25, 0.0  ;;  %v1055_v28 = vrot.slane %v3386_v56, 7  ;;  %v4063_v26 = vld [vmem:[#allocation19_spill] sm:$0xff] }
 0x301   :  { %v1118_v37 = vmul.f32 %v1111_v16, %v4058_v40  ;;  %v3409_v12 = vsel %vm114_vm3, %v1167_v27, 0.0  ;;  %v977_v42 = vadd.f32 %v976_v57, %v961_v11  ;;  %v981_v32 = vadd.f32 %v980_v24, %v965_v59 }
 0x302   :  { %v1121_v47 = vadd.f32 %v1120_v8, %v1113_v19  ;;  %v1123_v50 = vadd.f32 %v1122_v53, %v1115_v44  ;;  %v991_v29 = vadd.f32 %v990_v7, %v973_v4  ;;  %v4059_v14 = vstv %s4055_s0  ;;  %v4065_v7 = vld [vmem:[#allocation61_spill] sm:$0xff]  ;;  %v4067_v44 = vld [vmem:[#allocation63_spill] sm:$0xff] }
 0x303   :  { %v994_v58 = vmul.f32 %v4059_v14, %v983_v52  ;;  %v4060_v63 = vstv %s4057_s24  ;;  %v4061_v15 = vstv %s4043_s22  ;;  %v4062_v43 = vmov %v4053_v5 }
 0x304   :  { %v998_v16 = vmul.f32 %v4060_v63, %v983_v52  ;;  %v1130_v46 = vmul.f32 %v1129_v61, %v4061_v15  ;;  %v1132_v25 = vmul.f32 %v1129_v61, %v4062_v43  ;;  %v1089_v45 = vrot.slane %v3386_v56, 1  ;;  %v4072_v43 = vld [vmem:[#allocation64_spill] sm:$0xff] }
 0x305   :  { %v1169_v17 = vrot.slane %v3409_v12, 7  ;;  %v1005_v57 = vadd.f32 %v3101_v6, %v987_v20  ;;  %v1119_v24 = vadd.f32 %v1118_v37, %v944_v3  ;;  %v1125_v8 = vadd.f32 %v1124_v33, %v1117_v30  ;;  %v4066_v33 = vld [vmem:[#allocation60_spill] sm:$0xff] }
 0x306   :  { %v1131_v53 = vadd.f32 %v1130_v46, %v1121_v47  ;;  %v3424_v11 = vsel %vm117_vm0, %v1055_v28, 0.0  ;;  %v995_v52 = vadd.f32 %v994_v58, %v977_v42  ;;  %v999_v59 = vadd.f32 %v998_v16, %v981_v32  ;;  %v4068_v28 = vld [vmem:[#allocation32_spill] sm:$0xff]  ;;  %v4070_v58 = vld [vmem:[#allocation65_spill] sm:$0xff] }
 0x307   :  { %v1133_v38 = vadd.f32 %v1132_v25, %v1123_v50  ;;  %v1021_v27 = vadd.f32 %v4063_v26, %v1005_v57  ;;  %v4064_v4 = vmov %v4059_v14  ;;  %v3431_v6 = vsel %vm117_vm0, %v1169_v17, 0.0  ;;  %v4069_v50 = vld [vmem:[#allocation33_spill] sm:$0xff] }
 0x308   :  { %v1134_v5 = vmul.f32 %v1129_v61, %v4064_v4  ;;  %v1187_v3 = vrot.slane %v3409_v12, 1  ;;  %v1141_v34 = vadd.f32 %v4065_v7, %v1131_v53  ;;  %v1059_v20 = vmul.f32 %v1058_v62, %v3424_v11 }
 0x309   :  { %v1039_v13 = vadd.f32 %v4066_v33, %v1021_v27  ;;  %v3441_v19 = vsel %vm122_vm1, %v1089_v45, 0.0  ;;  %v1009_v40 = vadd.f32 %v4067_v44, %v991_v29  ;;  %v1127_v9 = vadd.f32 %v1126_v18, %v1119_v24  ;;  %v4071_v29 = vld [vmem:[#allocation62_spill] sm:$0xff] }
 0x30a   :  { %v1135_v37 = vadd.f32 %v1134_v5, %v1125_v8  ;;  %v1075_v30 = vmul.f32 %v1074_v35, %v3386_v56  ;;  %v1149_v42 = vadd.f32 %v4068_v28, %v1141_v34  ;;  %v1171_v47 = vmul.f32 %v3431_v6, %v1058_v62  ;;  %v4073_v45 = vld [vmem:[#allocation34_spill] sm:$0xff]  ;;  %v4075_v5 = vld [vmem:[#allocation59_spill] sm:$0xff] }
 0x30b   :  { %v1060_v32 = vadd.f32 %v1059_v20, %v1039_v13  ;;  %v1025_v14 = vadd.f32 %v4069_v50, %v1009_v40  ;;  %v1143_v63 = vadd.f32 %v4070_v58, %v1133_v38  ;;  %v1093_v18 = vmul.f32 %v1092_v48, %v3441_v19  ;;  %v4074_v27 = vld [vmem:[#allocation66_spill] sm:$0xff] }
 0x30c   :  { %v1159_v16 = vadd.f32 %v4071_v29, %v1149_v42  ;;  %v3459_v15 = vsel %vm122_vm1, %v1187_v3, 0.0  ;;  %v1063_v46 = vmul.f32 %v1062_v60, %v3424_v11  ;;  %v1013_v57 = vadd.f32 %v3209_v36, %v995_v52 }
 0x30d   :  { %v1076_v62 = vadd.f32 %v1075_v30, %v1060_v32  ;;  %v1043_v25 = vadd.f32 %v4072_v43, %v1025_v14  ;;  %v1151_v17 = vadd.f32 %v4073_v45, %v1143_v63  ;;  %v1179_v10 = vmul.f32 %v3409_v12, %v1074_v35 }
 0x30e   :  { %v1172_v24 = vadd.f32 %v1171_v47, %v1159_v16  ;;  %v1079_v8 = vmul.f32 %v1078_v23, %v3386_v56  ;;  %v1173_v53 = vmul.f32 %v3431_v6, %v1062_v60  ;;  %v1029_v3 = vadd.f32 %v4075_v5, %v1013_v57 }
 0x30f   :  { %v3478_v38 = vadd.f32 %v1093_v18, %v1076_v62  ;;  %v1064_v26 = vadd.f32 %v1063_v46, %v1043_v25  ;;  %v1161_v4 = vadd.f32 %v4074_v27, %v1151_v17  ;;  %v4077_v36 = vstv %s4057_s24 }
 0x310   :  { %v1136_v52 = vmul.f32 %v1129_v61, %v4077_v36  ;;  %v1180_v35 = vadd.f32 %v1179_v10, %v1172_v24  ;;  %v1189_v7 = vmul.f32 %v3459_v15, %v1092_v48  ;;  %v1145_v60 = vadd.f32 %v3237_v51, %v1135_v37 }
 0x311   :  { %1197 = vadd.xlane.f32.xlu0 %v3478_v38  ;;  %v1207_v34 = vmul.f32 %v3478_v38, %v3478_v38  ;;  %v1080_v33 = vadd.f32 %v1079_v8, %v1064_v26  ;;  %v1174_v61 = vadd.f32 %v1173_v53, %v1161_v4  ;;  %v1047_v13 = vadd.f32 %v3218_v0, %v1029_v3 }
 0x312   :  { %v1137_v20 = vadd.f32 %v1136_v52, %v1127_v9  ;;  %v1153_v44 = vadd.f32 %v3243_v2, %v1145_v60  ;;  %v1017_v48 = vadd.f32 %v3254_v39, %v999_v59  ;;  %v4078_v51 = vstv %s4076_s15 }
 0x313   :  { %v1050_v40 = vmul.f32 %v4078_v51, %v3077_v41  ;;  %1208 = vadd.xlane.f32.xlu1 %v1207_v34  ;;  %v3501_v37 = vadd.f32 %v1189_v7, %v1180_v35  ;;  %v1097_v30 = vmul.f32 %v1096_v22, %v3441_v19  ;;  %v1181_v28 = vmul.f32 %v3409_v12, %v1078_v23 }
 0x314   :  { %v1067_v0 = vmul.f32 %v1066_v55, %v3424_v11  ;;  %v1082_v2 = vstv %s3464_s9  ;;  %v1163_v39 = vadd.f32 %v3248_v54, %v1153_v44  ;;  %v1033_v41 = vadd.f32 %v3259_v1, %v1017_v48 }
 0x315   :  { %v4079_v59 = vstv %s4001_s5  ;;  %1218 = vadd.xlane.f32.xlu0 %v3501_v37  ;;  %v3521_v23 = vadd.f32 %v1097_v30, %v1080_v33  ;;  %v1182_v42 = vadd.f32 %v1181_v28, %v1174_v61  ;;  %v4080_v54 = vstv %s4002_s26  ;;  %s3538_s5 = sld [smem:[#allocation8 + $0x47]] }
 0x316   :  { %v1146_v9 = vmul.f32 %v3081_v49, %v4079_v59  ;;  %v1068_v32 = vadd.f32 %v1067_v0, %v1047_v13  ;;  %v1051_v47 = vadd.f32 %v1050_v40, %v1033_v41  ;;  %v1154_v14 = vmul.f32 %v4080_v54, %v2751_v31 }
 0x317   :  { %1260 = vadd.xlane.f32.xlu1 %v3521_v23  ;;  %v1228_v1 = vmul.f32 %v3501_v37, %v3501_v37  ;;  %v1191_v49 = vmul.f32 %v3459_v15, %v1096_v22  ;;  %v1083_v58 = vmul.f32 %v1082_v2, %v3386_v56  ;;  %v1175_v63 = vmul.f32 %v3431_v6, %v1066_v55 }
 0x318   :  { %v1147_v50 = vadd.f32 %v1146_v9, %v1137_v20  ;;  %v1100_v18 = vstv %s3482_s8  ;;  %v1070_v29 = vstv %s3490_s3  ;;  %v4081_v31 = vmov %v4078_v51 }
 0x319   :  { %v1164_v46 = vmul.f32 %v3090_v21, %v4081_v31  ;;  %1229 = vadd.xlane.f32.xlu0 %v1228_v1  ;;  %v3543_v62 = vadd.f32 %v1191_v49, %v1182_v42  ;;  %v1084_v43 = vadd.f32 %v1083_v58, %v1068_v32  ;;  %v1176_v25 = vadd.f32 %v1175_v63, %v1163_v39  ;;  %v1463_v31 = vld [vmem:[%s4082_s2 + $0x70] sm:$0xff] }
 0x31a   :  { %v1155_v16 = vadd.f32 %v1154_v14, %v1147_v50  ;;  %v1270_v55 = vmul.f32 %v3521_v23, %v3521_v23  ;;  %v1101_v45 = vmul.f32 %v1100_v18, %v3441_v19  ;;  %v1183_v17 = vmul.f32 %v3409_v12, %v1082_v2 }
 0x31b   :  { %1281 = vadd.xlane.f32.xlu1 %v3543_v62  ;;  %v1071_v57 = vmul.f32 %v1070_v29, %v3424_v11  ;;  %v1086_v24 = vstv %s3515_s6  ;;  %v1291_v53 = vmul.f32 %v3543_v62, %v3543_v62  ;;  %v1193_v26 = vmul.f32 %v3459_v15, %v1100_v18 }
 0x31c   :  { %v1165_v22 = vadd.f32 %v1164_v46, %v1155_v16  ;;  %v3552_v21 = vadd.f32 %v1101_v45, %v1084_v43  ;;  %v1184_v10 = vadd.f32 %v1183_v17, %v1176_v25  ;;  %v1087_v27 = vmul.f32 %v1086_v24, %v3386_v56  ;;  %v1464_v16 = vld [vmem:[%s4082_s2 + $0x78] sm:$0xff]  ;;  %v1462_v46 = vld [vmem:[%s4082_s2 + $0x68] sm:$0xff]  ;;  %v1461_v43 = vld [vmem:[%s4082_s2 + $0x60] sm:$0xff] }
 0x31d   :  { %1271 = vadd.xlane.f32.xlu0 %v1270_v55  ;;  %v1072_v8 = vadd.f32 %v1071_v57, %v1051_v47  ;;  %v1177_v4 = vmul.f32 %v3431_v6, %v1070_v29  ;;  %v1104_v5 = vstv %s3538_s5  ;;  %v1185_v7 = vmul.f32 %v3409_v12, %v1086_v24  ;;  %1775 = vmatprep.subr.mxu0 %v1464_v16  ;;  %v1460_v25 = vld [vmem:[%s4082_s2 + $0x58] sm:$0xff]  ;;  %v1458_v55 = vld [vmem:[%s4082_s2 + $0x48] sm:$0xff]  ;;  %v1457_v45 = vld [vmem:[%s4082_s2 + $0x40] sm:$0xff] }
 0x31e   :  { %v3561_v11 = vadd.f32 %v1193_v26, %v1184_v10  ;;  %v1333_v52 = vmul.f32 %v3552_v21, %v3552_v21  ;;  %v1105_v35 = vmul.f32 %v1104_v5, %v3441_v19  ;;  %v1195_v34 = vmul.f32 %v3459_v15, %v1104_v5  ;;  %1819 = vmatprep.subr.mxu1 %v1464_v16  ;;  %v1456_v17 = vld [vmem:[%s4082_s2 + $0x38] sm:$0xff]  ;;  %v1455_v57 = vld [vmem:[%s4082_s2 + $0x30] sm:$0xff] }
 0x31f   :  { %1323 = vadd.xlane.f32.xlu1 %v3552_v21  ;;  %v1088_v3 = vadd.f32 %v1087_v27, %v1072_v8  ;;  %v1178_v36 = vadd.f32 %v1177_v4, %v1165_v22  ;;  %1776 = vmatpush3.msra.mxu0 %v1464_v16  ;;  %v1459_v22 = vld [vmem:[%s4082_s2 + $0x50] sm:$0xff] }
 0x320   :  { %v1354_v6 = vmul.f32 %v3561_v11, %v3561_v11  ;;  %1835 = vmatpush3.msra.mxu1 %v1464_v16  ;;  %1777 = vmatprep.subr.mxu0 %v1463_v31 }
 0x321   :  { %1292 = vadd.xlane.f32.xlu0 %v1291_v53  ;;  %v3568_v60 = vadd.f32 %v1105_v35, %v1088_v3  ;;  %v1186_v56 = vadd.f32 %v1185_v7, %v1178_v36  ;;  %1820 = vmatprep.subr.mxu1 %v1463_v31 }
 0x322   :  { %1778 = vmatpush3.msra.mxu0 %v1463_v31  ;;  %1836 = vmatpush3.msra.mxu1 %v1463_v31 }
 0x323   :  { %1344 = vadd.xlane.f32.xlu1 %v3561_v11  ;;  %v3574_v33 = vadd.f32 %v1195_v34, %v1186_v56  ;;  %v1396_v19 = vmul.f32 %v3568_v60, %v3568_v60  ;;  %1779 = vmatprep.subr.mxu0 %v1462_v46 }
 0x324   :  { %1821 = vmatprep.subr.mxu1 %v1462_v46  ;;  %1780 = vmatpush3.msra.mxu0 %v1462_v46 }
 0x325   :  { %1334 = vadd.xlane.f32.xlu0 %v1333_v52  ;;  %v1417_v12 = vmul.f32 %v3574_v33, %v3574_v33  ;;  %1837 = vmatpush3.msra.mxu1 %v1462_v46 }
 0x326   :  { %1781 = vmatprep.subr.mxu0 %v1461_v43  ;;  %1822 = vmatprep.subr.mxu1 %v1461_v43 }
 0x327   :  { %1386 = vadd.xlane.f32.xlu1 %v3568_v60  ;;  %1782 = vmatpush3.msra.mxu0 %v1461_v43 }
 0x328   :  { %1838 = vmatpush3.msra.mxu1 %v1461_v43  ;;  %1783 = vmatprep.subr.mxu0 %v1460_v25 }
 0x329   :  { %1355 = vadd.xlane.f32.xlu0 %v1354_v6  ;;  %1823 = vmatprep.subr.mxu1 %v1460_v25 }
 0x32a   :  { %1784 = vmatpush3.msra.mxu0 %v1460_v25  ;;  %1839 = vmatpush3.msra.mxu1 %v1460_v25 }
 0x32b   :  { %1407 = vadd.xlane.f32.xlu1 %v3574_v33  ;;  %1785 = vmatprep.subr.mxu0 %v1459_v22 }
 0x32c   :  { %1824 = vmatprep.subr.mxu1 %v1459_v22  ;;  %1786 = vmatpush3.msra.mxu0 %v1459_v22 }
 0x32d   :  { %1397 = vadd.xlane.f32.xlu0 %v1396_v19  ;;  %1840 = vmatpush3.msra.mxu1 %v1459_v22 }
 0x32e   :  { %1787 = vmatprep.subr.mxu0 %v1458_v55  ;;  %1825 = vmatprep.subr.mxu1 %v1458_v55 }
 0x32f   :  { %1788 = vmatpush3.msra.mxu0 %v1458_v55  ;;  %1841 = vmatpush3.msra.mxu1 %v1458_v55 }
 0x330   :  { %1789 = vmatprep.subr.mxu0 %v1457_v45  ;;  %1826 = vmatprep.subr.mxu1 %v1457_v45 }
 0x331   :  { %1418 = vadd.xlane.f32.xlu0 %v1417_v12  ;;  %1790 = vmatpush3.msra.mxu0 %v1457_v45 }
 0x332   :  { %1842 = vmatpush3.msra.mxu1 %v1457_v45  ;;  %1791 = vmatprep.subr.mxu0 %v1456_v17 }
 0x333   :  { %1827 = vmatprep.subr.mxu1 %v1456_v17  ;;  %1792 = vmatpush3.msra.mxu0 %v1456_v17 }
 0x334   :  { %1843 = vmatpush3.msra.mxu1 %v1456_v17  ;;  %1793 = vmatprep.subr.mxu0 %v1455_v57 }
 0x335   :  { %1828 = vmatprep.subr.mxu1 %v1455_v57  ;;  %1794 = vmatpush3.msra.mxu0 %v1455_v57 }
 0x336   :  { %1844 = vmatpush3.msra.mxu1 %v1455_v57 }
 0x39a   :  { %v1198_v61 = vpop.xlane.xlu0 %1197 }
 0x39b   :  { %v1199_v13 = vrot.slane %v1198_v61, 4 }
 0x39c   :  { %v1209_v20 = vpop.xlane.xlu1 %1208 }
 0x39d   :  { %v1200_v44 = vadd.f32 %v1199_v13, %v1198_v61  ;;  %v1210_v48 = vrot.slane %v1209_v20, 4 }
 0x39e   :  { %v1219_v51 = vpop.xlane.xlu0 %1218 }
 0x39f   :  { %v1201_v15 = vrot.slane %v1200_v44, 2  ;;  %v1211_v40 = vadd.f32 %v1210_v48, %v1209_v20  ;;  %v1220_v30 = vrot.slane %v1219_v51, 4 }
 0x3a0   :  { %v1261_v24 = vpop.xlane.xlu1 %1260 }
 0x3a1   :  { %v1212_v28 = vrot.slane %v1211_v40, 2  ;;  %v1221_v0 = vadd.f32 %v1220_v30, %v1219_v51  ;;  %v1202_v2 = vadd.f32 %v1201_v15, %v1200_v44  ;;  %v1262_v53 = vrot.slane %v1261_v24, 4 }
 0x3a2   :  { %v1230_v39 = vpop.xlane.xlu0 %1229 }
 0x3a3   :  { %v1222_v41 = vrot.slane %v1221_v0, 2  ;;  %v1231_v59 = vrot.slane %v1230_v39, 4  ;;  %v1203_v9 = vrot.slane %v1202_v2, 1  ;;  %v1213_v42 = vadd.f32 %v1212_v28, %v1211_v40 }
 0x3a4   :  { %v1282_v8 = vpop.xlane.xlu1 %1281  ;;  %v1263_v3 = vadd.f32 %v1262_v53, %v1261_v24 }
 0x3a5   :  { %v1232_v32 = vadd.f32 %v1231_v59, %v1230_v39  ;;  %v1204_v47 = vadd.f32 %v1203_v9, %v1202_v2  ;;  %v1214_v50 = vrot.slane %v1213_v42, 1  ;;  %v1223_v54 = vadd.f32 %v1222_v41, %v1221_v0  ;;  %v1454_v39 = vld [vmem:[%s4082_s2 + $0x28] sm:$0xff]  ;;  %v1453_v41 = vld [vmem:[%s4082_s2 + $0x20] sm:$0xff]  ;;  %v1452_v59 = vld [vmem:[%s4082_s2 + $0x18] sm:$0xff] }
 0x3a6   :  { %v1272_v10 = vpop.xlane.xlu0 %1271  ;;  %v1283_v4 = vrot.slane %v1282_v8, 4  ;;  %v1264_v56 = vrot.slane %v1263_v3, 2  ;;  %1795 = vmatprep.subr.mxu0 %v1454_v39  ;;  %1829 = vmatprep.subr.mxu1 %v1454_v39  ;;  %v1451_v9 = vld [vmem:[%s4082_s2 + $0x10] sm:$0xff] }
 0x3a7   :  { %v1233_v14 = vrot.slane %v1232_v32, 2  ;;  %1871 = vpush %v1204_v47  ;;  %v1215_v1 = vadd.f32 %v1214_v50, %v1213_v42  ;;  %v1224_v49 = vrot.slane %v1223_v54, 1  ;;  %v1273_v27 = vrot.slane %v1272_v10, 4  ;;  %1796 = vmatpush3.msra.mxu0 %v1454_v39  ;;  %1845 = vmatpush3.msra.mxu1 %v1454_v39  ;;  %v1450_v42 = vld [vmem:[%s4082_s2 + $0x8] sm:$0xff] }
 0x3a8   :  { %v1284_v52 = vadd.f32 %v1283_v4, %v1282_v8  ;;  %v1265_v12 = vadd.f32 %v1264_v56, %v1263_v3  ;;  %1797 = vmatprep.subr.mxu0 %v1453_v41  ;;  %1830 = vmatprep.subr.mxu1 %v1453_v41  ;;  %v1324_v47 = vpop.xlane.xlu1 %1323 }
 0x3a9   :  { %v1234_v58 = vadd.f32 %v1233_v14, %v1232_v32  ;;  %1873 = vpush %v1215_v1  ;;  %v1225_v63 = vadd.f32 %v1224_v49, %v1223_v54  ;;  %v1274_v36 = vadd.f32 %v1273_v27, %v1272_v10  ;;  %1798 = vmatpush3.msra.mxu0 %v1453_v41  ;;  %v1449_v32 = vld [vmem:[%s4082_s2] sm:$0xff] }
 0x3aa   :  { %v1293_v26 = vpop.xlane.xlu0 %1292  ;;  %v1285_v34 = vrot.slane %v1284_v52, 2  ;;  %v1266_v44 = vrot.slane %v1265_v12, 1  ;;  %1846 = vmatpush3.msra.mxu1 %v1453_v41  ;;  %1799 = vmatprep.subr.mxu0 %v1452_v59 }
 0x3ab   :  { %v1235_v18 = vrot.slane %v1234_v58, 1  ;;  %1875 = vpush %v1225_v63  ;;  %v1294_v5 = vrot.slane %v1293_v26, 4  ;;  %v1275_v6 = vrot.slane %v1274_v36, 2  ;;  %1831 = vmatprep.subr.mxu1 %v1452_v59  ;;  %1800 = vmatpush3.msra.mxu0 %v1452_v59 }
 0x3ac   :  { %v1286_v13 = vadd.f32 %v1285_v34, %v1284_v52  ;;  %v1267_v30 = vadd.f32 %v1266_v44, %v1265_v12  ;;  %1847 = vmatpush3.msra.mxu1 %v1452_v59  ;;  %1801 = vmatprep.subr.mxu0 %v1451_v9  ;;  %v1345_v14 = vpop.xlane.xlu1 %1344 }
 0x3ad   :  { %v1236_v29 = vadd.f32 %v1235_v18, %v1234_v58  ;;  %v1295_v7 = vadd.f32 %v1294_v5, %v1293_v26  ;;  %v1276_v61 = vadd.f32 %v1275_v6, %v1274_v36  ;;  %1832 = vmatprep.subr.mxu1 %v1451_v9  ;;  %1802 = vmatpush3.msra.mxu0 %v1451_v9  ;;  %v1325_v58 = vrot.slane %v1324_v47, 4 }
 0x3ae   :  { %v1287_v51 = vrot.slane %v1286_v13, 1  ;;  %1848 = vmatpush3.msra.mxu1 %v1451_v9  ;;  %1803 = vmatprep.subr.mxu0 %v1450_v42  ;;  %v1335_v50 = vpop.xlane.xlu0 %1334  ;;  %v1346_v46 = vrot.slane %v1345_v14, 4 }
 0x3af   :  { %1877 = vpush %v1236_v29  ;;  %v1296_v19 = vrot.slane %v1295_v7, 2  ;;  %v1277_v48 = vrot.slane %v1276_v61, 1  ;;  %1833 = vmatprep.subr.mxu1 %v1450_v42  ;;  %1804 = vmatpush3.msra.mxu0 %v1450_v42  ;;  %v1336_v29 = vrot.slane %v1335_v50, 4  ;;  %v1326_v55 = vadd.f32 %v1325_v58, %v1324_v47 }
 0x3b0   :  { %v1288_v0 = vadd.f32 %v1287_v51, %v1286_v13  ;;  %1849 = vmatpush3.msra.mxu1 %v1450_v42  ;;  %1805 = vmatprep.subr.mxu0 %v1449_v32 }
 0x3b1   :  { %v1297_v20 = vadd.f32 %v1296_v19, %v1295_v7  ;;  %v1278_v28 = vadd.f32 %v1277_v48, %v1276_v61  ;;  %1834 = vmatprep.subr.mxu1 %v1449_v32  ;;  %1806 = vmatpush3.msra.mxu0 %v1449_v32  ;;  %v1337_v45 = vadd.f32 %v1336_v29, %v1335_v50  ;;  %v1327_v57 = vrot.slane %v1326_v55, 2  ;;  %v1387_v19 = vpop.xlane.xlu1 %1386 }
 0x3b2   :  { %1850 = vmatpush3.msra.mxu1 %v1449_v32  ;;  %v1356_v63 = vpop.xlane.xlu0 %1355 }
 0x3b3   :  { %v1298_v15 = vrot.slane %v1297_v20, 1  ;;  %v1357_v43 = vrot.slane %v1356_v63, 4  ;;  %v1338_v24 = vrot.slane %v1337_v45, 2  ;;  %v1328_v53 = vadd.f32 %v1327_v57, %v1326_v55 }
 0x3b5   :  { %v1299_v2 = vadd.f32 %v1298_v15, %v1297_v20  ;;  %v1358_v17 = vadd.f32 %v1357_v43, %v1356_v63  ;;  %v1339_v26 = vadd.f32 %v1338_v24, %v1337_v45  ;;  %v1329_v5 = vrot.slane %v1328_v53, 1  ;;  %v1408_v48 = vpop.xlane.xlu1 %1407 }
 0x3b6   :  { %v1398_v12 = vpop.xlane.xlu0 %1397  ;;  %v1409_v39 = vrot.slane %v1408_v48, 4 }
 0x3b7   :  { %v1359_v8 = vrot.slane %v1358_v17, 2  ;;  %v1340_v3 = vrot.slane %v1339_v26, 1  ;;  %v1330_v7 = vadd.f32 %v1329_v5, %v1328_v53 }
 0x3b8   :  { %v1410_v59 = vadd.f32 %v1409_v39, %v1408_v48 }
 0x3b9   :  { %v1360_v4 = vadd.f32 %v1359_v8, %v1358_v17  ;;  %v1341_v56 = vadd.f32 %v1340_v3, %v1339_v26 }
 0x3ba   :  { %v1411_v50 = vrot.slane %v1410_v59, 2 }
 0x3bb   :  { %v1361_v52 = vrot.slane %v1360_v4, 1 }
 0x3bd   :  { %v1362_v34 = vadd.f32 %v1361_v52, %v1360_v4 }
 0x3d8   :  { %s1872_s22 = spop %1871 }
 0x3da   :  { %s1874_s14 = spop %1873 }
 0x3dc   :  { %s1876_s0 = spop %1875 }
 0x3dd   :  { %s1227_s24 = sadd.f32 %s1876_s0, %s1872_s22 }
 0x3df   :  { %s3611_s9 = smul.f32 0.00048828125, %s1227_s24 }
 0x3e0   :  { %s1878_s15 = spop %1877 }
 0x3e1   :  { %s1238_s8 = sadd.f32 %s1878_s15, %s1874_s14  ;;  %s1241_s3 = smul.f32 %s3611_s9, %s3611_s9 }
 0x3e3   :  { %s1240_s6 = smul.f32 0.00048828125, %s1238_s8 }
 0x3e5   :  { %s1242_s5 = ssub.f32 %s1240_s6, %s1241_s3 }
 0x3e7   :  { %s1243_s26 = sadd.f32 1e-05, %s1242_s5 }
 0x3e8   :  { %s1744_s5 = sld [smem:[#allocation10 + $0x1]] }
 0x3e9   :  { %v1244_v35 = vstv %s1243_s26  ;;  %s1745_s26 = sld [smem:[#allocation11 + $0x1]] }
 0x3ea   :  { %1926 = vrsqrt.f32 %v1244_v35 }
 0x3f7   :  { %v1927_v40 = vpop.eup %1926 }
 0x3f8   :  { %1879 = vpush %v1927_v40  ;;  %v1388_v40 = vrot.slane %v1387_v19, 4 }
 0x3f9   :  { %1881 = vpush %v1267_v30  ;;  %v1419_v30 = vpop.xlane.xlu0 %1418 }
 0x3fa   :  { %1883 = vpush %v1278_v28  ;;  %v1399_v28 = vrot.slane %v1398_v12, 4 }
 0x3fb   :  { %1885 = vpush %v1288_v0 }
 0x3fc   :  { %1887 = vpush %v1299_v2  ;;  %v1400_v41 = vadd.f32 %v1399_v28, %v1398_v12 }
 0x3fe   :  { %v1401_v47 = vrot.slane %v1400_v41, 2 }
 0x429   :  { %s1880_s28 = spop %1879 }
 0x42a   :  { %s1248_s12 = smul.f32 %s1880_s28, %s1247_s11  ;;  %s1882_s23 = spop %1881 }
 0x42b   :  { %s1884_s10 = spop %1883 }
 0x42c   :  { %s1250_s17 = smul.f32 %s1248_s12, %s3611_s9  ;;  %s1886_s22 = spop %1885  ;;  %v1252_v54 = vstv %s1248_s12 }
 0x42d   :  { %s1290_s2 = sadd.f32 %s1886_s22, %s1882_s23  ;;  %s1888_s14 = spop %1887  ;;  %v1253_v1 = vmul.f32 %v1252_v54, %v3478_v38  ;;  %v1257_v49 = vmul.f32 %v1252_v54, %v3501_v37  ;;  %v1347_v38 = vadd.f32 %v1346_v46, %v1345_v14 }
 0x42e   :  { %s1301_s0 = sadd.f32 %s1888_s14, %s1884_s10 }
 0x42f   :  { %s3634_s24 = smul.f32 0.00048828125, %s1290_s2  ;;  %s1251_s15 = ssub.f32 %s1249_s25, %s1250_s17  ;;  %v1348_v10 = vrot.slane %v1347_v38, 2 }
 0x430   :  { %s1303_s8 = smul.f32 0.00048828125, %s1301_s0  ;;  %s1746_s12 = sld [smem:[#allocation10 + $0x2]] }
 0x431   :  { %s1304_s3 = smul.f32 %s3634_s24, %s3634_s24  ;;  %v1254_v18 = vstv %s1251_s15  ;;  %v1349_v27 = vadd.f32 %v1348_v10, %v1347_v38  ;;  %s1747_s23 = sld [smem:[#allocation11 + $0x2]] }
 0x432   :  { %v1255_v16 = vadd.f32 %v1254_v18, %v1253_v1  ;;  %v1258_v31 = vadd.f32 %v1257_v49, %v1254_v18  ;;  %v1402_v1 = vadd.f32 %v1401_v47, %v1400_v41  ;;  %v1412_v49 = vadd.f32 %v1411_v50, %v1410_v59 }
 0x433   :  { %s1305_s9 = ssub.f32 %s1303_s8, %s1304_s3  ;;  %v1350_v36 = vrot.slane %v1349_v27, 1 }
 0x434   :  { %v1256_v25 = vmax.f32 %v1255_v16, 0.0  ;;  %v1259_v22 = vmax.f32 %v1258_v31, 0.0  ;;  %v1403_v18 = vrot.slane %v1402_v1, 1  ;;  %v1413_v29 = vrot.slane %v1412_v49, 1 }
 0x435   :  { %s1306_s6 = sadd.f32 1e-05, %s1305_s9  ;;  %v1351_v6 = vadd.f32 %v1350_v36, %v1349_v27 }
 0x436   :  { %1807 = vmatprep.mubr.f32.mxu0 %v1256_v25  ;;  %1813 = vmatprep.mubr.f32.mxu1 %v1259_v22  ;;  %v1404_v43 = vadd.f32 %v1403_v18, %v1402_v1  ;;  %v1414_v25 = vadd.f32 %v1413_v29, %v1412_v49 }
 0x437   :  { %v1307_v37 = vstv %s1306_s6 }
 0x438   :  { %1928 = vrsqrt.f32 %v1307_v37 }
 0x445   :  { %v1929_v35 = vpop.eup %1928 }
 0x446   :  { %1889 = vpush %v1929_v35 }
 0x447   :  { %1891 = vpush %v1330_v7 }
 0x448   :  { %1893 = vpush %v1341_v56 }
 0x449   :  { %1895 = vpush %v1351_v6 }
 0x44a   :  { %1897 = vpush %v1362_v34 }
 0x477   :  { %s1890_s16 = spop %1889 }
 0x478   :  { %s1311_s4 = smul.f32 %s1890_s16, %s1744_s5  ;;  %s1892_s18 = spop %1891 }
 0x479   :  { %s1894_s19 = spop %1893 }
 0x47a   :  { %s1313_s20 = smul.f32 %s1311_s4, %s3634_s24  ;;  %v1315_v61 = vstv %s1311_s4  ;;  %s1896_s1 = spop %1895 }
 0x47b   :  { %s1353_s7 = sadd.f32 %s1896_s1, %s1892_s18  ;;  %s1898_s29 = spop %1897  ;;  %v1316_v13 = vmul.f32 %v1315_v61, %v3521_v23  ;;  %v1320_v20 = vmul.f32 %v1315_v61, %v3543_v62  ;;  %v1420_v23 = vrot.slane %v1419_v30, 4  ;;  %v1389_v62 = vadd.f32 %v1388_v40, %v1387_v19 }
 0x47c   :  { %s1314_s30 = ssub.f32 %s1745_s26, %s1313_s20 }
 0x47d   :  { %s3643_s13 = smul.f32 0.00048828125, %s1353_s7  ;;  %s1364_s27 = sadd.f32 %s1898_s29, %s1894_s19  ;;  %v1421_v42 = vadd.f32 %v1420_v23, %v1419_v30  ;;  %v1390_v32 = vrot.slane %v1389_v62, 2 }
 0x47e   :  { %v1317_v44 = vstv %s1314_s30  ;;  %s1748_s4 = sld [smem:[#allocation10 + $0x3]] }
 0x47f   :  { %s1367_s21 = smul.f32 %s3643_s13, %s3643_s13  ;;  %v1318_v51 = vadd.f32 %v1317_v44, %v1316_v13  ;;  %v1321_v15 = vadd.f32 %v1320_v20, %v1317_v44  ;;  %v1422_v54 = vrot.slane %v1421_v42, 2  ;;  %v1391_v14 = vadd.f32 %v1390_v32, %v1389_v62  ;;  %s1749_s18 = sld [smem:[#allocation11 + $0x3]] }
 0x480   :  { %s1366_s11 = smul.f32 0.00048828125, %s1364_s27  ;;  %s2044_s27 = smov [#allocation13]  }
 0x481   :  { %v1319_v0 = vmax.f32 %v1318_v51, 0.0  ;;  %v1322_v2 = vmax.f32 %v1321_v15, 0.0  ;;  %v1423_v58 = vadd.f32 %v1422_v54, %v1421_v42  ;;  %v1392_v63 = vrot.slane %v1391_v14, 1 }
 0x482   :  { %s1368_s25 = ssub.f32 %s1366_s11, %s1367_s21  ;;  %s1598_s21 = sshll.u32 %s2044_s27, 4  ;;  %s1599_s21 = int_to_ptr.vmem [resolvable:$true] %s1598_s21 }
 0x483   :  { %1808 = vmatmul.mubr.f32.vlgmr.msra.gmra.mxu0 %v1319_v0  ;;  %1814 = vmatmul.mubr.f32.vlgmr.msra.gmra.mxu1 %v1322_v2  ;;  %v1424_v16 = vrot.slane %v1423_v58, 1  ;;  %v1393_v46 = vadd.f32 %v1392_v63, %v1391_v14  ;;  %s2006_s11 = scalar_lea.vmem %s1599_s21, 1024  ;;  %p2011_p3 = scmp.lt.s32.totalorder %s1599_s21, %s1599_s21 }
 0x484   :  { %s1369_s28 = sadd.f32 1e-05, %s1368_s25  ;;  %p2007_p2 = scmp.ne.s32.totalorder %s1599_s21, %s2006_s11 }
 0x485   :  { %v1425_v22 = vadd.f32 %v1424_v16, %v1423_v58  ;;  %p2012_p4 = scmp.lt.s32.totalorder %s2006_s11, %s2006_s11 }
 0x486   :  { %v1370_v9 = vstv %s1369_s28 }
 0x487   :  { %1930 = vrsqrt.f32 %v1370_v9  ;;  %p2013_p5 = por %p2012_p4, %p2011_p3 }
 0x489   :  { %p2014_p6 = pnand %p2013_p5, %p2007_p2 }
 0x494   :  { %v1931_v31 = vpop.eup %1930 }
 0x495   :  { %1899 = vpush %v1931_v31 }
 0x496   :  { %1901 = vpush %v1393_v46 }
 0x497   :  { %1903 = vpush %v1404_v43 }
 0x498   :  { %1905 = vpush %v1414_v25 }
 0x499   :  { %1907 = vpush %v1425_v22 }
 0x4c6   :  { %s1900_s10 = spop %1899 }
 0x4c7   :  { %s1374_s17 = smul.f32 %s1900_s10, %s1746_s12  ;;  %s1902_s22 = spop %1901 }
 0x4c8   :  { %s1904_s2 = spop %1903 }
 0x4c9   :  { %s1376_s14 = smul.f32 %s1374_s17, %s3643_s13  ;;  %v1378_v55 = vstv %s1374_s17  ;;  %s1906_s0 = spop %1905 }
 0x4ca   :  { %s1416_s24 = sadd.f32 %s1906_s0, %s1902_s22  ;;  %s1908_s15 = spop %1907  ;;  %v1379_v45 = vmul.f32 %v1378_v55, %v3552_v21  ;;  %v1383_v38 = vmul.f32 %v1378_v55, %v3561_v11 }
 0x4cb   :  { %s1377_s8 = ssub.f32 %s1747_s23, %s1376_s14 }
 0x4cc   :  { %s1428_s3 = smul.f32 0.00048828125, %s1416_s24  ;;  %s1427_s9 = sadd.f32 %s1908_s15, %s1904_s2 }
 0x4cd   :  { %v1380_v37 = vstv %s1377_s8  ;;  %s4083_s13 = sld [smem:[#allocation68_spill]] }
 0x4ce   :  { %s1430_s6 = smul.f32 %s1428_s3, %s1428_s3  ;;  %v1381_v17 = vadd.f32 %v1380_v37, %v1379_v45  ;;  %v1384_v57 = vadd.f32 %v1383_v38, %v1380_v37 }
 0x4cf   :  { %s1429_s5 = smul.f32 0.00048828125, %s1427_s9 }
 0x4d0   :  { %v1382_v24 = vmax.f32 %v1381_v17, 0.0  ;;  %v1385_v10 = vmax.f32 %v1384_v57, 0.0 }
 0x4d1   :  { %s1431_s26 = ssub.f32 %s1429_s5, %s1430_s6 }
 0x4d2   :  { %1810 = vmatprep.mubr.f32.mxu0 %v1382_v24  ;;  %1816 = vmatprep.mubr.f32.mxu1 %v1385_v10 }
 0x4d3   :  { %s1432_s16 = sadd.f32 1e-05, %s1431_s26  ;;  %v1750_v52 = vld [vmem:[%s4083_s13] ss:$0 sm:$0xff] }
 0x4d5   :  { %v1433_v8 = vstv %s1432_s16 }
 0x4d6   :  { %1932 = vrsqrt.f32 %v1433_v8 }
 0x4e3   :  { %v1933_v53 = vpop.eup %1932 }
 0x4e4   :  { %1909 = vpush %v1933_v53 }
 0x515   :  { %s1910_s19 = spop %1909 }
 0x516   :  { %s1437_s20 = smul.f32 %s1910_s19, %s1748_s4 }
 0x518   :  { %s1439_s1 = smul.f32 %s1437_s20, %s1428_s3  ;;  %v1441_v21 = vstv %s1437_s20 }
 0x519   :  { %v1442_v11 = vmul.f32 %v1441_v21, %v3568_v60  ;;  %v1446_v26 = vmul.f32 %v1441_v21, %v3574_v33 }
 0x51a   :  { %s1440_s7 = ssub.f32 %s1749_s18, %s1439_s1 }
 0x51c   :  { %v1443_v27 = vstv %s1440_s7 }
 0x51d   :  { %v1444_v4 = vadd.f32 %v1443_v27, %v1442_v11  ;;  %v1447_v5 = vadd.f32 %v1446_v26, %v1443_v27 }
 0x51f   :  { %v1445_v3 = vmax.f32 %v1444_v4, 0.0  ;;  %v1448_v36 = vmax.f32 %v1447_v5, 0.0 }
 0x521   :  { %1811 = vmatmul.mubr.f32.gmra.mxu0 %v1445_v3  ;;  %1817 = vmatmul.mubr.f32.gmra.mxu1 %v1448_v36 }
 0x543   :  { %v1809_v35 = vpop.f32.mrf.mxu0  ;;  %v1815_v7 = vpop.f32.mrf.mxu1 }
 0x544   :  { %v1544_v56 = vadd.f32 %v1809_v35, %v1750_v52  ;;  %v1564_v6 = vadd.f32 %v1815_v7, %v1750_v52 }
 0x545   :  { %v1538_v34 = vpop.f32.mrf.mxu0  ;;  %v1558_v60 = vpop.f32.mrf.mxu1 }
 0x546   :  { %1580 = vst.msk [vmem:[#allocation13 + $0x8] sm:$0xff] %vm1577_vm4, %v1544_v56  ;;  %1588 = vst.msk [vmem:[#allocation13 + $0x28] sm:$0xff] %vm1577_vm4, %v1564_v6  ;;  %v1539_v33 = vadd.f32 %v1750_v52, %v1538_v34  ;;  %v1559_v19 = vadd.f32 %v1750_v52, %v1558_v60 }
 0x548   :  { %1578 = vst.msk [vmem:[#allocation13] sm:$0xff] %vm1577_vm4, %v1539_v33  ;;  %1586 = vst.msk [vmem:[#allocation13 + $0x20] sm:$0xff] %vm1577_vm4, %v1559_v19 }
 0x5e1   :  { %v1812_v12 = vpop.f32.mrf.mxu0  ;;  %v1818_v61 = vpop.f32.mrf.mxu1 }
 0x5e2   :  { %v1554_v13 = vadd.f32 %v1812_v12, %v1750_v52  ;;  %v1574_v20 = vadd.f32 %v1818_v61, %v1750_v52 }
 0x5e3   :  { %v1548_v44 = vpop.f32.mrf.mxu0  ;;  %v1568_v48 = vpop.f32.mrf.mxu1 }
 0x5e4   :  { %1584 = vst.msk [vmem:[#allocation13 + $0x18] sm:$0xff] %vm1577_vm4, %v1554_v13  ;;  %1592 = vst.msk [vmem:[#allocation13 + $0x38] sm:$0xff] %vm1577_vm4, %v1574_v20  ;;  %v1549_v51 = vadd.f32 %v1750_v52, %v1548_v44  ;;  %v1569_v15 = vadd.f32 %v1750_v52, %v1568_v48 }
 0x5e6   :  { %1582 = vst.msk [vmem:[#allocation13 + $0x10] sm:$0xff] %vm1577_vm4, %v1549_v51  ;;  %1590 = vst.msk [vmem:[#allocation13 + $0x30] sm:$0xff] %vm1577_vm4, %v1569_v15 }
 0x5e7   :  { %2017 = shalt.err (!%p2014_p6)
}
 0x5e8   :  { %s2045_s25 = smov 128   ;;  %s2046_s28 = smov 8  }
 0x5e9   :  { %s4084_s10 = sld [smem:[#allocation69_spill]] }
 0x5ef   :  { %1604 = dma.vmem_to_hbm [thread:$0]  %s1599_s21, 1024, %s4084_s10, [#allocation3], %s2045_s25, %s2045_s25, %s2046_s28  }
 0x5f0   :  { %2034 = dma.done.wait [#allocation3], 1024  }
 0x5f1   :  { %2035 = vsyncadd [#allocation3], 4294966272 }
 0x5f2   :  { %1608 = vsyncpa [#allocation3], 1 }
 0x5f3   :  { %1609 = vsyncpa [#allocation4], 1 }
 0x5f4   :  { %1610 = vsyncpa [#allocation6], 1 }
 0x5f5   :  { %1611 = vsyncpa [#allocation9], 1 }
 0x5f6   :  { %1612 = vsyncpa [#allocation12], 1 }

</bundles_post_ra>
